<compile_context>
chip_gen: v7x
topology: tpu7x:2x2x1
jax: 0.10.0
libtpu: 0.0.40
codegen_flags: <defaults>
</compile_context>

<pallas_src>
import numpy as np
import jax
import jax.numpy as jnp
from jax.experimental import pallas as pl
from jax.experimental.pallas import tpu as pltpu

_VMEM_LIMIT_BYTES = 32 * 1024 * 1024  # safe scoped-VMEM budget on v5e/v6e/v7x


# ---------------------------------------------------------------------------
# tiling helpers
# ---------------------------------------------------------------------------
def _batch_tile(n, cap=16):
    """Power-of-two batch tile (<= cap) with >=2 grid steps whenever n >= 2
    (v7x megacore + pipelining), plus the padded batch size it requires."""
    if n <= 1:
        return 1, max(n, 1)
    tb = 1
    while tb * 2 <= min(cap, n // 2):
        tb *= 2
    n_pad = -(-n // tb) * tb
    return tb, n_pad


def _head_tile(n_pad, tb):
    """Row tile for the 2-D FC head: must be a multiple of 8 or the full dim."""
    return tb if tb % 8 == 0 else n_pad


# ---------------------------------------------------------------------------
# Pallas kernels
# ---------------------------------------------------------------------------
def _conv5x5_relu_pool2_kernel(x_ref, w_ref, b_ref, o_ref):
    """Fused 5x5 conv (pad=2) + bias + ReLU + 2x2/2 max-pool for one batch tile.

    x_ref: (tb, Ho+2, Wo+2, 4*Cin) bf16 -- padded input pre-split into its four
           stride-2 phases (channel block p = 2*py+px holds x_pad[:, py::2, px::2, :]),
           so every in-kernel access is unit-stride.
    w_ref: (9, 4*Cin, 4*Cout) bf16 -- one K x N matrix per 3x3 "tap"; the four
           pool corners are packed along N (corner-major column blocks).
    b_ref: (1, 4*Cout) f32 -- bias tiled over the 4 corners.
    o_ref: (tb, Ho, Wo, Cout) bf16 -- pooled activations.
    """
    tb, ho, wo, cout = o_ref.shape
    cin4 = x_ref.shape[-1]
    m = tb * ho * wo
    x = x_ref[...]
    acc = jnp.zeros((m, 4 * cout), jnp.float32)
    # 9-tap accumulation: each tap is one wide (K=4*Cin, N=4*Cout) MXU matmul.
    for ay in range(3):
        for ax in range(3):
            win = x[:, ay:ay + ho, ax:ax + wo, :].reshape(m, cin4)
            acc = acc + jnp.dot(win, w_ref[ay * 3 + ax],
                                preferred_element_type=jnp.float32)
    acc = jnp.maximum(acc + b_ref[...], 0.0)            # bias + ReLU (commutes with max)
    pooled = jnp.maximum(                                # 4-way corner max on the VPU
        jnp.maximum(acc[:, 0 * cout:1 * cout], acc[:, 1 * cout:2 * cout]),
        jnp.maximum(acc[:, 2 * cout:3 * cout], acc[:, 3 * cout:4 * cout]))
    o_ref[...] = pooled.reshape(tb, ho, wo, cout).astype(o_ref.dtype)


def _fc_head_kernel(f_ref, w1_ref, b1_ref, w2_ref, b2_ref, o_ref):
    """linear1 + ReLU + linear2 for one block of batch rows (PyTorch NCHW
    flatten order is folded into the packed w1)."""
    h = jnp.dot(f_ref[...], w1_ref[...], preferred_element_type=jnp.float32) + b1_ref[...]
    h = jnp.maximum(h, 0.0).astype(jnp.bfloat16)
    out = jnp.dot(h, w2_ref[...], preferred_element_type=jnp.float32) + b2_ref[...]
    o_ref[...] = out.astype(o_ref.dtype)


# ---------------------------------------------------------------------------
# pallas_call wrappers
# ---------------------------------------------------------------------------
def _compiler_params():
    return pltpu.CompilerParams(
        dimension_semantics=("parallel",),          # batch grid axis -> megacore
        vmem_limit_bytes=_VMEM_LIMIT_BYTES)


def conv5x5_relu_pool2(x_phases, w_packed, b4, tb):
    n, hq, wq, c4 = x_phases.shape
    ho, wo = hq - 2, wq - 2
    cout = w_packed.shape[-1] // 4
    return pl.pallas_call(
        _conv5x5_relu_pool2_kernel,
        out_shape=jax.ShapeDtypeStruct((n, ho, wo, cout), jnp.bfloat16),
        grid_spec=pltpu.PrefetchScalarGridSpec(
            num_scalar_prefetch=0,
            grid=(n // tb,),
            in_specs=[
                pl.BlockSpec((tb, hq, wq, c4), lambda i: (i, 0, 0, 0)),
                pl.BlockSpec(w_packed.shape, lambda i: (0, 0, 0)),
                pl.BlockSpec(b4.shape, lambda i: (0, 0)),
            ],
            out_specs=pl.BlockSpec((tb, ho, wo, cout), lambda i: (i, 0, 0, 0)),
        ),
        compiler_params=_compiler_params(),
    )(x_phases, w_packed, b4)


def fc_head(feats, w1, b1, w2, b2, tb):
    n, k = feats.shape
    ncls = w2.shape[-1]
    full2d = lambda a: pl.BlockSpec(a.shape, lambda i: (0, 0))
    return pl.pallas_call(
        _fc_head_kernel,
        out_shape=jax.ShapeDtypeStruct((n, ncls), jnp.float32),
        grid_spec=pltpu.PrefetchScalarGridSpec(
            num_scalar_prefetch=0,
            grid=(n // tb,),
            in_specs=[pl.BlockSpec((tb, k), lambda i: (i, 0)),
                      full2d(w1), full2d(b1), full2d(w2), full2d(b2)],
            out_specs=pl.BlockSpec((tb, ncls), lambda i: (i, 0)),
        ),
        compiler_params=_compiler_params(),
    )(feats, w1, b1, w2, b2)


# ---------------------------------------------------------------------------
# XLA-side glue (cheap, same-size rearrangement that feeds each conv kernel)
# ---------------------------------------------------------------------------
def _phase_split_pad2(x_nhwc):
    """Zero-pad H/W by 2 and split into the four stride-2 phases concatenated
    on channels (block p = 2*py+px <- x_pad[:, py::2, px::2, :])."""
    xp = jnp.pad(x_nhwc, ((0, 0), (2, 2), (2, 2), (0, 0)))
    return jnp.concatenate(
        [xp[:, py::2, px::2, :] for py in range(2) for px in range(2)], axis=-1)


# ---------------------------------------------------------------------------
# parameter packing (done once, outside the per-step forward)
# ---------------------------------------------------------------------------
def _pack_conv_pool_weight(w_oihw, cin_pad=None):
    """PyTorch (Cout, Cin, 5, 5) -> (9, 4*Cin_p, 4*Cout):
       row index  = (2*py+px)*Cin_p + ci   (input phase-major, matches the
                                            phase-split input channel layout)
       col index  = (2*dy+dx)*Cout  + co   (pool corner-major)
       tap index  = ay*3 + ax, with ky = 2*ay+py-dy, kx = 2*ax+px-dx (zero if
       outside [0,4])."""
    w = np.asarray(w_oihw, np.float32)
    cout, cin = w.shape[0], w.shape[1]
    cin_p = cin if cin_pad is None else cin_pad
    packed = np.zeros((9, 4, cin_p, 4, cout), np.float32)
    for ay in range(3):
        for ax in range(3):
            for py in range(2):
                for px in range(2):
                    for dy in range(2):
                        for dx in range(2):
                            ky, kx = 2 * ay + py - dy, 2 * ax + px - dx
                            if 0 <= ky <= 4 and 0 <= kx <= 4:
                                packed[ay * 3 + ax, 2 * py + px, :cin,
                                       2 * dy + dx, :] = w[:, :, ky, kx].T
    return jnp.asarray(packed.reshape(9, 4 * cin_p, 4 * cout), dtype=jnp.bfloat16)


def _pool_bias(b):
    """Bias tiled over the 4 pool corners -> (1, 4*Cout) f32."""
    b = np.asarray(b, np.float32).reshape(1, -1)
    return jnp.asarray(np.tile(b, (1, 4)))


def prepare_params(params):
    """One-time repack of PyTorch-layout parameters into bf16, corner-packed
    conv matrices and pre-transposed FC matrices (folds PyTorch's NCHW flatten
    order into linear1)."""
    vec = lambda b: jnp.asarray(np.asarray(b, np.float32).reshape(1, -1))
    cin1 = params["conv1_w"].shape[1]
    cin1_pad = cin1 + (-cin1) % 8                      # 3 -> 8 (lane alignment)
    l1 = np.asarray(params["lin1_w"], np.float32).reshape(64, 64, 4, 4)  # (j,c,h,w)
    l1 = l1.transpose(2, 3, 1, 0).reshape(16 * 64, 64)                   # (h,w,c) rows
    l2 = np.asarray(params["lin2_w"], np.float32).T                      # (64, 10)
    return {
        "c1w": _pack_conv_pool_weight(params["conv1_w"], cin_pad=cin1_pad),
        "c1b": _pool_bias(params["conv1_b"]),
        "c2w": _pack_conv_pool_weight(params["conv2_w"]),
        "c2b": _pool_bias(params["conv2_b"]),
        "c3w": _pack_conv_pool_weight(params["conv3_w"]),
        "c3b": _pool_bias(params["conv3_b"]),
        "l1w": jnp.asarray(l1, jnp.bfloat16), "l1b": vec(params["lin1_b"]),
        "l2w": jnp.asarray(l2, jnp.bfloat16), "l2b": vec(params["lin2_b"]),
    }


def init_params(key):
    ks = jax.random.split(key, 10)
    scale = 0.05
    return {
        "conv1_w": scale * jax.random.normal(ks[0], (32, 3, 5, 5), jnp.float32),
        "conv1_b": scale * jax.random.normal(ks[1], (32,), jnp.float32),
        "conv2_w": scale * jax.random.normal(ks[2], (32, 32, 5, 5), jnp.float32),
        "conv2_b": scale * jax.random.normal(ks[3], (32,), jnp.float32),
        "conv3_w": scale * jax.random.normal(ks[4], (64, 32, 5, 5), jnp.float32),
        "conv3_b": scale * jax.random.normal(ks[5], (64,), jnp.float32),
        "lin1_w": scale * jax.random.normal(ks[6], (64, 1024), jnp.float32),
        "lin1_b": scale * jax.random.normal(ks[7], (64,), jnp.float32),
        "lin2_w": scale * jax.random.normal(ks[8], (10, 64), jnp.float32),
        "lin2_b": scale * jax.random.normal(ks[9], (10,), jnp.float32),
    }


# ---------------------------------------------------------------------------
# forward pass
# ---------------------------------------------------------------------------
@jax.jit
def net_forward(pp, x_nchw):
    n = x_nchw.shape[0]
    tb, n_pad = _batch_tile(n)
    # NCHW (PyTorch) -> NHWC (channels on lanes), bf16 for the MXU.
    x = jnp.transpose(x_nchw, (0, 2, 3, 1)).astype(jnp.bfloat16)
    cpad = (-x.shape[-1]) % 8                          # conv1 channels 3 -> 8
    x = jnp.pad(x, ((0, n_pad - n), (0, 0), (0, 0), (0, cpad)))

    x = conv5x5_relu_pool2(_phase_split_pad2(x), pp["c1w"], pp["c1b"], tb)  # (N,16,16,32)
    x = conv5x5_relu_pool2(_phase_split_pad2(x), pp["c2w"], pp["c2b"], tb)  # (N, 8, 8,32)
    x = conv5x5_relu_pool2(_phase_split_pad2(x), pp["c3w"], pp["c3b"], tb)  # (N, 4, 4,64)

    # flatten in (h, w, c) order; the permutation to PyTorch's (c, h, w)
    # flatten is folded into the packed l1w, so this reshape is free.
    feats = x.reshape(n_pad, 4 * 4 * 64)
    logits = fc_head(feats, pp["l1w"], pp["l1b"], pp["l2w"], pp["l2b"],
                     _head_tile(n_pad, tb))
    return logits[:n]


if __name__ == "__main__":
    key = jax.random.PRNGKey(0)
    k_param, k_x = jax.random.split(key)
    params = init_params(k_param)
    packed = prepare_params(params)

    # CIFAR-10 shaped input (the 1024-wide linear1 implies 3x32x32 inputs)
    x = jax.random.normal(k_x, (2, 3, 32, 32), jnp.float32)

    logits = net_forward(packed, x)
    jax.block_until_ready(logits)
    assert logits.shape == (2, 10) and logits.dtype == jnp.float32
    assert bool(jnp.all(jnp.isfinite(logits)))
    print("KERNEL_OK")
</pallas_src>

<mosaic_0001>
module attributes {stable_mosaic.version = 11 : i64} {
  func.func @_conv5x5_relu_pool2_kernel(%arg0: i32, %arg1: memref<1x18x18x32xbf16, #tpu.memory_space<vmem>>, %arg2: memref<9x32x128xbf16, #tpu.memory_space<vmem>>, %arg3: memref<1x128xf32, #tpu.memory_space<vmem>>, %arg4: memref<1x16x16x32xbf16, #tpu.memory_space<vmem>>) attributes {dimension_semantics = [#tpu.dimension_semantics<parallel>], iteration_bounds = array<i64: 2>, scalar_prefetch = 0 : i64, scratch_operands = 0 : i64, tpu.core_type = #tpu.core_type<tc>, window_params = [{transform_indices = @transform_0, window_bounds = array<i64: 1, 18, 18, 32>}, {pipeline_mode = #tpu.pipeline_mode<synchronous>, transform_indices = @transform_1, window_bounds = array<i64: 9, 32, 128>}, {pipeline_mode = #tpu.pipeline_mode<synchronous>, transform_indices = @transform_2, window_bounds = array<i64: 1, 128>}, {transform_indices = @transform_3, window_bounds = array<i64: 1, 16, 16, 32>}]} {
    %c0 = arith.constant 0 : index
    %c0_0 = arith.constant 0 : index
    %c0_1 = arith.constant 0 : index
    %c0_2 = arith.constant 0 : index
    %0 = vector.load %arg1[%c0, %c0_0, %c0_1, %c0_2] : memref<1x18x18x32xbf16, #tpu.memory_space<vmem>>, vector<1x18x18x32xbf16>
    %cst = arith.constant 0.000000e+00 : f32
    %1 = vector.broadcast %cst : f32 to vector<256x128xf32>
    %2 = vector.extract_strided_slice %0 {offsets = [0, 0, 0, 0], sizes = [1, 16, 16, 32], strides = [1, 1, 1, 1]} : vector<1x18x18x32xbf16> to vector<1x16x16x32xbf16>
    %3 = vector.shape_cast %2 : vector<1x16x16x32xbf16> to vector<256x32xbf16>
    %c0_3 = arith.constant 0 : index
    %c0_4 = arith.constant 0 : index
    %c0_5 = arith.constant 0 : index
    %4 = vector.load %arg2[%c0_3, %c0_4, %c0_5] : memref<9x32x128xbf16, #tpu.memory_space<vmem>>, vector<1x32x128xbf16>
    %5 = vector.shape_cast %4 : vector<1x32x128xbf16> to vector<32x128xbf16>
    %cst_6 = arith.constant dense<0.000000e+00> : vector<256x128xf32>
    %6 = tpu.matmul %3, %5, %cst_6 {dimension_numbers = #tpu.dot_dimension_numbers<[1], [0], [0], [1], [0, 0, 1, 1], [], []>} : vector<256x32xbf16>, vector<32x128xbf16>, vector<256x128xf32> -> vector<256x128xf32>
    %7 = arith.addf %1, %6 : vector<256x128xf32>
    %8 = vector.extract_strided_slice %0 {offsets = [0, 0, 1, 0], sizes = [1, 16, 16, 32], strides = [1, 1, 1, 1]} : vector<1x18x18x32xbf16> to vector<1x16x16x32xbf16>
    %9 = vector.shape_cast %8 : vector<1x16x16x32xbf16> to vector<256x32xbf16>
    %c1 = arith.constant 1 : index
    %c0_7 = arith.constant 0 : index
    %c0_8 = arith.constant 0 : index
    %10 = vector.load %arg2[%c1, %c0_7, %c0_8] : memref<9x32x128xbf16, #tpu.memory_space<vmem>>, vector<1x32x128xbf16>
    %11 = vector.shape_cast %10 : vector<1x32x128xbf16> to vector<32x128xbf16>
    %cst_9 = arith.constant dense<0.000000e+00> : vector<256x128xf32>
    %12 = tpu.matmul %9, %11, %cst_9 {dimension_numbers = #tpu.dot_dimension_numbers<[1], [0], [0], [1], [0, 0, 1, 1], [], []>} : vector<256x32xbf16>, vector<32x128xbf16>, vector<256x128xf32> -> vector<256x128xf32>
    %13 = arith.addf %7, %12 : vector<256x128xf32>
    %14 = vector.extract_strided_slice %0 {offsets = [0, 0, 2, 0], sizes = [1, 16, 16, 32], strides = [1, 1, 1, 1]} : vector<1x18x18x32xbf16> to vector<1x16x16x32xbf16>
    %15 = vector.shape_cast %14 : vector<1x16x16x32xbf16> to vector<256x32xbf16>
    %c2 = arith.constant 2 : index
    %c0_10 = arith.constant 0 : index
    %c0_11 = arith.constant 0 : index
    %16 = vector.load %arg2[%c2, %c0_10, %c0_11] : memref<9x32x128xbf16, #tpu.memory_space<vmem>>, vector<1x32x128xbf16>
    %17 = vector.shape_cast %16 : vector<1x32x128xbf16> to vector<32x128xbf16>
    %cst_12 = arith.constant dense<0.000000e+00> : vector<256x128xf32>
    %18 = tpu.matmul %15, %17, %cst_12 {dimension_numbers = #tpu.dot_dimension_numbers<[1], [0], [0], [1], [0, 0, 1, 1], [], []>} : vector<256x32xbf16>, vector<32x128xbf16>, vector<256x128xf32> -> vector<256x128xf32>
    %19 = arith.addf %13, %18 : vector<256x128xf32>
    %20 = vector.extract_strided_slice %0 {offsets = [0, 1, 0, 0], sizes = [1, 16, 16, 32], strides = [1, 1, 1, 1]} : vector<1x18x18x32xbf16> to vector<1x16x16x32xbf16>
    %21 = vector.shape_cast %20 : vector<1x16x16x32xbf16> to vector<256x32xbf16>
    %c3 = arith.constant 3 : index
    %c0_13 = arith.constant 0 : index
    %c0_14 = arith.constant 0 : index
    %22 = vector.load %arg2[%c3, %c0_13, %c0_14] : memref<9x32x128xbf16, #tpu.memory_space<vmem>>, vector<1x32x128xbf16>
    %23 = vector.shape_cast %22 : vector<1x32x128xbf16> to vector<32x128xbf16>
    %cst_15 = arith.constant dense<0.000000e+00> : vector<256x128xf32>
    %24 = tpu.matmul %21, %23, %cst_15 {dimension_numbers = #tpu.dot_dimension_numbers<[1], [0], [0], [1], [0, 0, 1, 1], [], []>} : vector<256x32xbf16>, vector<32x128xbf16>, vector<256x128xf32> -> vector<256x128xf32>
    %25 = arith.addf %19, %24 : vector<256x128xf32>
    %26 = vector.extract_strided_slice %0 {offsets = [0, 1, 1, 0], sizes = [1, 16, 16, 32], strides = [1, 1, 1, 1]} : vector<1x18x18x32xbf16> to vector<1x16x16x32xbf16>
    %27 = vector.shape_cast %26 : vector<1x16x16x32xbf16> to vector<256x32xbf16>
    %c4 = arith.constant 4 : index
    %c0_16 = arith.constant 0 : index
    %c0_17 = arith.constant 0 : index
    %28 = vector.load %arg2[%c4, %c0_16, %c0_17] : memref<9x32x128xbf16, #tpu.memory_space<vmem>>, vector<1x32x128xbf16>
    %29 = vector.shape_cast %28 : vector<1x32x128xbf16> to vector<32x128xbf16>
    %cst_18 = arith.constant dense<0.000000e+00> : vector<256x128xf32>
    %30 = tpu.matmul %27, %29, %cst_18 {dimension_numbers = #tpu.dot_dimension_numbers<[1], [0], [0], [1], [0, 0, 1, 1], [], []>} : vector<256x32xbf16>, vector<32x128xbf16>, vector<256x128xf32> -> vector<256x128xf32>
    %31 = arith.addf %25, %30 : vector<256x128xf32>
    %32 = vector.extract_strided_slice %0 {offsets = [0, 1, 2, 0], sizes = [1, 16, 16, 32], strides = [1, 1, 1, 1]} : vector<1x18x18x32xbf16> to vector<1x16x16x32xbf16>
    %33 = vector.shape_cast %32 : vector<1x16x16x32xbf16> to vector<256x32xbf16>
    %c5 = arith.constant 5 : index
    %c0_19 = arith.constant 0 : index
    %c0_20 = arith.constant 0 : index
    %34 = vector.load %arg2[%c5, %c0_19, %c0_20] : memref<9x32x128xbf16, #tpu.memory_space<vmem>>, vector<1x32x128xbf16>
    %35 = vector.shape_cast %34 : vector<1x32x128xbf16> to vector<32x128xbf16>
    %cst_21 = arith.constant dense<0.000000e+00> : vector<256x128xf32>
    %36 = tpu.matmul %33, %35, %cst_21 {dimension_numbers = #tpu.dot_dimension_numbers<[1], [0], [0], [1], [0, 0, 1, 1], [], []>} : vector<256x32xbf16>, vector<32x128xbf16>, vector<256x128xf32> -> vector<256x128xf32>
    %37 = arith.addf %31, %36 : vector<256x128xf32>
    %38 = vector.extract_strided_slice %0 {offsets = [0, 2, 0, 0], sizes = [1, 16, 16, 32], strides = [1, 1, 1, 1]} : vector<1x18x18x32xbf16> to vector<1x16x16x32xbf16>
    %39 = vector.shape_cast %38 : vector<1x16x16x32xbf16> to vector<256x32xbf16>
    %c6 = arith.constant 6 : index
    %c0_22 = arith.constant 0 : index
    %c0_23 = arith.constant 0 : index
    %40 = vector.load %arg2[%c6, %c0_22, %c0_23] : memref<9x32x128xbf16, #tpu.memory_space<vmem>>, vector<1x32x128xbf16>
    %41 = vector.shape_cast %40 : vector<1x32x128xbf16> to vector<32x128xbf16>
    %cst_24 = arith.constant dense<0.000000e+00> : vector<256x128xf32>
    %42 = tpu.matmul %39, %41, %cst_24 {dimension_numbers = #tpu.dot_dimension_numbers<[1], [0], [0], [1], [0, 0, 1, 1], [], []>} : vector<256x32xbf16>, vector<32x128xbf16>, vector<256x128xf32> -> vector<256x128xf32>
    %43 = arith.addf %37, %42 : vector<256x128xf32>
    %44 = vector.extract_strided_slice %0 {offsets = [0, 2, 1, 0], sizes = [1, 16, 16, 32], strides = [1, 1, 1, 1]} : vector<1x18x18x32xbf16> to vector<1x16x16x32xbf16>
    %45 = vector.shape_cast %44 : vector<1x16x16x32xbf16> to vector<256x32xbf16>
    %c7 = arith.constant 7 : index
    %c0_25 = arith.constant 0 : index
    %c0_26 = arith.constant 0 : index
    %46 = vector.load %arg2[%c7, %c0_25, %c0_26] : memref<9x32x128xbf16, #tpu.memory_space<vmem>>, vector<1x32x128xbf16>
    %47 = vector.shape_cast %46 : vector<1x32x128xbf16> to vector<32x128xbf16>
    %cst_27 = arith.constant dense<0.000000e+00> : vector<256x128xf32>
    %48 = tpu.matmul %45, %47, %cst_27 {dimension_numbers = #tpu.dot_dimension_numbers<[1], [0], [0], [1], [0, 0, 1, 1], [], []>} : vector<256x32xbf16>, vector<32x128xbf16>, vector<256x128xf32> -> vector<256x128xf32>
    %49 = arith.addf %43, %48 : vector<256x128xf32>
    %50 = vector.extract_strided_slice %0 {offsets = [0, 2, 2, 0], sizes = [1, 16, 16, 32], strides = [1, 1, 1, 1]} : vector<1x18x18x32xbf16> to vector<1x16x16x32xbf16>
    %51 = vector.shape_cast %50 : vector<1x16x16x32xbf16> to vector<256x32xbf16>
    %c8 = arith.constant 8 : index
    %c0_28 = arith.constant 0 : index
    %c0_29 = arith.constant 0 : index
    %52 = vector.load %arg2[%c8, %c0_28, %c0_29] : memref<9x32x128xbf16, #tpu.memory_space<vmem>>, vector<1x32x128xbf16>
    %53 = vector.shape_cast %52 : vector<1x32x128xbf16> to vector<32x128xbf16>
    %cst_30 = arith.constant dense<0.000000e+00> : vector<256x128xf32>
    %54 = tpu.matmul %51, %53, %cst_30 {dimension_numbers = #tpu.dot_dimension_numbers<[1], [0], [0], [1], [0, 0, 1, 1], [], []>} : vector<256x32xbf16>, vector<32x128xbf16>, vector<256x128xf32> -> vector<256x128xf32>
    %55 = arith.addf %49, %54 : vector<256x128xf32>
    %c0_31 = arith.constant 0 : index
    %c0_32 = arith.constant 0 : index
    %56 = vector.load %arg3[%c0_31, %c0_32] : memref<1x128xf32, #tpu.memory_space<vmem>>, vector<1x128xf32>
    %57 = vector.broadcast %56 : vector<1x128xf32> to vector<256x128xf32>
    %58 = arith.addf %55, %57 : vector<256x128xf32>
    %cst_33 = arith.constant 0.000000e+00 : f32
    %59 = vector.broadcast %cst_33 : f32 to vector<256x128xf32>
    %60 = arith.maximumf %58, %59 : vector<256x128xf32>
    %61 = vector.extract_strided_slice %60 {offsets = [0, 0], sizes = [256, 32], strides = [1, 1]} : vector<256x128xf32> to vector<256x32xf32>
    %62 = vector.extract_strided_slice %60 {offsets = [0, 32], sizes = [256, 32], strides = [1, 1]} : vector<256x128xf32> to vector<256x32xf32>
    %63 = arith.maximumf %61, %62 : vector<256x32xf32>
    %64 = vector.extract_strided_slice %60 {offsets = [0, 64], sizes = [256, 32], strides = [1, 1]} : vector<256x128xf32> to vector<256x32xf32>
    %65 = vector.extract_strided_slice %60 {offsets = [0, 96], sizes = [256, 32], strides = [1, 1]} : vector<256x128xf32> to vector<256x32xf32>
    %66 = arith.maximumf %64, %65 : vector<256x32xf32>
    %67 = arith.maximumf %63, %66 : vector<256x32xf32>
    %68 = vector.shape_cast %67 : vector<256x32xf32> to vector<1x16x16x32xf32>
    %69 = arith.truncf %68 : vector<1x16x16x32xf32> to vector<1x16x16x32xbf16>
    %c0_34 = arith.constant 0 : index
    %c0_35 = arith.constant 0 : index
    %c0_36 = arith.constant 0 : index
    %c0_37 = arith.constant 0 : index
    %70 = vector.load %arg4[%c0_34, %c0_35, %c0_36, %c0_37] : memref<1x16x16x32xbf16, #tpu.memory_space<vmem>>, vector<1x16x16x32xbf16>
    tpu.vector_store %arg4[%c0_34, %c0_35, %c0_36, %c0_37], %69 {strides = array<i32>} : memref<1x16x16x32xbf16, #tpu.memory_space<vmem>>, vector<1x16x16x32xbf16>,
    return
  }
  func.func @transform_0(%arg0: i32) -> (i32, i32, i32, i32) {
    %c0_i32 = arith.constant 0 : i32
    %c0_i32_0 = arith.constant 0 : i32
    %c0_i32_1 = arith.constant 0 : i32
    %c0_i32_2 = arith.constant 0 : i32
    return %arg0, %c0_i32, %c0_i32_0, %c0_i32_1 : i32, i32, i32, i32
  }
  func.func @transform_1(%arg0: i32) -> (i32, i32, i32) {
    %c0_i32 = arith.constant 0 : i32
    %c0_i32_0 = arith.constant 0 : i32
    %c0_i32_1 = arith.constant 0 : i32
    %c0_i32_2 = arith.constant 0 : i32
    return %c0_i32, %c0_i32_0, %c0_i32_1 : i32, i32, i32
  }
  func.func @transform_2(%arg0: i32) -> (i32, i32) {
    %c0_i32 = arith.constant 0 : i32
    %c0_i32_0 = arith.constant 0 : i32
    %c0_i32_1 = arith.constant 0 : i32
    return %c0_i32, %c0_i32_0 : i32, i32
  }
  func.func @transform_3(%arg0: i32) -> (i32, i32, i32, i32) {
    %c0_i32 = arith.constant 0 : i32
    %c0_i32_0 = arith.constant 0 : i32
    %c0_i32_1 = arith.constant 0 : i32
    %c0_i32_2 = arith.constant 0 : i32
    return %arg0, %c0_i32, %c0_i32_0, %c0_i32_1 : i32, i32, i32, i32
  }
}

module attributes {stable_mosaic.version = 11 : i64} {
  func.func @_conv5x5_relu_pool2_kernel(%arg0: i32, %arg1: memref<1x10x10x128xbf16, #tpu.memory_space<vmem>>, %arg2: memref<9x128x128xbf16, #tpu.memory_space<vmem>>, %arg3: memref<1x128xf32, #tpu.memory_space<vmem>>, %arg4: memref<1x8x8x32xbf16, #tpu.memory_space<vmem>>) attributes {dimension_semantics = [#tpu.dimension_semantics<parallel>], iteration_bounds = array<i64: 2>, scalar_prefetch = 0 : i64, scratch_operands = 0 : i64, tpu.core_type = #tpu.core_type<tc>, window_params = [{transform_indices = @transform_0, window_bounds = array<i64: 1, 10, 10, 128>}, {pipeline_mode = #tpu.pipeline_mode<synchronous>, transform_indices = @transform_1, window_bounds = array<i64: 9, 128, 128>}, {pipeline_mode = #tpu.pipeline_mode<synchronous>, transform_indices = @transform_2, window_bounds = array<i64: 1, 128>}, {transform_indices = @transform_3, window_bounds = array<i64: 1, 8, 8, 32>}]} {
    %c0 = arith.constant 0 : index
    %c0_0 = arith.constant 0 : index
    %c0_1 = arith.constant 0 : index
    %c0_2 = arith.constant 0 : index
    %0 = vector.load %arg1[%c0, %c0_0, %c0_1, %c0_2] : memref<1x10x10x128xbf16, #tpu.memory_space<vmem>>, vector<1x10x10x128xbf16>
    %cst = arith.constant 0.000000e+00 : f32
    %1 = vector.broadcast %cst : f32 to vector<64x128xf32>
    %2 = vector.extract_strided_slice %0 {offsets = [0, 0, 0, 0], sizes = [1, 8, 8, 128], strides = [1, 1, 1, 1]} : vector<1x10x10x128xbf16> to vector<1x8x8x128xbf16>
    %3 = vector.shape_cast %2 : vector<1x8x8x128xbf16> to vector<64x128xbf16>
    %c0_3 = arith.constant 0 : index
    %c0_4 = arith.constant 0 : index
    %c0_5 = arith.constant 0 : index
    %4 = vector.load %arg2[%c0_3, %c0_4, %c0_5] : memref<9x128x128xbf16, #tpu.memory_space<vmem>>, vector<1x128x128xbf16>
    %5 = vector.shape_cast %4 : vector<1x128x128xbf16> to vector<128x128xbf16>
    %cst_6 = arith.constant dense<0.000000e+00> : vector<64x128xf32>
    %6 = tpu.matmul %3, %5, %cst_6 {dimension_numbers = #tpu.dot_dimension_numbers<[1], [0], [0], [1], [0, 0, 1, 1], [], []>} : vector<64x128xbf16>, vector<128x128xbf16>, vector<64x128xf32> -> vector<64x128xf32>
    %7 = arith.addf %1, %6 : vector<64x128xf32>
    %8 = vector.extract_strided_slice %0 {offsets = [0, 0, 1, 0], sizes = [1, 8, 8, 128], strides = [1, 1, 1, 1]} : vector<1x10x10x128xbf16> to vector<1x8x8x128xbf16>
    %9 = vector.shape_cast %8 : vector<1x8x8x128xbf16> to vector<64x128xbf16>
    %c1 = arith.constant 1 : index
    %c0_7 = arith.constant 0 : index
    %c0_8 = arith.constant 0 : index
    %10 = vector.load %arg2[%c1, %c0_7, %c0_8] : memref<9x128x128xbf16, #tpu.memory_space<vmem>>, vector<1x128x128xbf16>
    %11 = vector.shape_cast %10 : vector<1x128x128xbf16> to vector<128x128xbf16>
    %cst_9 = arith.constant dense<0.000000e+00> : vector<64x128xf32>
    %12 = tpu.matmul %9, %11, %cst_9 {dimension_numbers = #tpu.dot_dimension_numbers<[1], [0], [0], [1], [0, 0, 1, 1], [], []>} : vector<64x128xbf16>, vector<128x128xbf16>, vector<64x128xf32> -> vector<64x128xf32>
    %13 = arith.addf %7, %12 : vector<64x128xf32>
    %14 = vector.extract_strided_slice %0 {offsets = [0, 0, 2, 0], sizes = [1, 8, 8, 128], strides = [1, 1, 1, 1]} : vector<1x10x10x128xbf16> to vector<1x8x8x128xbf16>
    %15 = vector.shape_cast %14 : vector<1x8x8x128xbf16> to vector<64x128xbf16>
    %c2 = arith.constant 2 : index
    %c0_10 = arith.constant 0 : index
    %c0_11 = arith.constant 0 : index
    %16 = vector.load %arg2[%c2, %c0_10, %c0_11] : memref<9x128x128xbf16, #tpu.memory_space<vmem>>, vector<1x128x128xbf16>
    %17 = vector.shape_cast %16 : vector<1x128x128xbf16> to vector<128x128xbf16>
    %cst_12 = arith.constant dense<0.000000e+00> : vector<64x128xf32>
    %18 = tpu.matmul %15, %17, %cst_12 {dimension_numbers = #tpu.dot_dimension_numbers<[1], [0], [0], [1], [0, 0, 1, 1], [], []>} : vector<64x128xbf16>, vector<128x128xbf16>, vector<64x128xf32> -> vector<64x128xf32>
    %19 = arith.addf %13, %18 : vector<64x128xf32>
    %20 = vector.extract_strided_slice %0 {offsets = [0, 1, 0, 0], sizes = [1, 8, 8, 128], strides = [1, 1, 1, 1]} : vector<1x10x10x128xbf16> to vector<1x8x8x128xbf16>
    %21 = vector.shape_cast %20 : vector<1x8x8x128xbf16> to vector<64x128xbf16>
    %c3 = arith.constant 3 : index
    %c0_13 = arith.constant 0 : index
    %c0_14 = arith.constant 0 : index
    %22 = vector.load %arg2[%c3, %c0_13, %c0_14] : memref<9x128x128xbf16, #tpu.memory_space<vmem>>, vector<1x128x128xbf16>
    %23 = vector.shape_cast %22 : vector<1x128x128xbf16> to vector<128x128xbf16>
    %cst_15 = arith.constant dense<0.000000e+00> : vector<64x128xf32>
    %24 = tpu.matmul %21, %23, %cst_15 {dimension_numbers = #tpu.dot_dimension_numbers<[1], [0], [0], [1], [0, 0, 1, 1], [], []>} : vector<64x128xbf16>, vector<128x128xbf16>, vector<64x128xf32> -> vector<64x128xf32>
    %25 = arith.addf %19, %24 : vector<64x128xf32>
    %26 = vector.extract_strided_slice %0 {offsets = [0, 1, 1, 0], sizes = [1, 8, 8, 128], strides = [1, 1, 1, 1]} : vector<1x10x10x128xbf16> to vector<1x8x8x128xbf16>
    %27 = vector.shape_cast %26 : vector<1x8x8x128xbf16> to vector<64x128xbf16>
    %c4 = arith.constant 4 : index
    %c0_16 = arith.constant 0 : index
    %c0_17 = arith.constant 0 : index
    %28 = vector.load %arg2[%c4, %c0_16, %c0_17] : memref<9x128x128xbf16, #tpu.memory_space<vmem>>, vector<1x128x128xbf16>
    %29 = vector.shape_cast %28 : vector<1x128x128xbf16> to vector<128x128xbf16>
    %cst_18 = arith.constant dense<0.000000e+00> : vector<64x128xf32>
    %30 = tpu.matmul %27, %29, %cst_18 {dimension_numbers = #tpu.dot_dimension_numbers<[1], [0], [0], [1], [0, 0, 1, 1], [], []>} : vector<64x128xbf16>, vector<128x128xbf16>, vector<64x128xf32> -> vector<64x128xf32>
    %31 = arith.addf %25, %30 : vector<64x128xf32>
    %32 = vector.extract_strided_slice %0 {offsets = [0, 1, 2, 0], sizes = [1, 8, 8, 128], strides = [1, 1, 1, 1]} : vector<1x10x10x128xbf16> to vector<1x8x8x128xbf16>
    %33 = vector.shape_cast %32 : vector<1x8x8x128xbf16> to vector<64x128xbf16>
    %c5 = arith.constant 5 : index
    %c0_19 = arith.constant 0 : index
    %c0_20 = arith.constant 0 : index
    %34 = vector.load %arg2[%c5, %c0_19, %c0_20] : memref<9x128x128xbf16, #tpu.memory_space<vmem>>, vector<1x128x128xbf16>
    %35 = vector.shape_cast %34 : vector<1x128x128xbf16> to vector<128x128xbf16>
    %cst_21 = arith.constant dense<0.000000e+00> : vector<64x128xf32>
    %36 = tpu.matmul %33, %35, %cst_21 {dimension_numbers = #tpu.dot_dimension_numbers<[1], [0], [0], [1], [0, 0, 1, 1], [], []>} : vector<64x128xbf16>, vector<128x128xbf16>, vector<64x128xf32> -> vector<64x128xf32>
    %37 = arith.addf %31, %36 : vector<64x128xf32>
    %38 = vector.extract_strided_slice %0 {offsets = [0, 2, 0, 0], sizes = [1, 8, 8, 128], strides = [1, 1, 1, 1]} : vector<1x10x10x128xbf16> to vector<1x8x8x128xbf16>
    %39 = vector.shape_cast %38 : vector<1x8x8x128xbf16> to vector<64x128xbf16>
    %c6 = arith.constant 6 : index
    %c0_22 = arith.constant 0 : index
    %c0_23 = arith.constant 0 : index
    %40 = vector.load %arg2[%c6, %c0_22, %c0_23] : memref<9x128x128xbf16, #tpu.memory_space<vmem>>, vector<1x128x128xbf16>
    %41 = vector.shape_cast %40 : vector<1x128x128xbf16> to vector<128x128xbf16>
    %cst_24 = arith.constant dense<0.000000e+00> : vector<64x128xf32>
    %42 = tpu.matmul %39, %41, %cst_24 {dimension_numbers = #tpu.dot_dimension_numbers<[1], [0], [0], [1], [0, 0, 1, 1], [], []>} : vector<64x128xbf16>, vector<128x128xbf16>, vector<64x128xf32> -> vector<64x128xf32>
    %43 = arith.addf %37, %42 : vector<64x128xf32>
    %44 = vector.extract_strided_slice %0 {offsets = [0, 2, 1, 0], sizes = [1, 8, 8, 128], strides = [1, 1, 1, 1]} : vector<1x10x10x128xbf16> to vector<1x8x8x128xbf16>
    %45 = vector.shape_cast %44 : vector<1x8x8x128xbf16> to vector<64x128xbf16>
    %c7 = arith.constant 7 : index
    %c0_25 = arith.constant 0 : index
    %c0_26 = arith.constant 0 : index
    %46 = vector.load %arg2[%c7, %c0_25, %c0_26] : memref<9x128x128xbf16, #tpu.memory_space<vmem>>, vector<1x128x128xbf16>
    %47 = vector.shape_cast %46 : vector<1x128x128xbf16> to vector<128x128xbf16>
    %cst_27 = arith.constant dense<0.000000e+00> : vector<64x128xf32>
    %48 = tpu.matmul %45, %47, %cst_27 {dimension_numbers = #tpu.dot_dimension_numbers<[1], [0], [0], [1], [0, 0, 1, 1], [], []>} : vector<64x128xbf16>, vector<128x128xbf16>, vector<64x128xf32> -> vector<64x128xf32>
    %49 = arith.addf %43, %48 : vector<64x128xf32>
    %50 = vector.extract_strided_slice %0 {offsets = [0, 2, 2, 0], sizes = [1, 8, 8, 128], strides = [1, 1, 1, 1]} : vector<1x10x10x128xbf16> to vector<1x8x8x128xbf16>
    %51 = vector.shape_cast %50 : vector<1x8x8x128xbf16> to vector<64x128xbf16>
    %c8 = arith.constant 8 : index
    %c0_28 = arith.constant 0 : index
    %c0_29 = arith.constant 0 : index
    %52 = vector.load %arg2[%c8, %c0_28, %c0_29] : memref<9x128x128xbf16, #tpu.memory_space<vmem>>, vector<1x128x128xbf16>
    %53 = vector.shape_cast %52 : vector<1x128x128xbf16> to vector<128x128xbf16>
    %cst_30 = arith.constant dense<0.000000e+00> : vector<64x128xf32>
    %54 = tpu.matmul %51, %53, %cst_30 {dimension_numbers = #tpu.dot_dimension_numbers<[1], [0], [0], [1], [0, 0, 1, 1], [], []>} : vector<64x128xbf16>, vector<128x128xbf16>, vector<64x128xf32> -> vector<64x128xf32>
    %55 = arith.addf %49, %54 : vector<64x128xf32>
    %c0_31 = arith.constant 0 : index
    %c0_32 = arith.constant 0 : index
    %56 = vector.load %arg3[%c0_31, %c0_32] : memref<1x128xf32, #tpu.memory_space<vmem>>, vector<1x128xf32>
    %57 = vector.broadcast %56 : vector<1x128xf32> to vector<64x128xf32>
    %58 = arith.addf %55, %57 : vector<64x128xf32>
    %cst_33 = arith.constant 0.000000e+00 : f32
    %59 = vector.broadcast %cst_33 : f32 to vector<64x128xf32>
    %60 = arith.maximumf %58, %59 : vector<64x128xf32>
    %61 = vector.extract_strided_slice %60 {offsets = [0, 0], sizes = [64, 32], strides = [1, 1]} : vector<64x128xf32> to vector<64x32xf32>
    %62 = vector.extract_strided_slice %60 {offsets = [0, 32], sizes = [64, 32], strides = [1, 1]} : vector<64x128xf32> to vector<64x32xf32>
    %63 = arith.maximumf %61, %62 : vector<64x32xf32>
    %64 = vector.extract_strided_slice %60 {offsets = [0, 64], sizes = [64, 32], strides = [1, 1]} : vector<64x128xf32> to vector<64x32xf32>
    %65 = vector.extract_strided_slice %60 {offsets = [0, 96], sizes = [64, 32], strides = [1, 1]} : vector<64x128xf32> to vector<64x32xf32>
    %66 = arith.maximumf %64, %65 : vector<64x32xf32>
    %67 = arith.maximumf %63, %66 : vector<64x32xf32>
    %68 = vector.shape_cast %67 : vector<64x32xf32> to vector<1x8x8x32xf32>
    %69 = arith.truncf %68 : vector<1x8x8x32xf32> to vector<1x8x8x32xbf16>
    %c0_34 = arith.constant 0 : index
    %c0_35 = arith.constant 0 : index
    %c0_36 = arith.constant 0 : index
    %c0_37 = arith.constant 0 : index
    %70 = vector.load %arg4[%c0_34, %c0_35, %c0_36, %c0_37] : memref<1x8x8x32xbf16, #tpu.memory_space<vmem>>, vector<1x8x8x32xbf16>
    tpu.vector_store %arg4[%c0_34, %c0_35, %c0_36, %c0_37], %69 {strides = array<i32>} : memref<1x8x8x32xbf16, #tpu.memory_space<vmem>>, vector<1x8x8x32xbf16>,
    return
  }
  func.func @transform_0(%arg0: i32) -> (i32, i32, i32, i32) {
    %c0_i32 = arith.constant 0 : i32
    %c0_i32_0 = arith.constant 0 : i32
    %c0_i32_1 = arith.constant 0 : i32
    %c0_i32_2 = arith.constant 0 : i32
    return %arg0, %c0_i32, %c0_i32_0, %c0_i32_1 : i32, i32, i32, i32
  }
  func.func @transform_1(%arg0: i32) -> (i32, i32, i32) {
    %c0_i32 = arith.constant 0 : i32
    %c0_i32_0 = arith.constant 0 : i32
    %c0_i32_1 = arith.constant 0 : i32
    %c0_i32_2 = arith.constant 0 : i32
    return %c0_i32, %c0_i32_0, %c0_i32_1 : i32, i32, i32
  }
  func.func @transform_2(%arg0: i32) -> (i32, i32) {
    %c0_i32 = arith.constant 0 : i32
    %c0_i32_0 = arith.constant 0 : i32
    %c0_i32_1 = arith.constant 0 : i32
    return %c0_i32, %c0_i32_0 : i32, i32
  }
  func.func @transform_3(%arg0: i32) -> (i32, i32, i32, i32) {
    %c0_i32 = arith.constant 0 : i32
    %c0_i32_0 = arith.constant 0 : i32
    %c0_i32_1 = arith.constant 0 : i32
    %c0_i32_2 = arith.constant 0 : i32
    return %arg0, %c0_i32, %c0_i32_0, %c0_i32_1 : i32, i32, i32, i32
  }
}

module attributes {stable_mosaic.version = 11 : i64} {
  func.func @_fc_head_kernel(%arg0: i32, %arg1: memref<2x1024xbf16, #tpu.memory_space<vmem>>, %arg2: memref<1024x64xbf16, #tpu.memory_space<vmem>>, %arg3: memref<1x64xf32, #tpu.memory_space<vmem>>, %arg4: memref<64x10xbf16, #tpu.memory_space<vmem>>, %arg5: memref<1x10xf32, #tpu.memory_space<vmem>>, %arg6: memref<2x10xf32, #tpu.memory_space<vmem>>) attributes {dimension_semantics = [#tpu.dimension_semantics<parallel>], iteration_bounds = array<i64: 1>, scalar_prefetch = 0 : i64, scratch_operands = 0 : i64, tpu.core_type = #tpu.core_type<tc>, window_params = [{transform_indices = @transform_0, window_bounds = array<i64: 2, 1024>}, {pipeline_mode = #tpu.pipeline_mode<synchronous>, transform_indices = @transform_1, window_bounds = array<i64: 1024, 64>}, {pipeline_mode = #tpu.pipeline_mode<synchronous>, transform_indices = @transform_2, window_bounds = array<i64: 1, 64>}, {pipeline_mode = #tpu.pipeline_mode<synchronous>, transform_indices = @transform_3, window_bounds = array<i64: 64, 10>}, {pipeline_mode = #tpu.pipeline_mode<synchronous>, transform_indices = @transform_4, window_bounds = array<i64: 1, 10>}, {transform_indices = @transform_5, window_bounds = array<i64: 2, 10>}]} {
    %c0 = arith.constant 0 : index
    %c0_0 = arith.constant 0 : index
    %0 = vector.load %arg1[%c0, %c0_0] : memref<2x1024xbf16, #tpu.memory_space<vmem>>, vector<2x1024xbf16>
    %c0_1 = arith.constant 0 : index
    %c0_2 = arith.constant 0 : index
    %1 = vector.load %arg2[%c0_1, %c0_2] : memref<1024x64xbf16, #tpu.memory_space<vmem>>, vector<1024x64xbf16>
    %cst = arith.constant dense<0.000000e+00> : vector<2x64xf32>
    %2 = tpu.matmul %0, %1, %cst {dimension_numbers = #tpu.dot_dimension_numbers<[1], [0], [0], [1], [0, 0, 1, 1], [], []>} : vector<2x1024xbf16>, vector<1024x64xbf16>, vector<2x64xf32> -> vector<2x64xf32>
    %c0_3 = arith.constant 0 : index
    %c0_4 = arith.constant 0 : index
    %3 = vector.load %arg3[%c0_3, %c0_4] : memref<1x64xf32, #tpu.memory_space<vmem>>, vector<1x64xf32>
    %4 = vector.broadcast %3 : vector<1x64xf32> to vector<2x64xf32>
    %5 = arith.addf %2, %4 : vector<2x64xf32>
    %cst_5 = arith.constant 0.000000e+00 : f32
    %6 = vector.broadcast %cst_5 : f32 to vector<2x64xf32>
    %7 = arith.maximumf %5, %6 : vector<2x64xf32>
    %8 = arith.truncf %7 : vector<2x64xf32> to vector<2x64xbf16>
    %c0_6 = arith.constant 0 : index
    %c0_7 = arith.constant 0 : index
    %9 = vector.load %arg4[%c0_6, %c0_7] : memref<64x10xbf16, #tpu.memory_space<vmem>>, vector<64x10xbf16>
    %cst_8 = arith.constant dense<0.000000e+00> : vector<2x10xf32>
    %10 = tpu.matmul %8, %9, %cst_8 {dimension_numbers = #tpu.dot_dimension_numbers<[1], [0], [0], [1], [0, 0, 1, 1], [], []>} : vector<2x64xbf16>, vector<64x10xbf16>, vector<2x10xf32> -> vector<2x10xf32>
    %c0_9 = arith.constant 0 : index
    %c0_10 = arith.constant 0 : index
    %11 = vector.load %arg5[%c0_9, %c0_10] : memref<1x10xf32, #tpu.memory_space<vmem>>, vector<1x10xf32>
    %12 = vector.broadcast %11 : vector<1x10xf32> to vector<2x10xf32>
    %13 = arith.addf %10, %12 : vector<2x10xf32>
    %c0_11 = arith.constant 0 : index
    %c0_12 = arith.constant 0 : index
    %14 = vector.load %arg6[%c0_11, %c0_12] : memref<2x10xf32, #tpu.memory_space<vmem>>, vector<2x10xf32>
    tpu.vector_store %arg6[%c0_11, %c0_12], %13 {strides = array<i32>} : memref<2x10xf32, #tpu.memory_space<vmem>>, vector<2x10xf32>,
    return
  }
  func.func @transform_0(%arg0: i32) -> (i32, i32) {
    %c0_i32 = arith.constant 0 : i32
    %c0_i32_0 = arith.constant 0 : i32
    return %arg0, %c0_i32 : i32, i32
  }
  func.func @transform_1(%arg0: i32) -> (i32, i32) {
    %c0_i32 = arith.constant 0 : i32
    %c0_i32_0 = arith.constant 0 : i32
    %c0_i32_1 = arith.constant 0 : i32
    return %c0_i32, %c0_i32_0 : i32, i32
  }
  func.func @transform_2(%arg0: i32) -> (i32, i32) {
    %c0_i32 = arith.constant 0 : i32
    %c0_i32_0 = arith.constant 0 : i32
    %c0_i32_1 = arith.constant 0 : i32
    return %c0_i32, %c0_i32_0 : i32, i32
  }
  func.func @transform_3(%arg0: i32) -> (i32, i32) {
    %c0_i32 = arith.constant 0 : i32
    %c0_i32_0 = arith.constant 0 : i32
    %c0_i32_1 = arith.constant 0 : i32
    return %c0_i32, %c0_i32_0 : i32, i32
  }
  func.func @transform_4(%arg0: i32) -> (i32, i32) {
    %c0_i32 = arith.constant 0 : i32
    %c0_i32_0 = arith.constant 0 : i32
    %c0_i32_1 = arith.constant 0 : i32
    return %c0_i32, %c0_i32_0 : i32, i32
  }
  func.func @transform_5(%arg0: i32) -> (i32, i32) {
    %c0_i32 = arith.constant 0 : i32
    %c0_i32_0 = arith.constant 0 : i32
    return %arg0, %c0_i32 : i32, i32
  }
}

module attributes {stable_mosaic.version = 11 : i64} {
  func.func @_conv5x5_relu_pool2_kernel(%arg0: i32, %arg1: memref<1x6x6x128xbf16, #tpu.memory_space<vmem>>, %arg2: memref<9x128x256xbf16, #tpu.memory_space<vmem>>, %arg3: memref<1x256xf32, #tpu.memory_space<vmem>>, %arg4: memref<1x4x4x64xbf16, #tpu.memory_space<vmem>>) attributes {dimension_semantics = [#tpu.dimension_semantics<parallel>], iteration_bounds = array<i64: 2>, scalar_prefetch = 0 : i64, scratch_operands = 0 : i64, tpu.core_type = #tpu.core_type<tc>, window_params = [{transform_indices = @transform_0, window_bounds = array<i64: 1, 6, 6, 128>}, {pipeline_mode = #tpu.pipeline_mode<synchronous>, transform_indices = @transform_1, window_bounds = array<i64: 9, 128, 256>}, {pipeline_mode = #tpu.pipeline_mode<synchronous>, transform_indices = @transform_2, window_bounds = array<i64: 1, 256>}, {transform_indices = @transform_3, window_bounds = array<i64: 1, 4, 4, 64>}]} {
    %c0 = arith.constant 0 : index
    %c0_0 = arith.constant 0 : index
    %c0_1 = arith.constant 0 : index
    %c0_2 = arith.constant 0 : index
    %0 = vector.load %arg1[%c0, %c0_0, %c0_1, %c0_2] : memref<1x6x6x128xbf16, #tpu.memory_space<vmem>>, vector<1x6x6x128xbf16>
    %cst = arith.constant 0.000000e+00 : f32
    %1 = vector.broadcast %cst : f32 to vector<16x256xf32>
    %2 = vector.extract_strided_slice %0 {offsets = [0, 0, 0, 0], sizes = [1, 4, 4, 128], strides = [1, 1, 1, 1]} : vector<1x6x6x128xbf16> to vector<1x4x4x128xbf16>
    %3 = vector.shape_cast %2 : vector<1x4x4x128xbf16> to vector<16x128xbf16>
    %c0_3 = arith.constant 0 : index
    %c0_4 = arith.constant 0 : index
    %c0_5 = arith.constant 0 : index
    %4 = vector.load %arg2[%c0_3, %c0_4, %c0_5] : memref<9x128x256xbf16, #tpu.memory_space<vmem>>, vector<1x128x256xbf16>
    %5 = vector.shape_cast %4 : vector<1x128x256xbf16> to vector<128x256xbf16>
    %cst_6 = arith.constant dense<0.000000e+00> : vector<16x256xf32>
    %6 = tpu.matmul %3, %5, %cst_6 {dimension_numbers = #tpu.dot_dimension_numbers<[1], [0], [0], [1], [0, 0, 1, 1], [], []>} : vector<16x128xbf16>, vector<128x256xbf16>, vector<16x256xf32> -> vector<16x256xf32>
    %7 = arith.addf %1, %6 : vector<16x256xf32>
    %8 = vector.extract_strided_slice %0 {offsets = [0, 0, 1, 0], sizes = [1, 4, 4, 128], strides = [1, 1, 1, 1]} : vector<1x6x6x128xbf16> to vector<1x4x4x128xbf16>
    %9 = vector.shape_cast %8 : vector<1x4x4x128xbf16> to vector<16x128xbf16>
    %c1 = arith.constant 1 : index
    %c0_7 = arith.constant 0 : index
    %c0_8 = arith.constant 0 : index
    %10 = vector.load %arg2[%c1, %c0_7, %c0_8] : memref<9x128x256xbf16, #tpu.memory_space<vmem>>, vector<1x128x256xbf16>
    %11 = vector.shape_cast %10 : vector<1x128x256xbf16> to vector<128x256xbf16>
    %cst_9 = arith.constant dense<0.000000e+00> : vector<16x256xf32>
    %12 = tpu.matmul %9, %11, %cst_9 {dimension_numbers = #tpu.dot_dimension_numbers<[1], [0], [0], [1], [0, 0, 1, 1], [], []>} : vector<16x128xbf16>, vector<128x256xbf16>, vector<16x256xf32> -> vector<16x256xf32>
    %13 = arith.addf %7, %12 : vector<16x256xf32>
    %14 = vector.extract_strided_slice %0 {offsets = [0, 0, 2, 0], sizes = [1, 4, 4, 128], strides = [1, 1, 1, 1]} : vector<1x6x6x128xbf16> to vector<1x4x4x128xbf16>
    %15 = vector.shape_cast %14 : vector<1x4x4x128xbf16> to vector<16x128xbf16>
    %c2 = arith.constant 2 : index
    %c0_10 = arith.constant 0 : index
    %c0_11 = arith.constant 0 : index
    %16 = vector.load %arg2[%c2, %c0_10, %c0_11] : memref<9x128x256xbf16, #tpu.memory_space<vmem>>, vector<1x128x256xbf16>
    %17 = vector.shape_cast %16 : vector<1x128x256xbf16> to vector<128x256xbf16>
    %cst_12 = arith.constant dense<0.000000e+00> : vector<16x256xf32>
    %18 = tpu.matmul %15, %17, %cst_12 {dimension_numbers = #tpu.dot_dimension_numbers<[1], [0], [0], [1], [0, 0, 1, 1], [], []>} : vector<16x128xbf16>, vector<128x256xbf16>, vector<16x256xf32> -> vector<16x256xf32>
    %19 = arith.addf %13, %18 : vector<16x256xf32>
    %20 = vector.extract_strided_slice %0 {offsets = [0, 1, 0, 0], sizes = [1, 4, 4, 128], strides = [1, 1, 1, 1]} : vector<1x6x6x128xbf16> to vector<1x4x4x128xbf16>
    %21 = vector.shape_cast %20 : vector<1x4x4x128xbf16> to vector<16x128xbf16>
    %c3 = arith.constant 3 : index
    %c0_13 = arith.constant 0 : index
    %c0_14 = arith.constant 0 : index
    %22 = vector.load %arg2[%c3, %c0_13, %c0_14] : memref<9x128x256xbf16, #tpu.memory_space<vmem>>, vector<1x128x256xbf16>
    %23 = vector.shape_cast %22 : vector<1x128x256xbf16> to vector<128x256xbf16>
    %cst_15 = arith.constant dense<0.000000e+00> : vector<16x256xf32>
    %24 = tpu.matmul %21, %23, %cst_15 {dimension_numbers = #tpu.dot_dimension_numbers<[1], [0], [0], [1], [0, 0, 1, 1], [], []>} : vector<16x128xbf16>, vector<128x256xbf16>, vector<16x256xf32> -> vector<16x256xf32>
    %25 = arith.addf %19, %24 : vector<16x256xf32>
    %26 = vector.extract_strided_slice %0 {offsets = [0, 1, 1, 0], sizes = [1, 4, 4, 128], strides = [1, 1, 1, 1]} : vector<1x6x6x128xbf16> to vector<1x4x4x128xbf16>
    %27 = vector.shape_cast %26 : vector<1x4x4x128xbf16> to vector<16x128xbf16>
    %c4 = arith.constant 4 : index
    %c0_16 = arith.constant 0 : index
    %c0_17 = arith.constant 0 : index
    %28 = vector.load %arg2[%c4, %c0_16, %c0_17] : memref<9x128x256xbf16, #tpu.memory_space<vmem>>, vector<1x128x256xbf16>
    %29 = vector.shape_cast %28 : vector<1x128x256xbf16> to vector<128x256xbf16>
    %cst_18 = arith.constant dense<0.000000e+00> : vector<16x256xf32>
    %30 = tpu.matmul %27, %29, %cst_18 {dimension_numbers = #tpu.dot_dimension_numbers<[1], [0], [0], [1], [0, 0, 1, 1], [], []>} : vector<16x128xbf16>, vector<128x256xbf16>, vector<16x256xf32> -> vector<16x256xf32>
    %31 = arith.addf %25, %30 : vector<16x256xf32>
    %32 = vector.extract_strided_slice %0 {offsets = [0, 1, 2, 0], sizes = [1, 4, 4, 128], strides = [1, 1, 1, 1]} : vector<1x6x6x128xbf16> to vector<1x4x4x128xbf16>
    %33 = vector.shape_cast %32 : vector<1x4x4x128xbf16> to vector<16x128xbf16>
    %c5 = arith.constant 5 : index
    %c0_19 = arith.constant 0 : index
    %c0_20 = arith.constant 0 : index
    %34 = vector.load %arg2[%c5, %c0_19, %c0_20] : memref<9x128x256xbf16, #tpu.memory_space<vmem>>, vector<1x128x256xbf16>
    %35 = vector.shape_cast %34 : vector<1x128x256xbf16> to vector<128x256xbf16>
    %cst_21 = arith.constant dense<0.000000e+00> : vector<16x256xf32>
    %36 = tpu.matmul %33, %35, %cst_21 {dimension_numbers = #tpu.dot_dimension_numbers<[1], [0], [0], [1], [0, 0, 1, 1], [], []>} : vector<16x128xbf16>, vector<128x256xbf16>, vector<16x256xf32> -> vector<16x256xf32>
    %37 = arith.addf %31, %36 : vector<16x256xf32>
    %38 = vector.extract_strided_slice %0 {offsets = [0, 2, 0, 0], sizes = [1, 4, 4, 128], strides = [1, 1, 1, 1]} : vector<1x6x6x128xbf16> to vector<1x4x4x128xbf16>
    %39 = vector.shape_cast %38 : vector<1x4x4x128xbf16> to vector<16x128xbf16>
    %c6 = arith.constant 6 : index
    %c0_22 = arith.constant 0 : index
    %c0_23 = arith.constant 0 : index
    %40 = vector.load %arg2[%c6, %c0_22, %c0_23] : memref<9x128x256xbf16, #tpu.memory_space<vmem>>, vector<1x128x256xbf16>
    %41 = vector.shape_cast %40 : vector<1x128x256xbf16> to vector<128x256xbf16>
    %cst_24 = arith.constant dense<0.000000e+00> : vector<16x256xf32>
    %42 = tpu.matmul %39, %41, %cst_24 {dimension_numbers = #tpu.dot_dimension_numbers<[1], [0], [0], [1], [0, 0, 1, 1], [], []>} : vector<16x128xbf16>, vector<128x256xbf16>, vector<16x256xf32> -> vector<16x256xf32>
    %43 = arith.addf %37, %42 : vector<16x256xf32>
    %44 = vector.extract_strided_slice %0 {offsets = [0, 2, 1, 0], sizes = [1, 4, 4, 128], strides = [1, 1, 1, 1]} : vector<1x6x6x128xbf16> to vector<1x4x4x128xbf16>
    %45 = vector.shape_cast %44 : vector<1x4x4x128xbf16> to vector<16x128xbf16>
    %c7 = arith.constant 7 : index
    %c0_25 = arith.constant 0 : index
    %c0_26 = arith.constant 0 : index
    %46 = vector.load %arg2[%c7, %c0_25, %c0_26] : memref<9x128x256xbf16, #tpu.memory_space<vmem>>, vector<1x128x256xbf16>
    %47 = vector.shape_cast %46 : vector<1x128x256xbf16> to vector<128x256xbf16>
    %cst_27 = arith.constant dense<0.000000e+00> : vector<16x256xf32>
    %48 = tpu.matmul %45, %47, %cst_27 {dimension_numbers = #tpu.dot_dimension_numbers<[1], [0], [0], [1], [0, 0, 1, 1], [], []>} : vector<16x128xbf16>, vector<128x256xbf16>, vector<16x256xf32> -> vector<16x256xf32>
    %49 = arith.addf %43, %48 : vector<16x256xf32>
    %50 = vector.extract_strided_slice %0 {offsets = [0, 2, 2, 0], sizes = [1, 4, 4, 128], strides = [1, 1, 1, 1]} : vector<1x6x6x128xbf16> to vector<1x4x4x128xbf16>
    %51 = vector.shape_cast %50 : vector<1x4x4x128xbf16> to vector<16x128xbf16>
    %c8 = arith.constant 8 : index
    %c0_28 = arith.constant 0 : index
    %c0_29 = arith.constant 0 : index
    %52 = vector.load %arg2[%c8, %c0_28, %c0_29] : memref<9x128x256xbf16, #tpu.memory_space<vmem>>, vector<1x128x256xbf16>
    %53 = vector.shape_cast %52 : vector<1x128x256xbf16> to vector<128x256xbf16>
    %cst_30 = arith.constant dense<0.000000e+00> : vector<16x256xf32>
    %54 = tpu.matmul %51, %53, %cst_30 {dimension_numbers = #tpu.dot_dimension_numbers<[1], [0], [0], [1], [0, 0, 1, 1], [], []>} : vector<16x128xbf16>, vector<128x256xbf16>, vector<16x256xf32> -> vector<16x256xf32>
    %55 = arith.addf %49, %54 : vector<16x256xf32>
    %c0_31 = arith.constant 0 : index
    %c0_32 = arith.constant 0 : index
    %56 = vector.load %arg3[%c0_31, %c0_32] : memref<1x256xf32, #tpu.memory_space<vmem>>, vector<1x256xf32>
    %57 = vector.broadcast %56 : vector<1x256xf32> to vector<16x256xf32>
    %58 = arith.addf %55, %57 : vector<16x256xf32>
    %cst_33 = arith.constant 0.000000e+00 : f32
    %59 = vector.broadcast %cst_33 : f32 to vector<16x256xf32>
    %60 = arith.maximumf %58, %59 : vector<16x256xf32>
    %61 = vector.extract_strided_slice %60 {offsets = [0, 0], sizes = [16, 64], strides = [1, 1]} : vector<16x256xf32> to vector<16x64xf32>
    %62 = vector.extract_strided_slice %60 {offsets = [0, 64], sizes = [16, 64], strides = [1, 1]} : vector<16x256xf32> to vector<16x64xf32>
    %63 = arith.maximumf %61, %62 : vector<16x64xf32>
    %64 = vector.extract_strided_slice %60 {offsets = [0, 128], sizes = [16, 64], strides = [1, 1]} : vector<16x256xf32> to vector<16x64xf32>
    %65 = vector.extract_strided_slice %60 {offsets = [0, 192], sizes = [16, 64], strides = [1, 1]} : vector<16x256xf32> to vector<16x64xf32>
    %66 = arith.maximumf %64, %65 : vector<16x64xf32>
    %67 = arith.maximumf %63, %66 : vector<16x64xf32>
    %68 = vector.shape_cast %67 : vector<16x64xf32> to vector<1x4x4x64xf32>
    %69 = arith.truncf %68 : vector<1x4x4x64xf32> to vector<1x4x4x64xbf16>
    %c0_34 = arith.constant 0 : index
    %c0_35 = arith.constant 0 : index
    %c0_36 = arith.constant 0 : index
    %c0_37 = arith.constant 0 : index
    %70 = vector.load %arg4[%c0_34, %c0_35, %c0_36, %c0_37] : memref<1x4x4x64xbf16, #tpu.memory_space<vmem>>, vector<1x4x4x64xbf16>
    tpu.vector_store %arg4[%c0_34, %c0_35, %c0_36, %c0_37], %69 {strides = array<i32>} : memref<1x4x4x64xbf16, #tpu.memory_space<vmem>>, vector<1x4x4x64xbf16>,
    return
  }
  func.func @transform_0(%arg0: i32) -> (i32, i32, i32, i32) {
    %c0_i32 = arith.constant 0 : i32
    %c0_i32_0 = arith.constant 0 : i32
    %c0_i32_1 = arith.constant 0 : i32
    %c0_i32_2 = arith.constant 0 : i32
    return %arg0, %c0_i32, %c0_i32_0, %c0_i32_1 : i32, i32, i32, i32
  }
  func.func @transform_1(%arg0: i32) -> (i32, i32, i32) {
    %c0_i32 = arith.constant 0 : i32
    %c0_i32_0 = arith.constant 0 : i32
    %c0_i32_1 = arith.constant 0 : i32
    %c0_i32_2 = arith.constant 0 : i32
    return %c0_i32, %c0_i32_0, %c0_i32_1 : i32, i32, i32
  }
  func.func @transform_2(%arg0: i32) -> (i32, i32) {
    %c0_i32 = arith.constant 0 : i32
    %c0_i32_0 = arith.constant 0 : i32
    %c0_i32_1 = arith.constant 0 : i32
    return %c0_i32, %c0_i32_0 : i32, i32
  }
  func.func @transform_3(%arg0: i32) -> (i32, i32, i32, i32) {
    %c0_i32 = arith.constant 0 : i32
    %c0_i32_0 = arith.constant 0 : i32
    %c0_i32_1 = arith.constant 0 : i32
    %c0_i32_2 = arith.constant 0 : i32
    return %arg0, %c0_i32, %c0_i32_0, %c0_i32_1 : i32, i32, i32, i32
  }
}

</mosaic_0001>

<bundles_post_ra>
// kernel: net_forward.4
= control target key start
LH: loop header
LB: loop body
LE: loop exit
PB: predicated region body
PF: predicated region fallthrough
CT: control target
= control target key end

     0   :  { %s4931_s12 = smov 0   ;;  %s6406_s0 = inlined_call_operand.vmem [shape: bf16[2,18,18,32], index: 0, kind: input, shape index: {}]   ;;  %s6407_s1 = inlined_call_operand.vmem [shape: bf16[9,32,128], index: 1, kind: input, shape index: {}]   ;;  %s6408_s2 = inlined_call_operand.vmem [shape: f32[1,128], index: 2, kind: input, shape index: {}]   ;;  %s6409_s3 = inlined_call_operand.vmem [shape: bf16[2,16,16,32], index: 3, kind: output, shape index: {}]  }
   0x1 LB: > { %s3601_s13 = sadd.s32 4294967295, %s4907_s12   ;;  %p3605_p0 = scmp.ge.s32.totalorder %s4907_s12, 1  ;;  %s4907_s12 = sphi %s4931_s12, %s13_s12  }
   0x2   : > { %p137_p1 = scmp.lt.s32.totalorder %s4907_s12, 3 }
   0x4   : > { %p138_p2 = pnand %p3605_p0, %p137_p1 }
   0x6   : > { %141 = sbr.rel (%p138_p2) target bundleno = 797 (0x31d), region = 32 }
   0xd   : > { %v4860_v0 = vld [vmem:[%s6407_s1 + $0x10] sm:$0xff]   ;;  %p161_p3 = scmp.lt.s32.totalorder %s3601_s13, 1  ;;  %v4861_v1 = vld [vmem:[%s6407_s1 + $0x40] sm:$0xff]   ;;  %v4862_v2 = vld [vmem:[%s6407_s1 + $0x18] sm:$0xff]   ;;  %vm230_vm0 = vsmask.f32 3328 }
   0xe   : > { %4105 = vmatprep.subr.bf16.mxu1 %v4860_v0  ;;  %4249 = vmatprep.subr.bf16.mxu0 %v4861_v1  ;;  %v4863_v3 = vld [vmem:[%s6407_s1 + $0x48] sm:$0xff]   ;;  %v4957_v4 = vld [vmem:[%s6407_s1] sm:$0xff]   ;;  %vm231_vm1 = vsmask.f32 7440  ;;  %v4967_v5 = vld [vmem:[%s6407_s1 + $0x50] sm:$0xff]   ;;  %vm682_vm2 = vcmask 261120  }
   0xf   : > { %s6507_s13 = smov (!%p161_p3, %s3601_s13), 1  ;;  %4106 = vmatpush3.bf16.msra.mxu1 %v4860_v0  ;;  %4250 = vmatpush3.bf16.msra.mxu0 %v4861_v1  ;;  %vm5001_vm3 = vmor %vm230_vm0, %vm231_vm1  ;;  %vm1209_vm4 = vcmask 1042432   ;;  %vm1210_vm5 = vcmask 1046532   ;;  %s4909_s8 = smov 96   ;;  %vm3513_vm7 = vcmask 257024  }
  0x10   : > { %4107 = vmatprep.subr.bf16.mxu1 %v4862_v2  ;;  %s4689_s22 = smul.u32 216, %s6507_s13  ;;  %4251 = vmatprep.subr.bf16.mxu0 %v4863_v3  ;;  %vm5191_vm6 = vmor %vm1209_vm4, %vm1210_vm5  ;;  %s4910_s9 = smov 64  }
  0x11   : > { %s3910_s10 = sshll.u32 %s6507_s13, 7 }
  0x12   : > { %s4962_s27 = scalar_lea.vmem %s6406_s0, %s4689_s22  ;;  %s6307_s15 = scalar_lea.vmem %s6409_s3, %s3910_s10 }
  0x13   : > { %4108 = vmatpush3.bf16.msra.mxu1 %v4862_v2  ;;  %v4970_v6 = vld [vmem:[%s4962_s27] sm:$0xf]  ;;  %v4973_v7 = vld [vmem:[%s4962_s27 + $0x4] sm:$0xf]  ;;  %v174_v8 = vld [vmem:[%s4962_s27 + $0x8] sm:$0x1]  ;;  %4252 = vmatpush3.bf16.msra.mxu0 %v4863_v3 }
  0x14   : > { %v234_v9 = vshrl.u32 %v4970_v6, 16  ;;  %v237_v10 = vshll.u32 %v4970_v6, 16  ;;  %v243_v11 = vshll.u32 %v4973_v7, 16  ;;  %v247_v12 = vshrl.u32 %v4973_v7, 16  ;;  %4141 = vmatprep.subr.bf16.mxu1 %v4957_v4  ;;  %v4982_v13 = vld [vmem:[%s4962_s27 + $0xc] sm:$0xf]  ;;  %4285 = vmatprep.subr.bf16.mxu0 %v4967_v5 }
  0x15   : > { %v253_v14 = vshll.u32 %v174_v8, 16  ;;  %v4985_v15 = vld [vmem:[%s4962_s27 + $0x10] sm:$0xf]  ;;  %v4988_v16 = vld [vmem:[%s4962_s27 + $0x14] sm:$0x1]  ;;  %v258_v22 = vshrl.u32 %v4982_v13, 16 }
  0x16   : > { %v236_v17 = vrot.slane %v234_v9, 4  ;;  %v239_v18 = vrot.slane %v237_v10, 5  ;;  %v245_v19 = vrot.slane %v243_v11, 5  ;;  %v249_v20 = vrot.slane %v247_v12, 4  ;;  %v4997_v29 = vld [vmem:[%s4962_s27 + $0x18] sm:$0xf] }
  0x17   : > { %v255_v21 = vrot.slane %v253_v14, 5  ;;  %v261_v23 = vshll.u32 %v4982_v13, 16  ;;  %v267_v24 = vshll.u32 %v4985_v15, 16  ;;  %v271_v27 = vshrl.u32 %v4985_v15, 16  ;;  %v5010_v35 = vld [vmem:[%s4962_s27 + $0x1c] sm:$0xf] }
  0x18   : > { %v240_v25 = vor.u32 %v239_v18, %v236_v17  ;;  %v250_v26 = vor.u32 %v249_v20, %v245_v19  ;;  %v277_v28 = vshll.u32 %v4988_v16, 16  ;;  %v260_v31 = vrot.slane %v258_v22, 4  ;;  %v5014_v42 = vld [vmem:[%s4962_s27 + $0x20] sm:$0x1]  ;;  %v5024_v49 = vld [vmem:[%s4962_s27 + $0x24] sm:$0xf] }
  0x19   : > { %v263_v32 = vrot.slane %v261_v23, 5  ;;  %v269_v33 = vrot.slane %v267_v24, 5  ;;  %v5007_v34 = vcombine.low %v4982_v13, %v4985_v15  ;;  %v273_v38 = vrot.slane %v271_v27, 4  ;;  %v5027_v54 = vld [vmem:[%s4962_s27 + $0x28] sm:$0xf] }
  0x1a   : > { %v241_v36 = vrot.slane %v240_v25, 4  ;;  %v251_v37 = vrot.slane %v250_v26, 4  ;;  %v279_v39 = vrot.slane %v277_v28, 5  ;;  %v1224_v41 = vrot.slane %v4988_v16, 5  ;;  %v5032_v59 = vld [vmem:[%s4962_s27 + $0x2c] sm:$0x1] }
  0x1b   : > { %v264_v40 = vor.u32 %v263_v32, %v260_v31  ;;  %v282_v43 = vshrl.u32 %v4997_v29, 16  ;;  %v285_v44 = vshll.u32 %v4997_v29, 16  ;;  %v274_v47 = vor.u32 %v273_v38, %v269_v33  ;;  %v5040_v0 = vld [vmem:[%s4962_s27 + $0x30] sm:$0xf]  ;;  %v4868_v14 = vld [vmem:[%s6407_s1 + $0x8] sm:$0xff]  }
  0x1c   : > { %v246_v45 = vsel %vm5001_vm3, %v241_v36, %v245_v19  ;;  %v256_v46 = vsel %vm5001_vm3, %v251_v37, %v255_v21  ;;  %v291_v48 = vshll.u32 %v5010_v35, 16  ;;  %v295_v57 = vshrl.u32 %v5010_v35, 16  ;;  %v5053_v21 = vld [vmem:[%s4962_s27 + $0x34] sm:$0xf]  ;;  %v5060_v25 = vld [vmem:[%s4962_s27 + $0x38] sm:$0x1] }
  0x1d   : > { %v3613_v50 = vcombine.low %v246_v45, %v256_v46  ;;  %v265_v51 = vrot.slane %v264_v40, 4  ;;  %v284_v52 = vrot.slane %v282_v43, 4  ;;  %v287_v53 = vrot.slane %v285_v44, 5  ;;  %v5074_v45 = vld [vmem:[%s4962_s27 + $0x40] sm:$0xf] }
  0x1e   : > { %v275_v55 = vrot.slane %v274_v47, 4  ;;  %v293_v56 = vrot.slane %v291_v48, 5  ;;  %v301_v58 = vshll.u32 %v5014_v42, 16  ;;  %v1228_v62 = vrot.slane %v5010_v35, 5  ;;  %v5079_v46 = vld [vmem:[%s6407_s1 + $0x20] sm:$0xff]  }
  0x1f   : > { %4109 = vmatprep.mubr.msk.bf16.mxu1 %vm682_vm2, %v3613_v50  ;;  %v270_v60 = vsel %vm5001_vm3, %v265_v51, %v269_v33  ;;  %v288_v61 = vor.u32 %v287_v53, %v284_v52  ;;  %v1231_v63 = vrot.slane %v5014_v42, 5  ;;  %v297_v2 = vrot.slane %v295_v57, 4  ;;  %v5084_v52 = vld [vmem:[%s4962_s27 + $0x44] sm:$0x1]  ;;  %v4867_v53 = vld [vmem:[%s6407_s1 + $0x58] sm:$0xff]  }
  0x20   : > { %v280_v1 = vsel %vm5001_vm3, %v275_v55, %v279_v39  ;;  %v303_v3 = vrot.slane %v301_v58, 5  ;;  %v306_v8 = vshrl.u32 %v5024_v49, 16  ;;  %v309_v11 = vshll.u32 %v5024_v49, 16  ;;  %v5068_v39 = vld [vmem:[%s4962_s27 + $0x3c] sm:$0xf] }
  0x21   : > { %v3614_v9 = vcombine.low %v270_v60, %v280_v1  ;;  %v289_v10 = vrot.slane %v288_v61, 4  ;;  %v315_v12 = vshll.u32 %v5027_v54, 16  ;;  %v298_v17 = vor.u32 %v297_v2, %v293_v56  ;;  %v5090_v55 = vld [vmem:[%s4962_s27 + $0x48] sm:$0xf]  ;;  %v5094_v61 = vld [vmem:[%s4962_s27 + $0x4c] sm:$0xf] }
  0x22   : > { %v308_v18 = vrot.slane %v306_v8, 4  ;;  %v319_v19 = vshrl.u32 %v5027_v54, 16  ;;  %v325_v20 = vshll.u32 %v5032_v59, 16  ;;  %v311_v23 = vrot.slane %v309_v11, 5 }
  0x23   : > { %4253 = vmatprep.mubr.msk.bf16.mxu0 %vm682_vm2, %v3614_v9  ;;  %4110 = vmatmul.mubr.msk.bf16.vlgmr.msra.gmra.mrb[0].mxu1 %vm682_vm2, %v3614_v9  ;;  %v294_v22 = vsel %vm5001_vm3, %v289_v10, %v293_v56  ;;  %v317_v24 = vrot.slane %v315_v12, 5  ;;  %v330_v26 = vshrl.u32 %v5040_v0, 16  ;;  %v299_v27 = vrot.slane %v298_v17, 4 }
  0x24   : > { %4142 = vmatpush3.bf16.msra.mxu1 %v4957_v4  ;;  %v321_v28 = vrot.slane %v319_v19, 4  ;;  %v327_v31 = vrot.slane %v325_v20, 5  ;;  %v333_v32 = vshll.u32 %v5040_v0, 16  ;;  %v312_v33 = vor.u32 %v311_v23, %v308_v18 }
  0x25   : > { %v332_v36 = vrot.slane %v330_v26, 4  ;;  %v339_v37 = vshll.u32 %v5053_v21, 16  ;;  %v343_v38 = vshrl.u32 %v5053_v21, 16  ;;  %4143 = vmatprep.subr.bf16.mxu1 %v4868_v14  ;;  %v304_v40 = vsel %vm5001_vm3, %v299_v27, %v303_v3 }
  0x26   : > { %v322_v4 = vor.u32 %v321_v28, %v317_v24  ;;  %v335_v43 = vrot.slane %v333_v32, 5  ;;  %v349_v44 = vshll.u32 %v5060_v25, 16  ;;  %v5081_v47 = vcombine.low %v294_v22, %v304_v40  ;;  %v5127_v28 = vld [vmem:[%s4962_s27 + $0x50] sm:$0x1] }
  0x27   : > { %v313_v48 = vrot.slane %v312_v33, 4  ;;  %v341_v50 = vrot.slane %v339_v37, 5  ;;  %v345_v51 = vrot.slane %v343_v38, 4  ;;  %v354_v60 = vshrl.u32 %v5068_v39, 16  ;;  %v5132_v33 = vld [vmem:[%s4962_s27 + $0x54] sm:$0xf] }
  0x28   : > { %6453 = vst [vmem:[#allocation2_spill] sm:$0xff] %v5081_v47  ;;  %v323_v56 = vrot.slane %v322_v4, 4  ;;  %v336_v57 = vor.u32 %v335_v43, %v332_v36  ;;  %v351_v58 = vrot.slane %v349_v44, 5  ;;  %4144 = vmatpush3.bf16.msra.mxu1 %v4868_v14  ;;  %4254 = vmatmul.mubr.msk.bf16.vlgmr.msra.gmra.mrb[0].mxu0 %vm682_vm2, %v5081_v47  ;;  %v357_v3 = vshll.u32 %v5068_v39, 16  ;;  %6455 = vst [vmem:[#allocation4_spill] sm:$0xff] %v5132_v33 }
  0x29   : > { %4113 = vmatprep.mubr.msk.bf16.mxu1 %vm682_vm2, %v5081_v47  ;;  %v318_v1 = vsel %vm5001_vm3, %v313_v48, %v317_v24  ;;  %v346_v2 = vor.u32 %v345_v51, %v341_v50  ;;  %v363_v8 = vshll.u32 %v5074_v45, 16  ;;  %4286 = vmatpush3.bf16.msra.mxu0 %v4967_v5  ;;  %v356_v11 = vrot.slane %v354_v60, 4  ;;  %v5114_v5 = vld [vmem:[%s6407_s1 + $0x60] sm:$0xff]   ;;  %v5137_v4 = vld [vmem:[%s4962_s27 + $0x58] sm:$0xf] }
  0x2a   : > { %v328_v9 = vsel %vm5001_vm3, %v323_v56, %v327_v31  ;;  %v337_v10 = vrot.slane %v336_v57, 4  ;;  %v367_v12 = vshrl.u32 %v5074_v45, 16  ;;  %4177 = vmatprep.subr.bf16.mxu1 %v5079_v46  ;;  %v359_v18 = vrot.slane %v357_v3, 5  ;;  %4287 = vmatprep.subr.bf16.mxu0 %v4867_v53 }
  0x2b   : > { %v5109_v14 = vcombine.low %v318_v1, %v328_v9  ;;  %v347_v17 = vrot.slane %v346_v2, 4  ;;  %v365_v19 = vrot.slane %v363_v8, 5  ;;  %v373_v23 = vshll.u32 %v5084_v52, 16  ;;  %v5151_v2 = vld [vmem:[%s4962_s27 + $0x5c] sm:$0x1] }
  0x2c   : > { %v342_v20 = vsel %vm5001_vm3, %v337_v10, %v341_v50  ;;  %v369_v22 = vrot.slane %v367_v12, 4  ;;  %v378_v24 = vshrl.u32 %v5090_v55, 16  ;;  %v360_v27 = vor.u32 %v359_v18, %v356_v11  ;;  %v5155_v8 = vld [vmem:[%s4962_s27 + $0x60] sm:$0xf] }
  0x2d   : > { %6454 = vst [vmem:[#allocation3_spill] sm:$0xff] %v5109_v14  ;;  %4257 = vmatprep.mubr.msk.bf16.mxu0 %vm682_vm2, %v5109_v14  ;;  %4114 = vmatmul.mubr.msk.bf16.gmra.mrb[4].mxu1 %vm682_vm2, %v5109_v14  ;;  %v352_v26 = vsel %vm5001_vm3, %v347_v17, %v351_v58  ;;  %v381_v31 = vshll.u32 %v5090_v55, 16  ;;  %v387_v32 = vshll.u32 %v5094_v61, 16  ;;  %v375_v38 = vrot.slane %v373_v23, 5  ;;  %v5160_v17 = vld [vmem:[%s4962_s27 + $0x64] sm:$0xf] }
  0x2e   : > { %v5134_v36 = vcombine.low %v342_v20, %v352_v26  ;;  %v370_v37 = vor.u32 %v369_v22, %v365_v19  ;;  %v380_v40 = vrot.slane %v378_v24, 4  ;;  %4288 = vmatpush3.bf16.msra.mxu0 %v4867_v53  ;;  %v361_v43 = vrot.slane %v360_v27, 4  ;;  %v5374_v14 = vld [vmem:[%s4962_s27 + $0xa8] sm:$0xf] }
  0x2f   : > { %v383_v44 = vrot.slane %v381_v31, 5  ;;  %v389_v48 = vrot.slane %v387_v32, 5  ;;  %v391_v50 = vshrl.u32 %v5094_v61, 16  ;;  %4321 = vmatprep.subr.bf16.mxu0 %v5114_v5  ;;  %v397_v56 = vshll.u32 %v5127_v28, 16 }
  0x30   : > { %6456 = vst [vmem:[#allocation5_spill] sm:$0xff] %v5134_v36  ;;  %4117 = vmatprep.mubr.msk.bf16.mxu1 %vm682_vm2, %v5134_v36  ;;  %v371_v51 = vrot.slane %v370_v37, 4  ;;  %v402_v53 = vshrl.u32 %v5132_v33, 16  ;;  %v405_v57 = vshll.u32 %v5132_v33, 16  ;;  %4258 = vmatmul.mubr.msk.bf16.gmra.mrb[4].mxu0 %vm682_vm2, %v5134_v36  ;;  %v366_v58 = vsel %vm5001_vm3, %v361_v43, %v365_v19  ;;  %v5174_v37 = vld [vmem:[%s4962_s27 + $0x68] sm:$0x1] }
  0x31   : > { %v384_v60 = vor.u32 %v383_v44, %v380_v40  ;;  %v393_v1 = vrot.slane %v391_v50, 4  ;;  %v411_v3 = vshll.u32 %v5137_v4, 16  ;;  %v399_v10 = vrot.slane %v397_v56, 5  ;;  %v5350_v36 = vld [vmem:[%s4962_s27 + $0xa0] sm:$0xf] }
  0x32   : > { %v376_v9 = vsel %vm5001_vm3, %v371_v51, %v375_v38  ;;  %v404_v11 = vrot.slane %v402_v53, 4  ;;  %v407_v12 = vrot.slane %v405_v57, 5  ;;  %v415_v24 = vshrl.u32 %v5137_v4, 16 }
  0x33   : > { %v5162_v18 = vcombine.low %v366_v58, %v376_v9  ;;  %v385_v19 = vrot.slane %v384_v60, 4  ;;  %v394_v20 = vor.u32 %v393_v1, %v389_v48  ;;  %v413_v22 = vrot.slane %v411_v3, 5 }
  0x34   : > { %v408_v23 = vor.u32 %v407_v12, %v404_v11  ;;  %v421_v26 = vshll.u32 %v5151_v2, 16  ;;  %v426_v27 = vshrl.u32 %v5155_v8, 16  ;;  %v429_v38 = vshll.u32 %v5155_v8, 16 }
  0x35   : > { %6457 = vst [vmem:[#allocation6_spill] sm:$0xff] %v5162_v18  ;;  %4261 = vmatprep.mubr.msk.bf16.mxu0 %vm682_vm2, %v5162_v18  ;;  %4118 = vmatmul.mubr.msk.bf16.gmra.mrb[8].mxu1 %vm682_vm2, %v5162_v18  ;;  %v390_v31 = vsel %vm5001_vm3, %v385_v19, %v389_v48  ;;  %v395_v32 = vrot.slane %v394_v20, 4  ;;  %v435_v40 = vshll.u32 %v5160_v17, 16  ;;  %v417_v44 = vrot.slane %v415_v24, 4  ;;  %v5182_v48 = vld [vmem:[%s4962_s27 + $0x6c] sm:$0xf] }
  0x36   : > { %v409_v43 = vrot.slane %v408_v23, 4  ;;  %v423_v50 = vrot.slane %v421_v26, 5  ;;  %v428_v51 = vrot.slane %v426_v27, 4  ;;  %v431_v53 = vrot.slane %v429_v38, 5  ;;  %v5198_v23 = vld [vmem:[%s4962_s27 + $0x70] sm:$0xf] }
  0x37   : > { %v400_v56 = vsel %vm5001_vm3, %v395_v32, %v399_v10  ;;  %v437_v57 = vrot.slane %v435_v40, 5  ;;  %v439_v58 = vshrl.u32 %v5160_v17, 16  ;;  %v418_v3 = vor.u32 %v417_v44, %v413_v22  ;;  %v5205_v26 = vld [vmem:[%s4962_s27 + $0x74] sm:$0x1]  ;;  %v5212_v40 = vld [vmem:[%s4962_s27 + $0x78] sm:$0xf] }
  0x38   : > { %v5184_v60 = vcombine.low %v390_v31, %v400_v56  ;;  %v414_v1 = vsel %vm5001_vm3, %v409_v43, %v413_v22  ;;  %v445_v9 = vshll.u32 %v5174_v37, 16  ;;  %v432_v10 = vor.u32 %v431_v53, %v428_v51 }
  0x39   : > { %v441_v12 = vrot.slane %v439_v58, 4  ;;  %v3682_v19 = vrot.slane %v4982_v13, 9  ;;  %v1221_v20 = vrot.slane %v4985_v15, 5  ;;  %v419_v22 = vrot.slane %v418_v3, 4 }
  0x3a   : > { %6458 = vst [vmem:[#allocation7_spill] sm:$0xff] %v5184_v60  ;;  %4262 = vmatmul.mubr.msk.bf16.gmra.mrb[8].mxu0 %vm682_vm2, %v5184_v60  ;;  %4121 = vmatprep.mubr.msk.bf16.mxu1 %vm682_vm2, %v5184_v60  ;;  %v447_v24 = vrot.slane %v445_v9, 5  ;;  %v450_v27 = vshrl.u32 %v5182_v48, 16  ;;  %v453_v31 = vshll.u32 %v5182_v48, 16  ;;  %v433_v32 = vrot.slane %v432_v10, 4 }
  0x3b   : > { %v442_v13 = vor.u32 %v441_v12, %v437_v57  ;;  %v1222_v15 = vsel %vm5191_vm6, %v3682_v19, %v1221_v20  ;;  %v1223_v38 = vrot.slane %v1221_v20, 4  ;;  %v424_v43 = vsel %vm5001_vm3, %v419_v22, %v423_v50  ;;  %v5229_v20 = vld [vmem:[%s4962_s27 + $0x7c] sm:$0xf]  ;;  %v5242_v22 = vld [vmem:[%s4962_s27 + $0x80] sm:$0x1] }
  0x3c   : > { %v452_v44 = vrot.slane %v450_v27, 4  ;;  %v455_v51 = vrot.slane %v453_v31, 5  ;;  %v459_v56 = vshll.u32 %v5198_v23, 16  ;;  %v5217_v53 = vcombine.low %v414_v1, %v424_v43  ;;  %v5343_v60 = vld [vmem:[%s4962_s27 + $0x9c] sm:$0xf] }
  0x3d   : > { %v438_v58 = vsel %vm5001_vm3, %v433_v32, %v437_v57  ;;  %v443_v3 = vrot.slane %v442_v13, 4  ;;  %v1225_v9 = vsel %vm5191_vm6, %v1223_v38, %v1224_v41  ;;  %v463_v19 = vshrl.u32 %v5198_v23, 16 }
  0x3e   : > { %6461 = vst [vmem:[#allocation8_spill] sm:$0xff] %v5217_v53  ;;  %v5225_v10 = vcombine.low %v1222_v15, %v1225_v9  ;;  %v456_v12 = vor.u32 %v455_v51, %v452_v44  ;;  %v461_v50 = vrot.slane %v459_v56, 5  ;;  %4265 = vmatprep.mubr.msk.bf16.mxu0 %vm682_vm2, %v5217_v53  ;;  %4122 = vmatmul.mubr.msk.bf16.gmra.mrb[12].mxu1 %vm682_vm2, %v5217_v53  ;;  %v469_v41 = vshll.u32 %v5205_v26, 16  ;;  %v5257_v44 = vld [vmem:[%s4962_s27 + $0x84] sm:$0xf] }
  0x3f   : > { %v448_v16 = vsel %vm5001_vm3, %v443_v3, %v447_v24  ;;  %v3683_v57 = vrot.slane %v4997_v29, 9  ;;  %v1230_v1 = vrot.slane %v1228_v62, 4  ;;  %v465_v32 = vrot.slane %v463_v19, 4 }
  0x40   : > { %6462 = vst [vmem:[#allocation9_spill] sm:$0xff] %v5225_v10  ;;  %v5244_v27 = vcombine.low %v438_v58, %v448_v16  ;;  %v457_v31 = vrot.slane %v456_v12, 4  ;;  %v474_v13 = vshrl.u32 %v5212_v40, 16  ;;  %v471_v15 = vrot.slane %v469_v41, 5  ;;  %v5273_v12 = vld [vmem:[%s4962_s27 + $0x88] sm:$0xf] }
  0x41   : > { %v1229_v24 = vsel %vm5191_vm6, %v3683_v57, %v1228_v62  ;;  %v1232_v38 = vsel %vm5191_vm6, %v1230_v1, %v1231_v63  ;;  %v477_v43 = vshll.u32 %v5212_v40, 16  ;;  %v466_v56 = vor.u32 %v465_v32, %v461_v50 }
  0x42   : > { %6463 = vst [vmem:[#allocation10_spill] sm:$0xff] %v5244_v27  ;;  %4266 = vmatmul.mubr.msk.bf16.gmra.mrb[12].mxu0 %vm682_vm2, %v5244_v27  ;;  %4125 = vmatprep.mubr.msk.bf16.mxu1 %vm682_vm2, %v5244_v27  ;;  %v462_v51 = vsel %vm5001_vm3, %v457_v31, %v461_v50  ;;  %v5265_v62 = vcombine.low %v1229_v24, %v1232_v38  ;;  %v476_v42 = vrot.slane %v474_v13, 4  ;;  %v483_v58 = vshll.u32 %v5229_v20, 16  ;;  %v5279_v13 = vld [vmem:[%s4962_s27 + $0x8c] sm:$0x1] }
  0x43   : > { %4289 = vmatprep.mubr.msk.bf16.mxu0 %vm682_vm2, %v5225_v10  ;;  %v479_v63 = vrot.slane %v477_v43, 5  ;;  %v487_v3 = vshrl.u32 %v5229_v20, 16  ;;  %v493_v9 = vshll.u32 %v5242_v22, 16  ;;  %v467_v19 = vrot.slane %v466_v56, 4 }
  0x44   : > { %6464 = vst [vmem:[#allocation11_spill] sm:$0xff] %v5265_v62  ;;  %v3684_v16 = vrot.slane %v5024_v49, 9  ;;  %v1235_v50 = vrot.slane %v5027_v54, 5  ;;  %v1238_v41 = vrot.slane %v5032_v59, 5  ;;  %v485_v1 = vrot.slane %v483_v58, 5 }
  0x45   : > { %v480_v57 = vor.u32 %v479_v63, %v476_v42  ;;  %v489_v31 = vrot.slane %v487_v3, 4  ;;  %v495_v32 = vrot.slane %v493_v9, 5  ;;  %v472_v24 = vsel %vm5001_vm3, %v467_v19, %v471_v15  ;;  %v4872_v9 = vld [vmem:[%s6407_s1 + $0x68] sm:$0xff]  }
  0x46   : > { %v1236_v38 = vsel %vm5191_vm6, %v3684_v16, %v1235_v50  ;;  %v1237_v43 = vrot.slane %v1235_v50, 4  ;;  %v498_v56 = vshrl.u32 %v5257_v44, 16  ;;  %v5286_v27 = vcombine.low %v462_v51, %v472_v24 }
  0x47   : > { %v481_v53 = vrot.slane %v480_v57, 4  ;;  %v490_v59 = vor.u32 %v489_v31, %v485_v1  ;;  %v501_v42 = vshll.u32 %v5257_v44, 16  ;;  %v507_v3 = vshll.u32 %v5273_v12, 16 }
  0x48   : > { %6465 = vst [vmem:[#allocation12_spill] sm:$0xff] %v5286_v27  ;;  %v1239_v63 = vsel %vm5191_vm6, %v1237_v43, %v1238_v41  ;;  %v500_v58 = vrot.slane %v498_v56, 4  ;;  %v511_v15 = vshrl.u32 %v5273_v12, 16  ;;  %4126 = vmatmul.mubr.msk.bf16.gmra.mrb[16].mxu1 %vm682_vm2, %v5286_v27  ;;  %v5303_v41 = vld [vmem:[%s4962_s27 + $0x90] sm:$0xf]  ;;  %v517_v24 = vshll.u32 %v5279_v13, 16 }
  0x49   : > { %v486_v51 = vsel %vm5001_vm3, %v481_v53, %v485_v1  ;;  %v491_v19 = vrot.slane %v490_v59, 4  ;;  %v5300_v16 = vcombine.low %v1236_v38, %v1239_v63  ;;  %v503_v50 = vrot.slane %v501_v42, 5  ;;  %v5317_v59 = vld [vmem:[%s4962_s27 + $0x94] sm:$0xf] }
  0x4a   : > { %4290 = vmatmul.mubr.msk.bf16.vlgmr.msra.gmra.mrb[0].mxu0 %vm682_vm2, %v5265_v62  ;;  %v509_v57 = vrot.slane %v507_v3, 5  ;;  %v513_v31 = vrot.slane %v511_v15, 4  ;;  %v3685_v43 = vrot.slane %v5040_v0, 9  ;;  %v1242_v38 = vrot.slane %v5053_v21, 5  ;;  %v5322_v15 = vld [vmem:[%s4962_s27 + $0x98] sm:$0x1] }
  0x4b   : > { %6466 = vst [vmem:[#allocation13_spill] sm:$0xff] %v5300_v16  ;;  %4322 = vmatpush3.bf16.msra.mxu0 %v5114_v5  ;;  %v496_v53 = vsel %vm5001_vm3, %v491_v19, %v495_v32  ;;  %4293 = vmatprep.mubr.msk.bf16.mxu0 %vm682_vm2, %v5300_v16  ;;  %v504_v1 = vor.u32 %v503_v50, %v500_v58  ;;  %v1245_v56 = vrot.slane %v5060_v25, 5  ;;  %v519_v3 = vrot.slane %v517_v24, 5  ;;  %v5328_v32 = vld [vmem:[%s6407_s1 + $0x70] sm:$0xff]  }
  0x4c   : > { %v5319_v42 = vcombine.low %v486_v51, %v496_v53  ;;  %v514_v63 = vor.u32 %v513_v31, %v509_v57  ;;  %v522_v5 = vshrl.u32 %v5303_v41, 16  ;;  %4323 = vmatprep.subr.bf16.mxu0 %v4872_v9  ;;  %6468 = vst [vmem:[#allocation15_spill] sm:$0xff] %v5328_v32  ;;  %v1243_v25 = vsel %vm5191_vm6, %v3685_v43, %v1242_v38 }
  0x4d   : > { %v505_v58 = vrot.slane %v504_v1, 4  ;;  %v1244_v19 = vrot.slane %v1242_v38, 4  ;;  %v525_v51 = vshll.u32 %v5303_v41, 16  ;;  %v531_v24 = vshll.u32 %v5317_v59, 16 }
  0x4e   : > { %6467 = vst [vmem:[#allocation14_spill] sm:$0xff] %v5319_v42  ;;  %4129 = vmatprep.mubr.msk.bf16.mxu1 %vm682_vm2, %v5319_v42  ;;  %v515_v50 = vrot.slane %v514_v63, 4  ;;  %v524_v31 = vrot.slane %v522_v5, 4  ;;  %v535_v53 = vshrl.u32 %v5317_v59, 16  ;;  %v541_v38 = vshll.u32 %v5322_v15, 16 }
  0x4f   : > { %v510_v27 = vsel %vm5001_vm3, %v505_v58, %v509_v57  ;;  %v1246_v1 = vsel %vm5191_vm6, %v1244_v19, %v1245_v56  ;;  %v527_v43 = vrot.slane %v525_v51, 5  ;;  %4324 = vmatpush3.bf16.msra.mxu0 %v4872_v9  ;;  %v533_v42 = vrot.slane %v531_v24, 5 }
  0x50   : > { %v520_v63 = vsel %vm5001_vm3, %v515_v50, %v519_v3  ;;  %v5347_v5 = vcombine.low %v1243_v25, %v1246_v1  ;;  %v537_v18 = vrot.slane %v535_v53, 4  ;;  %4357 = vmatprep.subr.bf16.mxu0 %v5328_v32  ;;  %v543_v58 = vrot.slane %v541_v38, 5  ;;  %v5364_v50 = vld [vmem:[%s4962_s27 + $0xa4] sm:$0x1] }
  0x51   : > { %v5353_v57 = vcombine.low %v510_v27, %v520_v63  ;;  %v528_v56 = vor.u32 %v527_v43, %v524_v31  ;;  %v3686_v19 = vrot.slane %v5068_v39, 9  ;;  %v1249_v3 = vrot.slane %v5074_v45, 5 }
  0x52   : > { %6469 = vst [vmem:[#allocation16_spill] sm:$0xff] %v5347_v5  ;;  %4294 = vmatmul.mubr.msk.bf16.gmra.mrb[4].mxu0 %vm682_vm2, %v5347_v5  ;;  %v538_v9 = vor.u32 %v537_v18, %v533_v42  ;;  %v1252_v25 = vrot.slane %v5084_v52, 5  ;;  %v546_v51 = vshrl.u32 %v5343_v60, 16  ;;  %v549_v31 = vshll.u32 %v5343_v60, 16 }
  0x53   : > { %6470 = vst [vmem:[#allocation17_spill] sm:$0xff] %v5353_v57  ;;  %4130 = vmatmul.mubr.msk.bf16.gmra.mrb[20].mxu1 %vm682_vm2, %v5353_v57  ;;  %v529_v27 = vrot.slane %v528_v56, 4  ;;  %v555_v24 = vshll.u32 %v5350_v36, 16  ;;  %v559_v18 = vshrl.u32 %v5350_v36, 16  ;;  %v1250_v52 = vsel %vm5191_vm6, %v3686_v19, %v1249_v3 }
  0x54   : > { %v539_v53 = vrot.slane %v538_v9, 4  ;;  %v1251_v1 = vrot.slane %v1249_v3, 4  ;;  %v548_v43 = vrot.slane %v546_v51, 4  ;;  %v551_v63 = vrot.slane %v549_v31, 5  ;;  %v5383_v3 = vld [vmem:[%s4962_s27 + $0xac] sm:$0xf] }
  0x55   : > { %v534_v38 = vsel %vm5001_vm3, %v529_v27, %v533_v42  ;;  %v557_v56 = vrot.slane %v555_v24, 5  ;;  %v561_v57 = vrot.slane %v559_v18, 4  ;;  %v565_v9 = vshll.u32 %v5364_v50, 16 }
  0x56   : > { %v544_v47 = vsel %vm5001_vm3, %v539_v53, %v543_v58  ;;  %v1253_v5 = vsel %vm5191_vm6, %v1251_v1, %v1252_v25  ;;  %v3687_v19 = vrot.slane %v5090_v55, 9  ;;  %v552_v27 = vor.u32 %v551_v63, %v548_v43 }
  0x57   : > { %v5385_v51 = vcombine.low %v534_v38, %v544_v47  ;;  %v5387_v42 = vcombine.low %v1250_v52, %v1253_v5  ;;  %v562_v31 = vor.u32 %v561_v57, %v557_v56  ;;  %v567_v24 = vrot.slane %v565_v9, 5  ;;  %v5397_v5 = vld [vmem:[%s4962_s27 + $0xb0] sm:$0x1] }
  0x58   : > { %v1256_v18 = vrot.slane %v5094_v61, 5  ;;  %v1259_v58 = vrot.slane %v5127_v28, 5  ;;  %v570_v25 = vshrl.u32 %v5374_v14, 16  ;;  %v553_v47 = vrot.slane %v552_v27, 4 }
  0x59   : > { %6471 = vst [vmem:[#allocation18_spill] sm:$0xff] %v5385_v51  ;;  %6472 = vst [vmem:[#allocation19_spill] sm:$0xff] %v5387_v42  ;;  %4133 = vmatprep.mubr.msk.bf16.mxu1 %vm682_vm2, %v5385_v51  ;;  %4297 = vmatprep.mubr.msk.bf16.mxu0 %vm682_vm2, %v5387_v42  ;;  %v563_v53 = vrot.slane %v562_v31, 4  ;;  %v573_v57 = vshll.u32 %v5374_v14, 16  ;;  %v579_v52 = vshll.u32 %v5383_v3, 16  ;;  %v583_v38 = vshrl.u32 %v5383_v3, 16 }
  0x5a   : > { %v1257_v28 = vsel %vm5191_vm6, %v3687_v19, %v1256_v18  ;;  %v1258_v1 = vrot.slane %v1256_v18, 4  ;;  %v572_v43 = vrot.slane %v570_v25, 4  ;;  %v558_v63 = vsel %vm5001_vm3, %v553_v47, %v557_v56  ;;  %v5409_v51 = vld [vmem:[%s4962_s27 + $0xb4] sm:$0xf]  ;;  %v5421_v47 = vld [vmem:[%s4962_s27 + $0xb8] sm:$0xf] }
  0x5b   : > { %v568_v9 = vsel %vm5001_vm3, %v563_v53, %v567_v24  ;;  %v575_v27 = vrot.slane %v573_v57, 5  ;;  %v581_v31 = vrot.slane %v579_v52, 5  ;;  %v585_v18 = vrot.slane %v583_v38, 4 }
  0x5c   : > { %v5411_v42 = vcombine.low %v558_v63, %v568_v9  ;;  %v1260_v19 = vsel %vm5191_vm6, %v1258_v1, %v1259_v58  ;;  %v589_v25 = vshll.u32 %v5397_v5, 16  ;;  %v3688_v56 = vrot.slane %v5132_v33, 9  ;;  %v5427_v58 = vld [vmem:[%s4962_s27 + $0xbc] sm:$0x1] }
  0x5d   : > { %v5416_v16 = vcombine.low %v1257_v28, %v1260_v19  ;;  %v576_v62 = vor.u32 %v575_v27, %v572_v43  ;;  %v1263_v24 = vrot.slane %v5137_v4, 5  ;;  %v586_v53 = vor.u32 %v585_v18, %v581_v31 }
  0x5e   : > { %6473 = vst [vmem:[#allocation20_spill] sm:$0xff] %v5411_v42  ;;  %4134 = vmatmul.mubr.msk.bf16.gmra.mrb[24].mxu1 %vm682_vm2, %v5411_v42  ;;  %v591_v57 = vrot.slane %v589_v25, 5  ;;  %v1266_v52 = vrot.slane %v5151_v2, 5  ;;  %v594_v1 = vshrl.u32 %v5409_v51, 16  ;;  %v597_v63 = vshll.u32 %v5409_v51, 16 }
  0x5f   : > { %6474 = vst [vmem:[#allocation21_spill] sm:$0xff] %v5416_v16  ;;  %4298 = vmatmul.mubr.msk.bf16.gmra.mrb[8].mxu0 %vm682_vm2, %v5416_v16  ;;  %v577_v28 = vrot.slane %v576_v62, 4  ;;  %v1264_v43 = vsel %vm5191_vm6, %v3688_v56, %v1263_v24  ;;  %v1265_v38 = vrot.slane %v1263_v24, 4  ;;  %v587_v9 = vrot.slane %v586_v53, 4 }
  0x60   : > { %v596_v27 = vrot.slane %v594_v1, 4  ;;  %v603_v19 = vshll.u32 %v5421_v47, 16  ;;  %v607_v2 = vshrl.u32 %v5421_v47, 16  ;;  %v599_v42 = vrot.slane %v597_v63, 5 }
  0x61   : > { %v582_v18 = vsel %vm5001_vm3, %v577_v28, %v581_v31  ;;  %v1267_v25 = vsel %vm5191_vm6, %v1265_v38, %v1266_v52  ;;  %v613_v62 = vshll.u32 %v5427_v58, 16  ;;  %v592_v56 = vsel %vm5001_vm3, %v587_v9, %v591_v57 }
  0x62   : > { %v5444_v24 = vcombine.low %v1264_v43, %v1267_v25  ;;  %v605_v53 = vrot.slane %v603_v19, 5  ;;  %v609_v1 = vrot.slane %v607_v2, 4  ;;  %v5446_v16 = vcombine.low %v582_v18, %v592_v56 }
  0x63   : > { %v600_v10 = vor.u32 %v599_v42, %v596_v27  ;;  %v615_v32 = vrot.slane %v613_v62, 5  ;;  %v3689_v33 = vrot.slane %v5155_v8, 9  ;;  %v1270_v52 = vrot.slane %v5160_v17, 5 }
  0x64   : > { %4301 = vmatprep.mubr.msk.bf16.mxu0 %vm682_vm2, %v5444_v24  ;;  %v610_v31 = vor.u32 %v609_v1, %v605_v53  ;;  %v1273_v28 = vrot.slane %v5174_v37, 5  ;;  %v3690_v57 = vrot.slane %v5182_v48, 9  ;;  %4137 = vmatprep.mubr.msk.bf16.mxu1 %vm682_vm2, %v5446_v16  ;;  %v3647_v42 = vcombine.low %v4970_v6, %v4973_v7 }
  0x65   : > { %v601_v43 = vrot.slane %v600_v10, 4  ;;  %v1277_v38 = vrot.slane %v5198_v23, 5  ;;  %v1280_v63 = vrot.slane %v5205_v26, 5  ;;  %v1271_v27 = vsel %vm5191_vm6, %v3689_v33, %v1270_v52 }
  0x66   : > { %v611_v9 = vrot.slane %v610_v31, 4  ;;  %v1272_v19 = vrot.slane %v1270_v52, 4  ;;  %v1284_v37 = vrot.slane %v5229_v20, 5  ;;  %v3691_v6 = vrot.slane %v5212_v40, 9 }
  0x67   : > { %v606_v2 = vsel %vm5001_vm3, %v601_v43, %v605_v53  ;;  %v1278_v10 = vsel %vm5191_vm6, %v3690_v57, %v1277_v38  ;;  %v1279_v18 = vrot.slane %v1277_v38, 4  ;;  %v1287_v33 = vrot.slane %v5242_v22, 5 }
  0x68   : > { %v616_v7 = vsel %vm5001_vm3, %v611_v9, %v615_v32  ;;  %v1274_v26 = vsel %vm5191_vm6, %v1272_v19, %v1273_v28  ;;  %v1286_v25 = vrot.slane %v1284_v37, 4  ;;  %v3692_v31 = vrot.slane %v5257_v44, 9 }
  0x69   : > { %v5473_v62 = vcombine.low %v606_v2, %v616_v7  ;;  %v5475_v56 = vcombine.low %v1271_v27, %v1274_v26  ;;  %v1281_v53 = vsel %vm5191_vm6, %v1279_v18, %v1280_v63  ;;  %v1291_v52 = vrot.slane %v5273_v12, 5  ;;  %v4880_v7 = vld [vmem:[%s6407_s1 + $0x28] sm:$0xff]  }
  0x6a   : > { %v5479_v1 = vcombine.low %v1278_v10, %v1281_v53  ;;  %v1294_v22 = vrot.slane %v5279_v13, 5  ;;  %v1285_v32 = vsel %vm5191_vm6, %v3691_v6, %v1284_v37  ;;  %v1288_v28 = vsel %vm5191_vm6, %v1286_v25, %v1287_v33 }
  0x6b   : > { %4138 = vmatmul.mubr.msk.bf16.gmra.mrb[28].mxu1 %vm682_vm2, %v5473_v62  ;;  %4302 = vmatmul.mubr.msk.bf16.gmra.mrb[12].mxu0 %vm682_vm2, %v5475_v56  ;;  %v1293_v57 = vrot.slane %v1291_v52, 4  ;;  %v1298_v43 = vrot.slane %v5317_v59, 5  ;;  %v1305_v38 = vrot.slane %v5350_v36, 5  ;;  %v1292_v63 = vsel %vm5191_vm6, %v3692_v31, %v1291_v52 }
  0x6c   : > { %4145 = vmatprep.mubr.msk.bf16.mxu1 %vm682_vm2, %v3647_v42  ;;  %4305 = vmatprep.mubr.msk.bf16.mxu0 %vm682_vm2, %v5479_v1  ;;  %v5501_v42 = vcombine.low %v1285_v32, %v1288_v28  ;;  %v3693_v9 = vrot.slane %v5303_v41, 9  ;;  %v1301_v19 = vrot.slane %v5322_v15, 5  ;;  %v5507_v37 = vcombine.low %v4997_v29, %v5010_v35 }
  0x6d   : > { %v1295_v13 = vsel %vm5191_vm6, %v1293_v57, %v1294_v22  ;;  %v1300_v27 = vrot.slane %v1298_v43, 4  ;;  %v3694_v2 = vrot.slane %v5343_v60, 9  ;;  %v1307_v18 = vrot.slane %v1305_v38, 4 }
  0x6e   : > { %v5510_v10 = vcombine.low %v1292_v63, %v1295_v13  ;;  %v1308_v6 = vrot.slane %v5364_v50, 5  ;;  %v1312_v26 = vrot.slane %v5383_v3, 5  ;;  %v1299_v29 = vsel %vm5191_vm6, %v3693_v9, %v1298_v43 }
  0x6f   : > { %v1302_v35 = vsel %vm5191_vm6, %v1300_v27, %v1301_v19  ;;  %v5530_v15 = vcombine.low %v5024_v49, %v5027_v54  ;;  %v1306_v50 = vsel %vm5191_vm6, %v3694_v2, %v1305_v38  ;;  %v5536_v25 = vcombine.low %v5155_v8, %v5160_v17  ;;  %v5551_v54 = vld [vmem:[%s6407_s1 + $0x30] sm:$0xff]  }
  0x70   : > { %v3695_v33 = vrot.slane %v5374_v14, 9  ;;  %v1319_v53 = vrot.slane %v5421_v47, 5  ;;  %v5546_v49 = vcombine.low %v5182_v48, %v5198_v23  ;;  %v5553_v8 = vcombine.low %v1299_v29, %v1302_v35 }
  0x71   : > { %v1314_v17 = vrot.slane %v1312_v26, 4  ;;  %v1315_v31 = vrot.slane %v5397_v5, 5  ;;  %v5558_v52 = vcombine.low %v5212_v40, %v5229_v20  ;;  %v5562_v22 = vcombine.low %v5257_v44, %v5273_v12  ;;  %v222_v5 = vld [vmem:[%s4962_s27 + $0xc8] sm:$0x1] }
  0x72   : > { %v5566_v48 = vcombine.low %v5303_v41, %v5317_v59  ;;  %v5570_v23 = vcombine.low %v5343_v60, %v5350_v36  ;;  %v5574_v32 = vcombine.low %v5374_v14, %v5383_v3  ;;  %v5578_v40 = vcombine.low %v5040_v0, %v5053_v21  ;;  %v5589_v14 = vld [vmem:[%s4962_s27 + $0xc4] sm:$0xf] }
  0x73   : > { %4146 = vmatmul.mubr.msk.bf16.vlgmr.msra.gmra.mrb[0].mxu1 %vm682_vm2, %v5007_v34  ;;  %4306 = vmatmul.mubr.msk.bf16.gmra.mrb[16].mxu0 %vm682_vm2, %v5501_v42  ;;  %v5584_v44 = vcombine.low %v5409_v51, %v5421_v47  ;;  %v3696_v36 = vrot.slane %v5409_v51, 9  ;;  %v1321_v60 = vrot.slane %v1319_v53, 4  ;;  %v1322_v12 = vrot.slane %v5427_v58, 5  ;;  %v5610_v51 = vld [vmem:[%s4962_s27 + $0xc0] sm:$0xf] }
  0x74   : > { %4178 = vmatpush3.bf16.msra.mxu1 %v5079_v46  ;;  %4149 = vmatprep.mubr.msk.bf16.mxu1 %vm682_vm2, %v5507_v37  ;;  %v1309_v46 = vsel %vm5191_vm6, %v1307_v18, %v1308_v6  ;;  %v1313_v0 = vsel %vm5191_vm6, %v3695_v33, %v1312_v26  ;;  %v1316_v21 = vsel %vm5191_vm6, %v1314_v17, %v1315_v31  ;;  %v2091_v41 = vrot.slane %v5589_v14, 5 }
  0x75   : > { %4309 = vmatprep.mubr.msk.bf16.mxu0 %vm682_vm2, %v5510_v10  ;;  %4179 = vmatprep.subr.bf16.mxu1 %v4880_v7  ;;  %v5580_v20 = vcombine.low %v1306_v50, %v1309_v46  ;;  %v1320_v59 = vsel %vm5191_vm6, %v3696_v36, %v1319_v53  ;;  %v1323_v3 = vsel %vm5191_vm6, %v1321_v60, %v1322_v12  ;;  %v1849_v57 = vshrl.u32 %v5610_v51, 16  ;;  %v6475_v46 = vld [vmem:[#allocation4_spill] sm:$0xff]  ;;  %v6476_v60 = vld [vmem:[#allocation15_spill] sm:$0xff]  ;;  %v4894_v12 = vld [vmem:[%s6407_s1 + $0x80] sm:$0xff]  }
  0x76   : > { %v5615_v47 = vcombine.low %v5068_v39, %v5074_v45  ;;  %v5617_v58 = vcombine.low %v1313_v0, %v1316_v21  ;;  %v5621_v28 = vcombine.low %v5090_v55, %v5094_v61  ;;  %v1852_v43 = vshll.u32 %v5610_v51, 16  ;;  %v4896_v0 = vld [vmem:[%s4962_s27 + $0x4] sm:$0xf] }
  0x77   : > { %v1858_v38 = vshll.u32 %v5589_v14, 16  ;;  %v1862_v63 = vshrl.u32 %v5589_v14, 16  ;;  %v5627_v13 = vcombine.low %v1320_v59, %v1323_v3  ;;  %v3781_v9 = vrot.slane %v5610_v51, 9  ;;  %v4898_v3 = vld [vmem:[%s4962_s27] sm:$0xf] }
  0x78   : > { %4180 = vmatpush3.bf16.msra.mxu1 %v4880_v7  ;;  %v2093_v39 = vrot.slane %v2091_v41, 4  ;;  %v2094_v45 = vrot.slane %v222_v5, 5  ;;  %v1851_v27 = vrot.slane %v1849_v57, 4  ;;  %v1854_v19 = vrot.slane %v1852_v43, 5 }
  0x79   : > { %4213 = vmatprep.subr.bf16.mxu1 %v5551_v54  ;;  %v1860_v2 = vrot.slane %v1858_v38, 5  ;;  %v1864_v18 = vrot.slane %v1862_v63, 4  ;;  %v1868_v6 = vshll.u32 %v222_v5, 16  ;;  %v2092_v7 = vsel %vm5191_vm6, %v3781_v9, %v2091_v41  ;;  %v4897_v41 = vld [vmem:[%s4962_s27 + $0x8] sm:$0x1]  ;;  %v4893_v9 = vld [vmem:[%s6407_s1 + $0x38] sm:$0xff]  }
  0x7a   : > { %v1855_v55 = vor.u32 %v1854_v19, %v1851_v27  ;;  %v2095_v26 = vsel %vm5191_vm6, %v2093_v39, %v2094_v45  ;;  %v5644_v33 = vcombine.low %v6475_v46, %v5137_v4  ;;  %v4890_v4 = vld [vmem:[%s6407_s1 + $0x78] sm:$0xff]   ;;  %v1214_v21 = vrot.slane %v4896_v0, 5  ;;  %v6478_v45 = vld [vmem:[#allocation11_spill] sm:$0xff]  ;;  %v4899_v27 = vld [vmem:[%s6407_s1 + $0x40] sm:$0xff]  }
  0x7b   : > { %4150 = vmatmul.mubr.msk.bf16.gmra.mrb[4].mxu1 %vm682_vm2, %v5530_v15  ;;  %4310 = vmatmul.mubr.msk.bf16.gmra.mrb[20].mxu0 %vm682_vm2, %v5553_v8  ;;  %v1865_v61 = vor.u32 %v1864_v18, %v1860_v2  ;;  %v1870_v50 = vrot.slane %v1868_v6, 5  ;;  %v5646_v53 = vcombine.low %v2092_v7, %v2095_v26  ;;  %v1217_v59 = vrot.slane %v4897_v41, 5  ;;  %v6477_v39 = vld [vmem:[#allocation9_spill] sm:$0xff]  ;;  %v6481_v18 = vld [vmem:[#allocation19_spill] sm:$0xff]  ;;  %v5746_v6 = vld [vmem:[%s4962_s27 + $0xd0] sm:$0xf] }
  0x7c   : > { %4153 = vmatprep.mubr.msk.bf16.mxu1 %vm682_vm2, %v5578_v40  ;;  %4313 = vmatprep.mubr.msk.bf16.mxu0 %vm682_vm2, %v5580_v20  ;;  %v1856_v29 = vrot.slane %v1855_v55, 4  ;;  %v3681_v5 = vrot.slane %v4898_v3, 9  ;;  %v1216_v57 = vrot.slane %v1214_v21, 4  ;;  %v6479_v19 = vld [vmem:[#allocation13_spill] sm:$0xff]  ;;  %v4895_v7 = vld [vmem:[%s6407_s1 + $0x88] sm:$0xff]   ;;  %v6488_v46 = vld [vmem:[#allocation8_spill] sm:$0xff] }
  0x7d   : > { %v1866_v35 = vrot.slane %v1865_v61, 4  ;;  %v6482_v55 = vld [vmem:[#allocation21_spill] sm:$0xff]  ;;  %v5743_v61 = vld [vmem:[%s4962_s27 + $0xcc] sm:$0xf]  ;;  %v6493_v41 = vld [vmem:[#allocation18_spill] sm:$0xff]  ;;  %v2773_v30 = vrot.slane %v5746_v6, 5 }
  0x7e   : > { %v1861_v17 = vsel %vm5001_vm3, %v1856_v29, %v1860_v2  ;;  %v1215_v43 = vsel %vm5191_vm6, %v3681_v5, %v1214_v21  ;;  %v1218_v38 = vsel %vm5191_vm6, %v1216_v57, %v1217_v59  ;;  %v5732_v2 = vcombine.low %v5610_v51, %v5589_v14  ;;  %v6483_v51 = vld [vmem:[#allocation2_spill] sm:$0xff]  ;;  %v6484_v26 = vld [vmem:[#allocation3_spill] sm:$0xff]  ;;  %v6485_v29 = vld [vmem:[#allocation5_spill] sm:$0xff] }
  0x7f   : > { %v1871_v31 = vsel %vm5001_vm3, %v1866_v35, %v1870_v50  ;;  %v3701_v63 = vcombine.low %v1215_v43, %v1218_v38  ;;  %v3809_v14 = vcombine.low %v5743_v61, %v5746_v6  ;;  %v6486_v35 = vld [vmem:[#allocation6_spill] sm:$0xff]  ;;  %v6487_v50 = vld [vmem:[#allocation7_spill] sm:$0xff]  ;;  %v2534_v0 = vshll.u32 %v5743_v61, 16  ;;  %v225_v43 = vld [vmem:[%s4962_s27 + $0xd4] sm:$0x1] }
  0x80   : > { %v5652_v36 = vcombine.low %v1861_v17, %v1871_v31  ;;  %v6489_v17 = vld [vmem:[#allocation10_spill] sm:$0xff]  ;;  %v6490_v31 = vld [vmem:[#allocation12_spill] sm:$0xff]  ;;  %v2544_v21 = vshrl.u32 %v5746_v6, 16 }
  0x81   : > { %v2536_v3 = vrot.slane %v2534_v0, 5 }
  0x82   : > { %v2546_v57 = vrot.slane %v2544_v21, 4 }
  0x83   : > { %4154 = vmatmul.mubr.msk.bf16.gmra.mrb[8].mxu1 %vm682_vm2, %v5615_v47  ;;  %4314 = vmatmul.mubr.msk.bf16.gmra.mrb[24].mxu0 %vm682_vm2, %v5617_v58 }
  0x84   : > { %4157 = vmatprep.mubr.msk.bf16.mxu1 %vm682_vm2, %v5621_v28  ;;  %4317 = vmatprep.mubr.msk.bf16.mxu0 %vm682_vm2, %v5627_v13 }
  0x8b   : > { %4158 = vmatmul.mubr.msk.bf16.gmra.mrb[12].mxu1 %vm682_vm2, %v5644_v33  ;;  %4318 = vmatmul.mubr.msk.bf16.gmra.mrb[28].mxu0 %vm682_vm2, %v5646_v53 }
  0x8c   : > { %4161 = vmatprep.mubr.msk.bf16.mxu1 %vm682_vm2, %v5536_v25  ;;  %4325 = vmatprep.mubr.msk.bf16.mxu0 %vm682_vm2, %v5507_v37 }
  0x93   : > { %4162 = vmatmul.mubr.msk.bf16.gmra.mrb[16].mxu1 %vm682_vm2, %v5546_v49  ;;  %4326 = vmatmul.mubr.msk.bf16.vlgmr.msra.gmra.mrb[0].mxu0 %vm682_vm2, %v5530_v15 }
  0x94   : > { %4358 = vmatpush3.bf16.msra.mxu0 %v6476_v60  ;;  %4165 = vmatprep.mubr.msk.bf16.mxu1 %vm682_vm2, %v5558_v52  ;;  %v6492_v60 = vld [vmem:[#allocation17_spill] sm:$0xff] }
  0x95   : > { %4329 = vmatprep.mubr.msk.bf16.mxu0 %vm682_vm2, %v5578_v40  ;;  %4359 = vmatprep.subr.bf16.mxu0 %v4890_v4 }
  0x98   : > { %4360 = vmatpush3.bf16.msra.mxu0 %v4890_v4  ;;  %v6491_v4 = vld [vmem:[#allocation14_spill] sm:$0xff] }
  0x99   : > { %4393 = vmatprep.subr.bf16.mxu0 %v4894_v12 }
  0x9b   : > { %4166 = vmatmul.mubr.msk.bf16.gmra.mrb[20].mxu1 %vm682_vm2, %v5562_v22  ;;  %4330 = vmatmul.mubr.msk.bf16.gmra.mrb[4].mxu0 %vm682_vm2, %v5615_v47 }
  0x9c   : > { %4169 = vmatprep.mubr.msk.bf16.mxu1 %vm682_vm2, %v5566_v48  ;;  %4333 = vmatprep.mubr.msk.bf16.mxu0 %vm682_vm2, %v5621_v28 }
  0xa3   : > { %4170 = vmatmul.mubr.msk.bf16.gmra.mrb[24].mxu1 %vm682_vm2, %v5570_v23  ;;  %4334 = vmatmul.mubr.msk.bf16.gmra.mrb[8].mxu0 %vm682_vm2, %v5644_v33 }
  0xa4   : > { %4173 = vmatprep.mubr.msk.bf16.mxu1 %vm682_vm2, %v5574_v32  ;;  %4337 = vmatprep.mubr.msk.bf16.mxu0 %vm682_vm2, %v5536_v25 }
  0xab   : > { %4174 = vmatmul.mubr.msk.bf16.gmra.mrb[28].mxu1 %vm682_vm2, %v5584_v44  ;;  %4338 = vmatmul.mubr.msk.bf16.gmra.mrb[12].mxu0 %vm682_vm2, %v5546_v49 }
  0xac   : > { %4181 = vmatprep.mubr.msk.bf16.mxu1 %vm682_vm2, %v3701_v63  ;;  %4341 = vmatprep.mubr.msk.bf16.mxu0 %vm682_vm2, %v5558_v52 }
  0xb3   : > { %4182 = vmatmul.mubr.msk.bf16.vlgmr.msra.gmra.mrb[0].mxu1 %vm682_vm2, %v6477_v39  ;;  %4342 = vmatmul.mubr.msk.bf16.gmra.mrb[16].mxu0 %vm682_vm2, %v5562_v22 }
  0xb4   : > { %4214 = vmatpush3.bf16.msra.mxu1 %v5551_v54  ;;  %4185 = vmatprep.mubr.msk.bf16.mxu1 %vm682_vm2, %v6478_v45  ;;  %v6480_v54 = vld [vmem:[#allocation16_spill] sm:$0xff] }
  0xb5   : > { %4345 = vmatprep.mubr.msk.bf16.mxu0 %vm682_vm2, %v5566_v48  ;;  %4215 = vmatprep.subr.bf16.mxu1 %v4893_v9 }
  0xb8   : > { %4216 = vmatpush3.bf16.msra.mxu1 %v4893_v9  ;;  %v2550_v9 = vshll.u32 %v225_v43, 16 }
  0xb9   : > { %4429 = vmatprep.subr.bf16.mxu1 %v4899_v27 }
  0xbb   : > { %4186 = vmatmul.mubr.msk.bf16.gmra.mrb[4].mxu1 %vm682_vm2, %v6479_v19  ;;  %4346 = vmatmul.mubr.msk.bf16.gmra.mrb[20].mxu0 %vm682_vm2, %v5570_v23 }
  0xbc   : > { %4189 = vmatprep.mubr.msk.bf16.mxu1 %vm682_vm2, %v6480_v54  ;;  %4349 = vmatprep.mubr.msk.bf16.mxu0 %vm682_vm2, %v5574_v32 }
  0xc3   : > { %4190 = vmatmul.mubr.msk.bf16.gmra.mrb[8].mxu1 %vm682_vm2, %v6481_v18  ;;  %4350 = vmatmul.mubr.msk.bf16.gmra.mrb[24].mxu0 %vm682_vm2, %v5584_v44 }
  0xc4   : > { %4193 = vmatprep.mubr.msk.bf16.mxu1 %vm682_vm2, %v6482_v55  ;;  %4353 = vmatprep.mubr.msk.bf16.mxu0 %vm682_vm2, %v5732_v2 }
  0xcb   : > { %4194 = vmatmul.mubr.msk.bf16.gmra.mrb[12].mxu1 %vm682_vm2, %v5444_v24  ;;  %4354 = vmatmul.mubr.msk.bf16.gmra.mrb[28].mxu0 %vm682_vm2, %v3809_v14  ;;  %v2552_v14 = vrot.slane %v2550_v9, 5 }
  0xcc   : > { %4197 = vmatprep.mubr.msk.bf16.mxu1 %vm682_vm2, %v5475_v56  ;;  %4361 = vmatprep.mubr.msk.bf16.mxu0 %vm682_vm2, %v6483_v51 }
  0xd3   : > { %4198 = vmatmul.mubr.msk.bf16.gmra.mrb[16].mxu1 %vm682_vm2, %v5479_v1  ;;  %4362 = vmatmul.mubr.msk.bf16.vlgmr.msra.gmra.mrb[0].mxu0 %vm682_vm2, %v6484_v26 }
  0xd4   : > { %4394 = vmatpush3.bf16.msra.mxu0 %v4894_v12  ;;  %4201 = vmatprep.mubr.msk.bf16.mxu1 %vm682_vm2, %v5501_v42  ;;  %v2531_v12 = vshrl.u32 %v5743_v61, 16 }
  0xd5   : > { %4365 = vmatprep.mubr.msk.bf16.mxu0 %vm682_vm2, %v6485_v29  ;;  %4395 = vmatprep.subr.bf16.mxu0 %v4895_v7 }
  0xd6   : > { %v2533_v59 = vrot.slane %v2531_v12, 4 }
  0xd8   : > { %4396 = vmatpush3.bf16.msra.mxu0 %v4895_v7  ;;  %v2537_v38 = vor.u32 %v2536_v3, %v2533_v59 }
  0xda   : > { %v2538_v39 = vrot.slane %v2537_v38, 4 }
  0xdb   : > { %4202 = vmatmul.mubr.msk.bf16.gmra.mrb[20].mxu1 %vm682_vm2, %v5510_v10  ;;  %4366 = vmatmul.mubr.msk.bf16.gmra.mrb[4].mxu0 %vm682_vm2, %v6486_v35 }
  0xdc   : > { %4205 = vmatprep.mubr.msk.bf16.mxu1 %vm682_vm2, %v5553_v8  ;;  %4369 = vmatprep.mubr.msk.bf16.mxu0 %vm682_vm2, %v6487_v50 }
  0xe3   : > { %4206 = vmatmul.mubr.msk.bf16.gmra.mrb[24].mxu1 %vm682_vm2, %v5580_v20  ;;  %4370 = vmatmul.mubr.msk.bf16.gmra.mrb[8].mxu0 %vm682_vm2, %v6488_v46 }
  0xe4   : > { %4209 = vmatprep.mubr.msk.bf16.mxu1 %vm682_vm2, %v5617_v58  ;;  %4373 = vmatprep.mubr.msk.bf16.mxu0 %vm682_vm2, %v6489_v17 }
  0xeb   : > { %4210 = vmatmul.mubr.msk.bf16.gmra.mrb[28].mxu1 %vm682_vm2, %v5627_v13  ;;  %4374 = vmatmul.mubr.msk.bf16.gmra.mrb[12].mxu0 %vm682_vm2, %v6490_v31 }
  0xec   : > { %4217 = vmatprep.mubr.msk.bf16.mxu1 %vm682_vm2, %v5007_v34  ;;  %4377 = vmatprep.mubr.msk.bf16.mxu0 %vm682_vm2, %v6491_v4  ;;  %v2540_v34 = vshll.u32 %v5746_v6, 16 }
  0xee   : > { %v2542_v5 = vrot.slane %v2540_v34, 5 }
  0xf0   : > { %v2547_v63 = vor.u32 %v2546_v57, %v2542_v5 }
  0xf3   : > { %4218 = vmatmul.mubr.msk.bf16.vlgmr.msra.gmra.mrb[0].mxu1 %vm682_vm2, %v5507_v37  ;;  %4378 = vmatmul.mubr.msk.bf16.gmra.mrb[16].mxu0 %vm682_vm2, %v6492_v60  ;;  %v4900_v37 = vld [vmem:[%s6407_s1 + $0x48] sm:$0xff]  }
  0xf4   : > { %4431 = vmatpush3.bf16.msra.mxu1 %v4899_v27  ;;  %4221 = vmatprep.mubr.msk.bf16.mxu1 %vm682_vm2, %v5530_v15  ;;  %v6494_v15 = vld [vmem:[#allocation20_spill] sm:$0xff]  ;;  %v2548_v27 = vrot.slane %v2547_v63, 4 }
  0xf5   : > { %4381 = vmatprep.mubr.msk.bf16.mxu0 %vm682_vm2, %v6493_v41  ;;  %4430 = vmatprep.subr.bf16.mxu1 %v4900_v37 }
  0xf8   : > { %4432 = vmatpush3.bf16.msra.mxu1 %v4900_v37 }
  0xfb   : > { %4222 = vmatmul.mubr.msk.bf16.gmra.mrb[4].mxu1 %vm682_vm2, %v5578_v40  ;;  %4382 = vmatmul.mubr.msk.bf16.gmra.mrb[20].mxu0 %vm682_vm2, %v6494_v15  ;;  %v2543_v40 = vsel %vm5001_vm3, %v2538_v39, %v2542_v5 }
  0xfc   : > { %4225 = vmatprep.mubr.msk.bf16.mxu1 %vm682_vm2, %v5615_v47  ;;  %4385 = vmatprep.mubr.msk.bf16.mxu0 %vm682_vm2, %v5446_v16  ;;  %v2553_v47 = vsel %vm5001_vm3, %v2548_v27, %v2552_v14 }
  0xfd   : > { %v3832_v51 = vcombine.low %v2543_v40, %v2553_v47 }
 0x103   : > { %4226 = vmatmul.mubr.msk.bf16.gmra.mrb[8].mxu1 %vm682_vm2, %v5621_v28  ;;  %4386 = vmatmul.mubr.msk.bf16.gmra.mrb[24].mxu0 %vm682_vm2, %v5473_v62 }
 0x104   : > { %4229 = vmatprep.mubr.msk.bf16.mxu1 %vm682_vm2, %v5644_v33  ;;  %4389 = vmatprep.mubr.msk.bf16.mxu0 %vm682_vm2, %v5652_v36 }
 0x10b   : > { %4230 = vmatmul.mubr.msk.bf16.gmra.mrb[12].mxu1 %vm682_vm2, %v5536_v25  ;;  %4390 = vmatmul.mubr.msk.bf16.gmra.mrb[28].mxu0 %vm682_vm2, %v3832_v51 }
 0x10c   : > { %4233 = vmatprep.mubr.msk.bf16.mxu1 %vm682_vm2, %v5546_v49  ;;  %4397 = vmatprep.mubr.msk.bf16.mxu0 %vm682_vm2, %v6478_v45 }
 0x113   : > { %4234 = vmatmul.mubr.msk.bf16.gmra.mrb[16].mxu1 %vm682_vm2, %v5558_v52  ;;  %4398 = vmatmul.mubr.msk.bf16.vlgmr.msra.gmra.mrb[0].mxu0 %vm682_vm2, %v6479_v19 }
 0x114   : > { %4237 = vmatprep.mubr.msk.bf16.mxu1 %vm682_vm2, %v5562_v22  ;;  %4401 = vmatprep.mubr.msk.bf16.mxu0 %vm682_vm2, %v6480_v54 }
 0x11b   : > { %4238 = vmatmul.mubr.msk.bf16.gmra.mrb[20].mxu1 %vm682_vm2, %v5566_v48  ;;  %4402 = vmatmul.mubr.msk.bf16.gmra.mrb[4].mxu0 %vm682_vm2, %v6481_v18 }
 0x11c   : > { %4241 = vmatprep.mubr.msk.bf16.mxu1 %vm682_vm2, %v5570_v23  ;;  %4405 = vmatprep.mubr.msk.bf16.mxu0 %vm682_vm2, %v6482_v55 }
 0x123   : > { %4242 = vmatmul.mubr.msk.bf16.gmra.mrb[24].mxu1 %vm682_vm2, %v5574_v32  ;;  %4406 = vmatmul.mubr.msk.bf16.gmra.mrb[8].mxu0 %vm682_vm2, %v5444_v24  ;;  %v3851_v24 = vrot.slane %v5743_v61, 9 }
 0x124   : > { %4245 = vmatprep.mubr.msk.bf16.mxu1 %vm682_vm2, %v5584_v44  ;;  %4409 = vmatprep.mubr.msk.bf16.mxu0 %vm682_vm2, %v5475_v56  ;;  %v2775_v56 = vrot.slane %v2773_v30, 4 }
 0x12b   : > { %4246 = vmatmul.mubr.msk.bf16.gmra.mrb[28].mxu1 %vm682_vm2, %v5732_v2  ;;  %4410 = vmatmul.mubr.msk.bf16.gmra.mrb[12].mxu0 %vm682_vm2, %v5479_v1  ;;  %v2776_v1 = vrot.slane %v225_v43, 5 }
 0x12c   : > { %4269 = vmatprep.mubr.msk.bf16.mxu1 %vm682_vm2, %v6490_v31  ;;  %4413 = vmatprep.mubr.msk.bf16.mxu0 %vm682_vm2, %v5501_v42  ;;  %v2774_v42 = vsel %vm5191_vm6, %v3851_v24, %v2773_v30 }
 0x133   : > { %4270 = vmatmul.mubr.msk.bf16.vlgmr.msra.gmra.mrb[16].mxu1 %vm682_vm2, %v6491_v4  ;;  %4414 = vmatmul.mubr.msk.bf16.gmra.mrb[16].mxu0 %vm682_vm2, %v5510_v10  ;;  %v2777_v10 = vsel %vm5191_vm6, %v2775_v56, %v2776_v1 }
 0x134   : > { %4273 = vmatprep.mubr.msk.bf16.mxu1 %vm682_vm2, %v6492_v60  ;;  %4417 = vmatprep.mubr.msk.bf16.mxu0 %vm682_vm2, %v5553_v8  ;;  %v3856_v25 = vcombine.low %v2774_v42, %v2777_v10 }
 0x13b   : > { %4274 = vmatmul.mubr.msk.bf16.gmra.mrb[20].mxu1 %vm682_vm2, %v6493_v41  ;;  %4418 = vmatmul.mubr.msk.bf16.gmra.mrb[20].mxu0 %vm682_vm2, %v5580_v20 }
 0x13c   : > { %4277 = vmatprep.mubr.msk.bf16.mxu1 %vm682_vm2, %v6494_v15  ;;  %4421 = vmatprep.mubr.msk.bf16.mxu0 %vm682_vm2, %v5617_v58 }
 0x143   : > { %4278 = vmatmul.mubr.msk.bf16.gmra.mrb[24].mxu1 %vm682_vm2, %v5446_v16  ;;  %4422 = vmatmul.mubr.msk.bf16.gmra.mrb[24].mxu0 %vm682_vm2, %v5627_v13 }
 0x144   : > { %4281 = vmatprep.mubr.msk.bf16.mxu1 %vm682_vm2, %v5473_v62  ;;  %4425 = vmatprep.mubr.msk.bf16.mxu0 %vm682_vm2, %v5646_v53 }
 0x14b   : > { %4282 = vmatmul.mubr.msk.bf16.gmra.mrb[28].mxu1 %vm682_vm2, %v5652_v36  ;;  %4426 = vmatmul.mubr.msk.bf16.gmra.mrb[28].mxu0 %vm682_vm2, %v3856_v25  ;;  %v5911_v36 = vld [vmem:[%s6408_s2] ss:$0 sm:$0xff] }
 0x1c6   : > { %v4219_v16 = vpop.f32.mrb[0].mxu1 }
 0x1c7   : > { %v1689_v49 = vpop.f32.mrb[1].mxu1 }
 0x1c8   : > { %v4220_v8 = vpop.f32.mrb[2].mxu1 }
 0x1c9   : > { %v1692_v52 = vpop.f32.mrb[3].mxu1 }
 0x1ce   : > { %v4223_v62 = vpop.f32.mrb[4].mxu1 }
 0x1cf   : > { %v1705_v22 = vpop.f32.mrb[5].mxu1 }
 0x1d0   : > { %v4224_v48 = vpop.f32.mrb[6].mxu1 }
 0x1d1   : > { %v1708_v23 = vpop.f32.mrb[7].mxu1 }
 0x1d6   : > { %v4227_v32 = vpop.f32.mrb[8].mxu1 }
 0x1d7   : > { %v1721_v20 = vpop.f32.mrb[9].mxu1 }
 0x1d8   : > { %v4228_v44 = vpop.f32.mrb[10].mxu1 }
 0x1d9   : > { %v1724_v58 = vpop.f32.mrb[11].mxu1 }
 0x1de   : > { %v5900_v11 = vpop.f32.mrb[12].mxu1 }
 0x1df   : > { %v5902_v28 = vpop.f32.mrb[13].mxu1 }
 0x1e0   : > { %v5904_v13 = vpop.f32.mrb[14].mxu1 }
 0x1e1   : > { %v5906_v33 = vpop.f32.mrb[15].mxu1 }
 0x1e6   : > { %v4399_v53 = vpop.f32.mrb[0].mxu0 }
 0x1e7   : > { %v4433_v45 = vadd.f32 %v4399_v53, %v4219_v16  ;;  %v2835_v19 = vpop.f32.mrb[1].mxu0 }
 0x1e8   : > { %v4434_v54 = vadd.f32 %v2835_v19, %v1689_v49  ;;  %v4400_v2 = vpop.f32.mrb[2].mxu0 }
 0x1e9   : > { %v5914_v18 = vadd.f32 %v4433_v45, %v5911_v36  ;;  %v4435_v55 = vadd.f32 %v4400_v2, %v4220_v8  ;;  %v2838_v61 = vpop.f32.mrb[3].mxu0 }
 0x1ea   : > { %v4436_v6 = vadd.f32 %v2838_v61, %v1692_v52  ;;  %v5924_v35 = vadd.f32 %v4434_v54, %v5911_v36 }
 0x1eb   : > { %v5917_v7 = vadd.f32 %v4435_v55, %v5911_v36  ;;  %v3035_v29 = vmax.f32 %v5914_v18, 0.0 }
 0x1ec   : > { %v5920_v26 = vadd.f32 %v4436_v6, %v5911_v36  ;;  %v3033_v21 = vmax.f32 %v5924_v35, 0.0 }
 0x1ed   : > { %v3036_v50 = vmax.f32 %v5917_v7, 0.0 }
 0x1ee   : > { %v4403_v46 = vpop.f32.mrb[4].mxu0  ;;  %v3034_v17 = vmax.f32 %v5920_v26, 0.0 }
 0x1ef   : > { %v4437_v31 = vadd.f32 %v4403_v46, %v4223_v62  ;;  %v2851_v4 = vpop.f32.mrb[5].mxu0  ;;  %v4700_v60 = vpack.i.bf16 %v3036_v50, %v3035_v29 }
 0x1f0   : > { %v4438_v12 = vadd.f32 %v2851_v4, %v1705_v22  ;;  %v4404_v0 = vpop.f32.mrb[6].mxu0  ;;  %v4705_v5 = vpack.i.bf16 %v3034_v17, %v3033_v21 }
 0x1f1   : > { %v5934_v34 = vadd.f32 %v4437_v31, %v5911_v36  ;;  %v4439_v41 = vadd.f32 %v4404_v0, %v4224_v48  ;;  %v2854_v37 = vpop.f32.mrb[7].mxu0  ;;  %4701 = vrot.lane.b32.xlu0 %v4700_v60, %s4909_s8 }
 0x1f2   : > { %v4440_v59 = vadd.f32 %v2854_v37, %v1708_v23  ;;  %v5949_v15 = vadd.f32 %v4438_v12, %v5911_v36 }
 0x1f3   : > { %v5938_v3 = vadd.f32 %v4439_v41, %v5911_v36  ;;  %v3039_v43 = vmax.f32 %v5934_v34, 0.0 }
 0x1f4   : > { %v5945_v57 = vadd.f32 %v4440_v59, %v5911_v36  ;;  %v3037_v51 = vmax.f32 %v5949_v15, 0.0 }
 0x1f5   : > { %v3040_v38 = vmax.f32 %v5938_v3, 0.0  ;;  %4706 = vrot.lane.b32.xlu0 %v4705_v5, %s4909_s8 }
 0x1f6   : > { %v4407_v63 = vpop.f32.mrb[8].mxu0  ;;  %v3038_v9 = vmax.f32 %v5945_v57, 0.0 }
 0x1f7   : > { %v4441_v39 = vadd.f32 %v4407_v63, %v4227_v32  ;;  %v2867_v27 = vpop.f32.mrb[9].mxu0  ;;  %v4710_v14 = vpack.i.bf16 %v3040_v38, %v3039_v43 }
 0x1f8   : > { %v4442_v40 = vadd.f32 %v2867_v27, %v1721_v20  ;;  %v4408_v47 = vpop.f32.mrb[10].mxu0  ;;  %v4715_v25 = vpack.i.bf16 %v3038_v9, %v3037_v51 }
 0x1f9   : > { %v5960_v30 = vadd.f32 %v4441_v39, %v5911_v36  ;;  %v4443_v24 = vadd.f32 %v4408_v47, %v4228_v44  ;;  %v2870_v56 = vpop.f32.mrb[11].mxu0  ;;  %4711 = vrot.lane.b32.xlu1 %v4710_v14, %s4909_s8 }
 0x1fa   : > { %v5964_v1 = vadd.f32 %v4442_v40, %v5911_v36  ;;  %v4444_v42 = vadd.f32 %v2870_v56, %v1724_v58 }
 0x1fb   : > { %v5967_v10 = vadd.f32 %v4443_v24, %v5911_v36  ;;  %v3043_v49 = vmax.f32 %v5960_v30, 0.0 }
 0x1fc   : > { %v5974_v16 = vadd.f32 %v4444_v42, %v5911_v36  ;;  %v3041_v52 = vmax.f32 %v5964_v1, 0.0 }
 0x1fd   : > { %v3044_v8 = vmax.f32 %v5967_v10, 0.0  ;;  %4716 = vrot.lane.b32.xlu1 %v4715_v25, %s4909_s8 }
 0x1fe   : > { %v3042_v62 = vmax.f32 %v5974_v16, 0.0  ;;  %v4411_v22 = vpop.f32.mrb[12].mxu0 }
 0x1ff   : > { %v4445_v48 = vadd.f32 %v4411_v22, %v5900_v11  ;;  %v2883_v23 = vpop.f32.mrb[13].mxu0  ;;  %v4720_v32 = vpack.i.bf16 %v3044_v8, %v3043_v49 }
 0x200   : > { %v4446_v20 = vadd.f32 %v2883_v23, %v5902_v28  ;;  %v4412_v44 = vpop.f32.mrb[14].mxu0  ;;  %v4725_v58 = vpack.i.bf16 %v3042_v62, %v3041_v52 }
 0x201   : > { %v5992_v53 = vadd.f32 %v4445_v48, %v5911_v36  ;;  %v4447_v45 = vadd.f32 %v4412_v44, %v5904_v13  ;;  %v2886_v11 = vpop.f32.mrb[15].mxu0  ;;  %4721 = vrot.lane.b32.xlu1 %v4720_v32, %s4909_s8 }
 0x202   : > { %v5997_v19 = vadd.f32 %v4446_v20, %v5911_v36  ;;  %v4448_v54 = vadd.f32 %v2886_v11, %v5906_v33  ;;  %4726 = vrot.lane.b32.xlu0 %v4725_v58, %s4909_s8 }
 0x203   : > { %v6002_v28 = vadd.f32 %v4447_v45, %v5911_v36  ;;  %v3047_v55 = vmax.f32 %v5992_v53, 0.0 }
 0x204   : > { %v6005_v2 = vadd.f32 %v4448_v54, %v5911_v36  ;;  %v3045_v61 = vmax.f32 %v5997_v19, 0.0 }
 0x205   : > { %v3048_v13 = vmax.f32 %v6002_v28, 0.0 }
 0x206   : > { %v3046_v6 = vmax.f32 %v6005_v2, 0.0  ;;  %v4271_v46 = vpop.f32.mrb[16].mxu1  ;;  %v4415_v31 = vpop.f32.mrb[16].mxu0 }
 0x207   : > { %v4449_v4 = vadd.f32 %v4415_v31, %v4271_v46  ;;  %v1993_v33 = vpop.f32.mrb[17].mxu1  ;;  %v2899_v60 = vpop.f32.mrb[17].mxu0  ;;  %v4730_v12 = vpack.i.bf16 %v3048_v13, %v3047_v55 }
 0x208   : > { %v4450_v0 = vadd.f32 %v2899_v60, %v1993_v33  ;;  %v4272_v41 = vpop.f32.mrb[18].mxu1  ;;  %v4416_v37 = vpop.f32.mrb[18].mxu0  ;;  %v4735_v59 = vpack.i.bf16 %v3046_v6, %v3045_v61 }
 0x209   : > { %v6020_v5 = vadd.f32 %v4449_v4, %v5911_v36  ;;  %v4451_v63 = vadd.f32 %v4416_v37, %v4272_v41  ;;  %v2902_v39 = vpop.f32.mrb[19].mxu0  ;;  %4731 = vrot.lane.b32.xlu1 %v4730_v12, %s4909_s8  ;;  %v1996_v27 = vpop.f32.mrb[19].mxu1 }
 0x20a   : > { %v6024_v14 = vadd.f32 %v4450_v0, %v5911_v36  ;;  %v4452_v40 = vadd.f32 %v2902_v39, %v1996_v27  ;;  %4736 = vrot.lane.b32.xlu0 %v4735_v59, %s4909_s8 }
 0x20b   : > { %v6028_v47 = vadd.f32 %v4451_v63, %v5911_v36  ;;  %v3051_v56 = vmax.f32 %v6020_v5, 0.0 }
 0x20c   : > { %v6031_v24 = vadd.f32 %v4452_v40, %v5911_v36  ;;  %v6444_v25 = vmax.f32 %v6024_v14, 0.0 }
 0x20d   : > { %v3052_v42 = vmax.f32 %v6028_v47, 0.0 }
 0x20e   : > { %v6445_v22 = vmax.f32 %v6031_v24, 0.0  ;;  %v4275_v48 = vpop.f32.mrb[20].mxu1  ;;  %v4419_v23 = vpop.f32.mrb[20].mxu0 }
 0x20f   : > { %v4453_v32 = vadd.f32 %v4419_v23, %v4275_v48  ;;  %v2009_v20 = vpop.f32.mrb[21].mxu1  ;;  %v2915_v44 = vpop.f32.mrb[21].mxu0  ;;  %v4740_v58 = vpack.i.bf16 %v3052_v42, %v3051_v56 }
 0x210   : > { %v4454_v45 = vadd.f32 %v2915_v44, %v2009_v20  ;;  %v4276_v11 = vpop.f32.mrb[22].mxu1  ;;  %v4420_v54 = vpop.f32.mrb[22].mxu0  ;;  %v4745_v46 = vpack.i.bf16 %v6445_v22, %v6444_v25 }
 0x211   : > { %v6046_v31 = vadd.f32 %v4453_v32, %v5911_v36  ;;  %v4455_v4 = vadd.f32 %v4420_v54, %v4276_v11  ;;  %v2918_v33 = vpop.f32.mrb[23].mxu0  ;;  %4741 = vrot.lane.b32.xlu1 %v4740_v58, %s4909_s8  ;;  %v2012_v60 = vpop.f32.mrb[23].mxu1 }
 0x212   : > { %v6050_v12 = vadd.f32 %v4454_v45, %v5911_v36  ;;  %v4456_v0 = vadd.f32 %v2918_v33, %v2012_v60  ;;  %4746 = vrot.lane.b32.xlu0 %v4745_v46, %s4909_s8 }
 0x213   : > { %v6054_v41 = vadd.f32 %v4455_v4, %v5911_v36  ;;  %v6442_v59 = vmax.f32 %v6046_v31, 0.0 }
 0x214   : > { %v6057_v37 = vadd.f32 %v4456_v0, %v5911_v36  ;;  %v6440_v39 = vmax.f32 %v6050_v12, 0.0 }
 0x215   : > { %v6443_v63 = vmax.f32 %v6054_v41, 0.0 }
 0x216   : > { %v6441_v27 = vmax.f32 %v6057_v37, 0.0  ;;  %v4279_v40 = vpop.f32.mrb[24].mxu1  ;;  %v4423_v48 = vpop.f32.mrb[24].mxu0 }
 0x217   : > { %v4457_v23 = vadd.f32 %v4423_v48, %v4279_v40  ;;  %v2025_v32 = vpop.f32.mrb[25].mxu1  ;;  %v2931_v20 = vpop.f32.mrb[25].mxu0  ;;  %v4750_v44 = vpack.i.bf16 %v6443_v63, %v6442_v59 }
 0x218   : > { %v4458_v58 = vadd.f32 %v2931_v20, %v2025_v32  ;;  %v4280_v45 = vpop.f32.mrb[26].mxu1  ;;  %v4424_v11 = vpop.f32.mrb[26].mxu0  ;;  %v4755_v54 = vpack.i.bf16 %v6441_v27, %v6440_v39 }
 0x219   : > { %v6072_v46 = vadd.f32 %v4457_v23, %v5911_v36  ;;  %v4459_v4 = vadd.f32 %v4424_v11, %v4280_v45  ;;  %v2934_v33 = vpop.f32.mrb[27].mxu0  ;;  %4751 = vrot.lane.b32.xlu1 %v4750_v44, %s4909_s8  ;;  %v2028_v60 = vpop.f32.mrb[27].mxu1 }
 0x21a   : > { %v6076_v0 = vadd.f32 %v4458_v58, %v5911_v36  ;;  %v4460_v40 = vadd.f32 %v2934_v33, %v2028_v60  ;;  %4756 = vrot.lane.b32.xlu0 %v4755_v54, %s4909_s8 }
 0x21b   : > { %v6080_v48 = vadd.f32 %v4459_v4, %v5911_v36  ;;  %v6446_v23 = vmax.f32 %v6072_v46, 0.0 }
 0x21c   : > { %v6083_v32 = vadd.f32 %v4460_v40, %v5911_v36  ;;  %v6449_v45 = vmax.f32 %v6076_v0, 0.0 }
 0x21d   : > { %v3060_v20 = vmax.f32 %v6080_v48, 0.0 }
 0x21e   : > { %v3058_v44 = vmax.f32 %v6083_v32, 0.0  ;;  %v4283_v11 = vpop.f32.mrb[28].mxu1  ;;  %v4427_v58 = vpop.f32.mrb[28].mxu0 }
 0x21f   : > { %v4461_v39 = vadd.f32 %v4427_v58, %v4283_v11  ;;  %v2041_v33 = vpop.f32.mrb[29].mxu1  ;;  %v2947_v60 = vpop.f32.mrb[29].mxu0  ;;  %v4760_v54 = vpack.i.bf16 %v3060_v20, %v6446_v23 }
 0x220   : > { %v4462_v4 = vadd.f32 %v2947_v60, %v2041_v33  ;;  %v4284_v40 = vpop.f32.mrb[30].mxu1  ;;  %v4428_v27 = vpop.f32.mrb[30].mxu0  ;;  %v4765_v59 = vpack.i.bf16 %v3058_v44, %v6449_v45 }
 0x221   : > { %v6098_v63 = vadd.f32 %v4461_v39, %v5911_v36  ;;  %v4463_v25 = vadd.f32 %v4428_v27, %v4284_v40  ;;  %v2950_v11 = vpop.f32.mrb[31].mxu0  ;;  %4761 = vrot.lane.b32.xlu1 %v4760_v54, %s4909_s8  ;;  %v2044_v58 = vpop.f32.mrb[31].mxu1 }
 0x222   : > { %v6102_v22 = vadd.f32 %v4462_v4, %v5911_v36  ;;  %v4464_v23 = vadd.f32 %v2950_v11, %v2044_v58  ;;  %4766 = vrot.lane.b32.xlu0 %v4765_v59, %s4909_s8 }
 0x223   : > { %v6106_v33 = vadd.f32 %v4463_v25, %v5911_v36  ;;  %v6447_v39 = vmax.f32 %v6098_v63, 0.0 }
 0x224   : > { %v6109_v60 = vadd.f32 %v4464_v23, %v5911_v36  ;;  %v6450_v40 = vmax.f32 %v6102_v22, 0.0 }
 0x225   : > { %v6448_v27 = vmax.f32 %v6106_v33, 0.0 }
 0x226   : > { %v3062_v54 = vmax.f32 %v6109_v60, 0.0 }
 0x227   : > { %v4775_v4 = vpack.i.bf16 %v6448_v27, %v6447_v39 }
 0x228   : > { %v4770_v25 = vpack.i.bf16 %v3062_v54, %v6450_v40 }
 0x229   : > { %4776 = vrot.lane.b32.xlu1 %v4775_v4, %s4909_s8 }
 0x22a   : > { %4771 = vrot.lane.b32.xlu0 %v4770_v25, %s4909_s8 }
 0x263   : > { %v4702_v36 = vpop.permute.xlu0 %4701 }
 0x264   : > { %v4704_v59 = vunpack.i.h.bf16 %v4702_v36  ;;  %v4703_v23 = vunpack.i.l.bf16 %v4702_v36 }
 0x266   : > { %v6127_v11 = vmax.f32 %v3036_v50, %v4704_v59  ;;  %v6131_v58 = vmax.f32 %v3035_v29, %v4703_v23 }
 0x267   : > { %v4707_v39 = vpop.permute.xlu0 %4706 }
 0x268   : > { %v4709_v27 = vunpack.i.h.bf16 %v4707_v39  ;;  %v4708_v45 = vunpack.i.l.bf16 %v4707_v39  ;;  %v4780_v40 = vpack.i.bf16 %v6127_v11, %v6131_v58 }
 0x26a   : > { %v6137_v4 = vmax.f32 %v3034_v17, %v4709_v27  ;;  %v6141_v25 = vmax.f32 %v3033_v21, %v4708_v45  ;;  %4781 = vrot.lane.b32.xlu1 %v4780_v40, %s4910_s9 }
 0x26b   : > { %v4712_v18 = vpop.permute.xlu1 %4711 }
 0x26c   : > { %v4714_v7 = vunpack.i.h.bf16 %v4712_v18  ;;  %v4713_v29 = vunpack.i.l.bf16 %v4712_v18  ;;  %v4785_v50 = vpack.i.bf16 %v6137_v4, %v6141_v25 }
 0x26e   : > { %v6148_v39 = vmax.f32 %v3040_v38, %v4714_v7  ;;  %v6152_v26 = vmax.f32 %v3039_v43, %v4713_v29  ;;  %4786 = vrot.lane.b32.xlu0 %v4785_v50, %s4910_s9 }
 0x26f   : > { %v4717_v35 = vpop.permute.xlu1 %4716 }
 0x270   : > { %v4719_v17 = vunpack.i.h.bf16 %v4717_v35  ;;  %v4718_v21 = vunpack.i.l.bf16 %v4717_v35  ;;  %v4790_v45 = vpack.i.bf16 %v6148_v39, %v6152_v26 }
 0x272   : > { %v6159_v27 = vmax.f32 %v3038_v9, %v4719_v17  ;;  %v6163_v3 = vmax.f32 %v3037_v51, %v4718_v21  ;;  %4791 = vrot.lane.b32.xlu1 %v4790_v45, %s4910_s9  ;;  %v6495_v21 = vmax.f32 %v6031_v24, 0.0 }
 0x273   : > { %v4722_v34 = vpop.permute.xlu1 %4721 }
 0x274   : > { %v4724_v43 = vunpack.i.h.bf16 %v4722_v34  ;;  %v4723_v38 = vunpack.i.l.bf16 %v4722_v34  ;;  %v4727_v40 = vpop.permute.xlu0 %4726  ;;  %v4795_v36 = vpack.i.bf16 %v6159_v27, %v6163_v3  ;;  %v6496_v34 = vmax.f32 %v6024_v14, 0.0 }
 0x275   : > { %v4729_v59 = vunpack.i.h.bf16 %v4727_v40  ;;  %v4728_v23 = vunpack.i.l.bf16 %v4727_v40  ;;  %v6497_v14 = vmax.f32 %v6054_v41, 0.0 }
 0x276   : > { %v6170_v57 = vmax.f32 %v3044_v8, %v4724_v43  ;;  %v6174_v15 = vmax.f32 %v3043_v49, %v4723_v38  ;;  %4796 = vrot.lane.b32.xlu0 %v4795_v36, %s4910_s9 }
 0x277   : > { %v6179_v9 = vmax.f32 %v3042_v62, %v4729_v59  ;;  %v6183_v51 = vmax.f32 %v3041_v52, %v4728_v23  ;;  %v6498_v23 = vmax.f32 %v6046_v31, 0.0 }
 0x278   : > { %v4800_v18 = vpack.i.bf16 %v6170_v57, %v6174_v15 }
 0x279   : > { %v4805_v10 = vpack.i.bf16 %v6179_v9, %v6183_v51 }
 0x27a   : > { %4801 = vrot.lane.b32.xlu1 %v4800_v18, %s4910_s9 }
 0x27b   : > { %v4732_v30 = vpop.permute.xlu1 %4731  ;;  %4806 = vrot.lane.b32.xlu0 %v4805_v10, %s4910_s9  ;;  %v6499_v10 = vmax.f32 %v6057_v37, 0.0 }
 0x27c   : > { %v4734_v49 = vunpack.i.h.bf16 %v4732_v30  ;;  %v4733_v8 = vunpack.i.l.bf16 %v4732_v30  ;;  %v4737_v16 = vpop.permute.xlu0 %4736 }
 0x27d   : > { %v4739_v62 = vunpack.i.h.bf16 %v4737_v16  ;;  %v4738_v7 = vunpack.i.l.bf16 %v4737_v16 }
 0x27e   : > { %v6193_v1 = vmax.f32 %v3048_v13, %v4734_v49  ;;  %v6197_v52 = vmax.f32 %v3047_v55, %v4733_v8  ;;  %v6500_v49 = vmax.f32 %v6050_v12, 0.0 }
 0x27f   : > { %v6201_v29 = vmax.f32 %v3046_v6, %v4739_v62  ;;  %v6205_v50 = vmax.f32 %v3045_v61, %v4738_v7 }
 0x280   : > { %v4810_v35 = vpack.i.bf16 %v6193_v1, %v6197_v52 }
 0x281   : > { %v4815_v28 = vpack.i.bf16 %v6201_v29, %v6205_v50 }
 0x282   : > { %4811 = vrot.lane.b32.xlu1 %v4810_v35, %s4910_s9 }
 0x283   : > { %v4742_v13 = vpop.permute.xlu1 %4741  ;;  %4816 = vrot.lane.b32.xlu0 %v4815_v28, %s4910_s9 }
 0x284   : > { %v4744_v53 = vunpack.i.h.bf16 %v4742_v13  ;;  %v4743_v55 = vunpack.i.l.bf16 %v4742_v13  ;;  %v4747_v2 = vpop.permute.xlu0 %4746  ;;  %v6501_v13 = vmax.f32 %v6072_v46, 0.0 }
 0x285   : > { %v4749_v6 = vunpack.i.h.bf16 %v4747_v2  ;;  %v4748_v17 = vunpack.i.l.bf16 %v4747_v2  ;;  %v6502_v2 = vmax.f32 %v6076_v0, 0.0  ;;  %v6503_v0 = vmax.f32 %v6106_v33, 0.0 }
 0x286   : > { %v6215_v19 = vmax.f32 %v3052_v42, %v4744_v53  ;;  %v6219_v61 = vmax.f32 %v3051_v56, %v4743_v55 }
 0x287   : > { %v6223_v45 = vmax.f32 %v6495_v21, %v4749_v6  ;;  %v6227_v43 = vmax.f32 %v6496_v34, %v4748_v17 }
 0x288   : > { %v4820_v38 = vpack.i.bf16 %v6215_v19, %v6219_v61 }
 0x289   : > { %v4825_v47 = vpack.i.bf16 %v6223_v45, %v6227_v43 }
 0x28a   : > { %4821 = vrot.lane.b32.xlu1 %v4820_v38, %s4910_s9 }
 0x28b   : > { %v4752_v42 = vpop.permute.xlu1 %4751  ;;  %4826 = vrot.lane.b32.xlu0 %v4825_v47, %s4910_s9  ;;  %v6504_v47 = vmax.f32 %v6098_v63, 0.0 }
 0x28c   : > { %v4754_v5 = vunpack.i.h.bf16 %v4752_v42  ;;  %v4753_v56 = vunpack.i.l.bf16 %v4752_v42  ;;  %v4757_v24 = vpop.permute.xlu0 %4756 }
 0x28d   : > { %v4759_v40 = vunpack.i.h.bf16 %v4757_v24  ;;  %v4758_v36 = vunpack.i.l.bf16 %v4757_v24 }
 0x28e   : > { %v6237_v59 = vmax.f32 %v6497_v14, %v4754_v5  ;;  %v6241_v18 = vmax.f32 %v6498_v23, %v4753_v56  ;;  %v6505_v56 = vmax.f32 %v6102_v22, 0.0 }
 0x28f   : > { %v6245_v30 = vmax.f32 %v6499_v10, %v4759_v40  ;;  %v6249_v8 = vmax.f32 %v6500_v49, %v4758_v36 }
 0x290   : > { %v4830_v16 = vpack.i.bf16 %v6237_v59, %v6241_v18 }
 0x291   : > { %v4835_v41 = vpack.i.bf16 %v6245_v30, %v6249_v8 }
 0x292   : > { %4831 = vrot.lane.b32.xlu1 %v4830_v16, %s4910_s9 }
 0x293   : > { %v4762_v62 = vpop.permute.xlu1 %4761  ;;  %4836 = vrot.lane.b32.xlu0 %v4835_v41, %s4910_s9 }
 0x294   : > { %v4764_v31 = vunpack.i.h.bf16 %v4762_v62  ;;  %v4763_v7 = vunpack.i.l.bf16 %v4762_v62  ;;  %v4767_v37 = vpop.permute.xlu0 %4766 }
 0x295   : > { %v4769_v35 = vunpack.i.h.bf16 %v4767_v37  ;;  %v4768_v28 = vunpack.i.l.bf16 %v4767_v37 }
 0x296   : > { %v6259_v12 = vmax.f32 %v3060_v20, %v4764_v31  ;;  %v6263_v53 = vmax.f32 %v6501_v13, %v4763_v7 }
 0x297   : > { %v6267_v55 = vmax.f32 %v3058_v44, %v4769_v35  ;;  %v6271_v6 = vmax.f32 %v6502_v2, %v4768_v28 }
 0x298   : > { %v4840_v17 = vpack.i.bf16 %v6259_v12, %v6263_v53 }
 0x299   : > { %v4845_v48 = vpack.i.bf16 %v6267_v55, %v6271_v6 }
 0x29a   : > { %4841 = vrot.lane.b32.xlu1 %v4840_v17, %s4910_s9 }
 0x29b   : > { %v4777_v20 = vpop.permute.xlu1 %4776  ;;  %4846 = vrot.lane.b32.xlu0 %v4845_v48, %s4910_s9 }
 0x29c   : > { %v4779_v46 = vunpack.i.h.bf16 %v4777_v20  ;;  %v4778_v32 = vunpack.i.l.bf16 %v4777_v20  ;;  %v4772_v44 = vpop.permute.xlu0 %4771 }
 0x29d   : > { %v4774_v21 = vunpack.i.h.bf16 %v4772_v44  ;;  %v4773_v34 = vunpack.i.l.bf16 %v4772_v44 }
 0x29e   : > { %v6281_v38 = vmax.f32 %v6503_v0, %v4779_v46  ;;  %v6285_v42 = vmax.f32 %v6504_v47, %v4778_v32 }
 0x29f   : > { %v6289_v5 = vmax.f32 %v3062_v54, %v4774_v21  ;;  %v6293_v24 = vmax.f32 %v6505_v56, %v4773_v34 }
 0x2a0   : > { %v4855_v40 = vpack.i.bf16 %v6281_v38, %v6285_v42 }
 0x2a1   : > { %v4850_v33 = vpack.i.bf16 %v6289_v5, %v6293_v24 }
 0x2a2   : > { %4856 = vrot.lane.b32.xlu1 %v4855_v40, %s4910_s9 }
 0x2a3   : > { %4851 = vrot.lane.b32.xlu0 %v4850_v33, %s4910_s9 }
 0x2dc   : > { %v4782_v63 = vpop.permute.xlu1 %4781 }
 0x2dd   : > { %v4784_v36 = vunpack.i.h.bf16 %v4782_v63  ;;  %v4783_v60 = vunpack.i.l.bf16 %v4782_v63 }
 0x2df   : > { %v3356_v54 = vmax.f32 %v6127_v11, %v4784_v36  ;;  %v3355_v22 = vmax.f32 %v6131_v58, %v4783_v60 }
 0x2e0   : > { %v4787_v14 = vpop.permute.xlu0 %4786 }
 0x2e1   : > { %v3914_v23 = vpack.c.bf16 %v3356_v54, %v3356_v54  ;;  %v3913_v10 = vpack.c.bf16 %v3355_v22, %v3355_v22  ;;  %v4789_v49 = vunpack.i.h.bf16 %v4787_v14  ;;  %v4788_v16 = vunpack.i.l.bf16 %v4787_v14 }
 0x2e3   : > { %3517 = vst.msk [vmem:[%s6307_s15 + $0xc] sm:$0xf] %vm3513_vm7, %v3914_v23  ;;  %3516 = vst.msk [vmem:[%s6307_s15 + $0x8] sm:$0xf] %vm3513_vm7, %v3913_v10  ;;  %v3354_v11 = vmax.f32 %v6137_v4, %v4789_v49  ;;  %v3353_v58 = vmax.f32 %v6141_v25, %v4788_v16 }
 0x2e4   : > { %v4792_v41 = vpop.permute.xlu1 %4791 }
 0x2e5   : > { %v3912_v62 = vpack.c.bf16 %v3354_v11, %v3354_v11  ;;  %v3911_v31 = vpack.c.bf16 %v3353_v58, %v3353_v58  ;;  %v4794_v7 = vunpack.i.h.bf16 %v4792_v41  ;;  %v4793_v37 = vunpack.i.l.bf16 %v4792_v41 }
 0x2e7   : > { %3515 = vst.msk [vmem:[%s6307_s15 + $0x4] sm:$0xf] %vm3513_vm7, %v3912_v62  ;;  %3514 = vst.msk [vmem:[%s6307_s15] sm:$0xf] %vm3513_vm7, %v3911_v31  ;;  %v3360_v35 = vmax.f32 %v6148_v39, %v4794_v7  ;;  %v3359_v28 = vmax.f32 %v6152_v26, %v4793_v37 }
 0x2e8   : > { %v4797_v13 = vpop.permute.xlu0 %4796 }
 0x2e9   : > { %v3918_v2 = vpack.c.bf16 %v3360_v35, %v3360_v35  ;;  %v3917_v4 = vpack.c.bf16 %v3359_v28, %v3359_v28  ;;  %v4799_v25 = vunpack.i.h.bf16 %v4797_v13  ;;  %v4798_v17 = vunpack.i.l.bf16 %v4797_v13 }
 0x2eb   : > { %3521 = vst.msk [vmem:[%s6307_s15 + $0x1c] sm:$0xf] %vm3513_vm7, %v3918_v2  ;;  %3520 = vst.msk [vmem:[%s6307_s15 + $0x18] sm:$0xf] %vm3513_vm7, %v3917_v4  ;;  %v3358_v48 = vmax.f32 %v6159_v27, %v4799_v25  ;;  %v3357_v20 = vmax.f32 %v6163_v3, %v4798_v17 }
 0x2ec   : > { %v4802_v46 = vpop.permute.xlu1 %4801 }
 0x2ed   : > { %v3916_v32 = vpack.c.bf16 %v3358_v48, %v3358_v48  ;;  %v3915_v39 = vpack.c.bf16 %v3357_v20, %v3357_v20  ;;  %v4804_v26 = vunpack.i.h.bf16 %v4802_v46  ;;  %v4803_v44 = vunpack.i.l.bf16 %v4802_v46  ;;  %v4807_v21 = vpop.permute.xlu0 %4806 }
 0x2ee   : > { %v4809_v34 = vunpack.i.h.bf16 %v4807_v21  ;;  %v4808_v0 = vunpack.i.l.bf16 %v4807_v21 }
 0x2ef   : > { %3519 = vst.msk [vmem:[%s6307_s15 + $0x14] sm:$0xf] %vm3513_vm7, %v3916_v32  ;;  %3518 = vst.msk [vmem:[%s6307_s15 + $0x10] sm:$0xf] %vm3513_vm7, %v3915_v39  ;;  %v3364_v27 = vmax.f32 %v6170_v57, %v4804_v26  ;;  %v3363_v3 = vmax.f32 %v6174_v15, %v4803_v44 }
 0x2f0   : > { %v3362_v47 = vmax.f32 %v6179_v9, %v4809_v34  ;;  %v3361_v56 = vmax.f32 %v6183_v51, %v4808_v0 }
 0x2f1   : > { %v3922_v40 = vpack.c.bf16 %v3364_v27, %v3364_v27  ;;  %v3921_v33 = vpack.c.bf16 %v3363_v3, %v3363_v3 }
 0x2f2   : > { %v3920_v63 = vpack.c.bf16 %v3362_v47, %v3362_v47  ;;  %v3919_v36 = vpack.c.bf16 %v3361_v56, %v3361_v56 }
 0x2f3   : > { %3525 = vst.msk [vmem:[%s6307_s15 + $0x2c] sm:$0xf] %vm3513_vm7, %v3922_v40  ;;  %3524 = vst.msk [vmem:[%s6307_s15 + $0x28] sm:$0xf] %vm3513_vm7, %v3921_v33 }
 0x2f4   : > { %3523 = vst.msk [vmem:[%s6307_s15 + $0x24] sm:$0xf] %vm3513_vm7, %v3920_v63  ;;  %3522 = vst.msk [vmem:[%s6307_s15 + $0x20] sm:$0xf] %vm3513_vm7, %v3919_v36  ;;  %v4812_v57 = vpop.permute.xlu1 %4811 }
 0x2f5   : > { %v4814_v15 = vunpack.i.h.bf16 %v4812_v57  ;;  %v4813_v9 = vunpack.i.l.bf16 %v4812_v57  ;;  %v4817_v51 = vpop.permute.xlu0 %4816 }
 0x2f6   : > { %v4819_v60 = vunpack.i.h.bf16 %v4817_v51  ;;  %v4818_v54 = vunpack.i.l.bf16 %v4817_v51 }
 0x2f7   : > { %v3368_v22 = vmax.f32 %v6193_v1, %v4814_v15  ;;  %v3367_v14 = vmax.f32 %v6197_v52, %v4813_v9 }
 0x2f8   : > { %v3366_v23 = vmax.f32 %v6201_v29, %v4819_v60  ;;  %v3365_v10 = vmax.f32 %v6205_v50, %v4818_v54 }
 0x2f9   : > { %v3926_v49 = vpack.c.bf16 %v3368_v22, %v3368_v22  ;;  %v3925_v16 = vpack.c.bf16 %v3367_v14, %v3367_v14 }
 0x2fa   : > { %v3924_v11 = vpack.c.bf16 %v3366_v23, %v3366_v23  ;;  %v3923_v58 = vpack.c.bf16 %v3365_v10, %v3365_v10 }
 0x2fb   : > { %3529 = vst.msk [vmem:[%s6307_s15 + $0x3c] sm:$0xf] %vm3513_vm7, %v3926_v49  ;;  %3528 = vst.msk [vmem:[%s6307_s15 + $0x38] sm:$0xf] %vm3513_vm7, %v3925_v16 }
 0x2fc   : > { %3527 = vst.msk [vmem:[%s6307_s15 + $0x34] sm:$0xf] %vm3513_vm7, %v3924_v11  ;;  %3526 = vst.msk [vmem:[%s6307_s15 + $0x30] sm:$0xf] %vm3513_vm7, %v3923_v58  ;;  %v4822_v1 = vpop.permute.xlu1 %4821 }
 0x2fd   : > { %v4824_v52 = vunpack.i.h.bf16 %v4822_v1  ;;  %v4823_v29 = vunpack.i.l.bf16 %v4822_v1  ;;  %v4827_v50 = vpop.permute.xlu0 %4826 }
 0x2fe   : > { %v4829_v41 = vunpack.i.h.bf16 %v4827_v50  ;;  %v4828_v62 = vunpack.i.l.bf16 %v4827_v50 }
 0x2ff   : > { %v3372_v31 = vmax.f32 %v6215_v19, %v4824_v52  ;;  %v3371_v7 = vmax.f32 %v6219_v61, %v4823_v29 }
 0x300   : > { %v3370_v37 = vmax.f32 %v6223_v45, %v4829_v41  ;;  %v3369_v35 = vmax.f32 %v6227_v43, %v4828_v62 }
 0x301   : > { %v3930_v28 = vpack.c.bf16 %v3372_v31, %v3372_v31  ;;  %v3929_v13 = vpack.c.bf16 %v3371_v7, %v3371_v7 }
 0x302   : > { %v3928_v2 = vpack.c.bf16 %v3370_v37, %v3370_v37  ;;  %v3927_v4 = vpack.c.bf16 %v3369_v35, %v3369_v35 }
 0x303   : > { %3533 = vst.msk [vmem:[%s6307_s15 + $0x4c] sm:$0xf] %vm3513_vm7, %v3930_v28  ;;  %3532 = vst.msk [vmem:[%s6307_s15 + $0x48] sm:$0xf] %vm3513_vm7, %v3929_v13 }
 0x304   : > { %3531 = vst.msk [vmem:[%s6307_s15 + $0x44] sm:$0xf] %vm3513_vm7, %v3928_v2  ;;  %3530 = vst.msk [vmem:[%s6307_s15 + $0x40] sm:$0xf] %vm3513_vm7, %v3927_v4  ;;  %v4832_v19 = vpop.permute.xlu1 %4831 }
 0x305   : > { %v4834_v61 = vunpack.i.h.bf16 %v4832_v19  ;;  %v4833_v45 = vunpack.i.l.bf16 %v4832_v19  ;;  %v4837_v43 = vpop.permute.xlu0 %4836 }
 0x306   : > { %v4839_v25 = vunpack.i.h.bf16 %v4837_v43  ;;  %v4838_v17 = vunpack.i.l.bf16 %v4837_v43 }
 0x307   : > { %v3376_v48 = vmax.f32 %v6237_v59, %v4834_v61  ;;  %v3375_v20 = vmax.f32 %v6241_v18, %v4833_v45 }
 0x308   : > { %v3374_v46 = vmax.f32 %v6245_v30, %v4839_v25  ;;  %v3373_v32 = vmax.f32 %v6249_v8, %v4838_v17 }
 0x309   : > { %v3934_v39 = vpack.c.bf16 %v3376_v48, %v3376_v48  ;;  %v3933_v26 = vpack.c.bf16 %v3375_v20, %v3375_v20 }
 0x30a   : > { %v3932_v44 = vpack.c.bf16 %v3374_v46, %v3374_v46  ;;  %v3931_v21 = vpack.c.bf16 %v3373_v32, %v3373_v32 }
 0x30b   : > { %3537 = vst.msk [vmem:[%s6307_s15 + $0x5c] sm:$0xf] %vm3513_vm7, %v3934_v39  ;;  %3536 = vst.msk [vmem:[%s6307_s15 + $0x58] sm:$0xf] %vm3513_vm7, %v3933_v26 }
 0x30c   : > { %3535 = vst.msk [vmem:[%s6307_s15 + $0x54] sm:$0xf] %vm3513_vm7, %v3932_v44  ;;  %3534 = vst.msk [vmem:[%s6307_s15 + $0x50] sm:$0xf] %vm3513_vm7, %v3931_v21  ;;  %v4842_v59 = vpop.permute.xlu1 %4841 }
 0x30d   : > { %v4844_v18 = vunpack.i.h.bf16 %v4842_v59  ;;  %v4843_v30 = vunpack.i.l.bf16 %v4842_v59  ;;  %v4847_v8 = vpop.permute.xlu0 %4846 }
 0x30e   : > { %v4849_v34 = vunpack.i.h.bf16 %v4847_v8  ;;  %v4848_v0 = vunpack.i.l.bf16 %v4847_v8 }
 0x30f   : > { %v3380_v27 = vmax.f32 %v6259_v12, %v4844_v18  ;;  %v3379_v3 = vmax.f32 %v6263_v53, %v4843_v30 }
 0x310   : > { %v3378_v47 = vmax.f32 %v6267_v55, %v4849_v34  ;;  %v3377_v56 = vmax.f32 %v6271_v6, %v4848_v0 }
 0x311   : > { %v3938_v40 = vpack.c.bf16 %v3380_v27, %v3380_v27  ;;  %v3937_v33 = vpack.c.bf16 %v3379_v3, %v3379_v3 }
 0x312   : > { %v3936_v63 = vpack.c.bf16 %v3378_v47, %v3378_v47  ;;  %v3935_v36 = vpack.c.bf16 %v3377_v56, %v3377_v56 }
 0x313   : > { %3541 = vst.msk [vmem:[%s6307_s15 + $0x6c] sm:$0xf] %vm3513_vm7, %v3938_v40  ;;  %3540 = vst.msk [vmem:[%s6307_s15 + $0x68] sm:$0xf] %vm3513_vm7, %v3937_v33 }
 0x314   : > { %3539 = vst.msk [vmem:[%s6307_s15 + $0x64] sm:$0xf] %vm3513_vm7, %v3936_v63  ;;  %3538 = vst.msk [vmem:[%s6307_s15 + $0x60] sm:$0xf] %vm3513_vm7, %v3935_v36  ;;  %v4857_v12 = vpop.permute.xlu1 %4856 }
 0x315   : > { %v4859_v53 = vunpack.i.h.bf16 %v4857_v12  ;;  %v4858_v55 = vunpack.i.l.bf16 %v4857_v12  ;;  %v4852_v6 = vpop.permute.xlu0 %4851 }
 0x316   : > { %v4854_v57 = vunpack.i.h.bf16 %v4852_v6  ;;  %v4853_v15 = vunpack.i.l.bf16 %v4852_v6 }
 0x317   : > { %v3384_v9 = vmax.f32 %v6281_v38, %v4859_v53  ;;  %v3383_v51 = vmax.f32 %v6285_v42, %v4858_v55 }
 0x318   : > { %v3382_v60 = vmax.f32 %v6289_v5, %v4854_v57  ;;  %v3381_v54 = vmax.f32 %v6293_v24, %v4853_v15 }
 0x319   : > { %v3942_v22 = vpack.c.bf16 %v3384_v9, %v3384_v9  ;;  %v3941_v14 = vpack.c.bf16 %v3383_v51, %v3383_v51 }
 0x31a   : > { %v3940_v23 = vpack.c.bf16 %v3382_v60, %v3382_v60  ;;  %v3939_v10 = vpack.c.bf16 %v3381_v54, %v3381_v54 }
 0x31b   : > { %3545 = vst.msk [vmem:[%s6307_s15 + $0x7c] sm:$0xf] %vm3513_vm7, %v3942_v22  ;;  %3544 = vst.msk [vmem:[%s6307_s15 + $0x78] sm:$0xf] %vm3513_vm7, %v3941_v14 }
 0x31c   : > { %3543 = vst.msk [vmem:[%s6307_s15 + $0x74] sm:$0xf] %vm3513_vm7, %v3940_v23  ;;  %3542 = vst.msk [vmem:[%s6307_s15 + $0x70] sm:$0xf] %vm3513_vm7, %v3939_v10 }
 0x31d PF: > { %s13_s12 = sadd.s32 1, %s4907_s12  }
 0x31e   : > { %p10_p4 = scmp.ge.s32.totalorder %s13_s12, 4  }
 0x320   :  { %12 = sbr.rel (!%p10_p4) target bundleno = 1 (0x1), region = 70 }

// kernel: net_forward.5
= control target key start
LH: loop header
LB: loop body
LE: loop exit
PB: predicated region body
PF: predicated region fallthrough
CT: control target
= control target key end

     0   :  { %s2697_s12 = smov 0   ;;  %s3228_s0 = inlined_call_operand.vmem [shape: bf16[2,10,10,128], index: 0, kind: input, shape index: {}]   ;;  %s3229_s1 = inlined_call_operand.vmem [shape: bf16[9,128,128], index: 1, kind: input, shape index: {}]   ;;  %s3230_s2 = inlined_call_operand.vmem [shape: f32[1,128], index: 2, kind: input, shape index: {}]   ;;  %s3231_s3 = inlined_call_operand.vmem [shape: bf16[2,8,8,32], index: 3, kind: output, shape index: {}]  }
   0x1 LB: > { %s1882_s13 = sadd.s32 4294967295, %s2673_s12   ;;  %p1886_p0 = scmp.ge.s32.totalorder %s2673_s12, 1  ;;  %s2673_s12 = sphi %s2697_s12, %s13_s12  }
   0x2   : > { %p137_p1 = scmp.lt.s32.totalorder %s2673_s12, 3 }
   0x4   : > { %p138_p2 = pnand %p1886_p0, %p137_p1 }
   0x5   : > { %v2586_v0 = vld [vmem:[%s3229_s1 + $0x40] sm:$0xff] (!%p138_p2)   ;;  %p161_p3 = scmp.lt.s32.totalorder (!%p138_p2), %s1882_s13, 1  ;;  %v2588_v2 = vld [vmem:[%s3229_s1 + $0x48] sm:$0xff] (!%p138_p2)   ;;  %v2590_v4 = vld [vmem:[%s3229_s1 + $0x50] sm:$0xff] (!%p138_p2)   ;;  %vm208_vm0 = vsmask.f32 (!%p138_p2), 3328 }
   0x6   : > { %141 = sbr.rel (%p138_p2) target bundleno = 642 (0x282), region = 32  ;;  %v2587_v1 = vld [vmem:[%s3229_s1 + $0x100] sm:$0xff] (!%p138_p2)   ;;  %2239 = vmatprep.subr.bf16.mxu1 (!%p138_p2), %v2586_v0  ;;  %v2589_v3 = vld [vmem:[%s3229_s1 + $0x108] sm:$0xff] (!%p138_p2)   ;;  %v2591_v5 = vld [vmem:[%s3229_s1 + $0x110] sm:$0xff] (!%p138_p2)   ;;  %vm209_vm1 = vsmask.f32 (!%p138_p2), 7440 }
   0x7   : > { %2335 = vmatprep.subr.bf16.mxu0 (!%p138_p2), %v2587_v1  ;;  %2240 = vmatpush3.bf16.msra.mxu1 (!%p138_p2), %v2586_v0  ;;  %v2592_v6 = vld [vmem:[%s3229_s1 + $0x58] sm:$0xff] (!%p138_p2)   ;;  %v2594_v8 = vld [vmem:[%s3229_s1 + $0x60] sm:$0xff] (!%p138_p2)   ;;  %v2596_v10 = vld [vmem:[%s3229_s1 + $0x68] sm:$0xff] (!%p138_p2)   ;;  %vm614_vm3 = vcmask (!%p138_p2), 1042432   ;;  %vm615_vm4 = vcmask (!%p138_p2), 1046532   ;;  %s2675_s15 = smov (!%p138_p2), 96  }
   0x8   : > { %2336 = vmatpush3.bf16.msra.mxu0 (!%p138_p2), %v2587_v1  ;;  %2241 = vmatprep.subr.bf16.mxu1 (!%p138_p2), %v2588_v2  ;;  %v2593_v7 = vld [vmem:[%s3229_s1 + $0x118] sm:$0xff] (!%p138_p2)   ;;  %v2595_v9 = vld [vmem:[%s3229_s1 + $0x120] sm:$0xff] (!%p138_p2)   ;;  %v2597_v14 = vld [vmem:[%s3229_s1 + $0x128] sm:$0xff] (!%p138_p2)   ;;  %s2676_s16 = smov (!%p138_p2), 64   ;;  %vm1818_vm6 = vcmask (!%p138_p2), 257024  }
   0x9   : > { %2337 = vmatprep.subr.bf16.mxu0 (!%p138_p2), %v2589_v3  ;;  %v2598_v22 = vld [vmem:[%s3229_s1 + $0x70] sm:$0xff] (!%p138_p2)   ;;  %v2600_v38 = vld [vmem:[%s3229_s1 + $0x78] sm:$0xff] (!%p138_p2)   ;;  %vm2794_vm2 = vmor (!%p138_p2), %vm208_vm0, %vm209_vm1 }
   0xa   : > { %v2599_v23 = vld [vmem:[%s3229_s1 + $0x130] sm:$0xff] (!%p138_p2)   ;;  %v2601_v48 = vld [vmem:[%s3229_s1 + $0x138] sm:$0xff] (!%p138_p2)   ;;  %v2602_v62 = vld [vmem:[%s3229_s1] sm:$0xff] (!%p138_p2)  }
   0xb   : > { %2242 = vmatpush3.bf16.msra.mxu1 (!%p138_p2), %v2588_v2  ;;  %vm2907_vm5 = vmor (!%p138_p2), %vm614_vm3, %vm615_vm4  ;;  %v2630_v39 = vld [vmem:[%s3229_s1 + $0xa8] sm:$0xff] (!%p138_p2)  }
   0xc   : > { %2338 = vmatpush3.bf16.msra.mxu0 (!%p138_p2), %v2589_v3  ;;  %2243 = vmatprep.subr.bf16.mxu1 (!%p138_p2), %v2590_v4  ;;  %v2603_v3 = vld [vmem:[%s3229_s1 + $0x140] sm:$0xff] (!%p138_p2)  }
   0xd   : > { %s3237_s13 = smov (!%p161_p3, %s1882_s13), 1  ;;  %2339 = vmatprep.subr.bf16.mxu0 %v2591_v5 }
   0xe   : > { %s2535_s30 = smul.u32 80, %s3237_s13  ;;  %s2130_s17 = sshll.u32 %s3237_s13, 5 }
   0xf   : > { %2244 = vmatpush3.bf16.msra.mxu1 %v2590_v4  ;;  %s3207_s20 = scalar_lea.vmem %s3231_s3, %s2130_s17 }
  0x10   : > { %2340 = vmatpush3.bf16.msra.mxu0 %v2591_v5  ;;  %2245 = vmatprep.subr.bf16.mxu1 %v2592_v6  ;;  %s2741_s10 = scalar_lea.vmem %s3228_s0, %s2535_s30 }
  0x11   : > { %2341 = vmatprep.subr.bf16.mxu0 %v2593_v7  ;;  %v2747_v11 = vld [vmem:[%s2741_s10] sm:$0xf]  ;;  %v2750_v12 = vld [vmem:[%s2741_s10 + $0x4] sm:$0x1]  ;;  %v2753_v13 = vld [vmem:[%s2741_s10 + $0x8] sm:$0xf] }
  0x12   : > { %v2759_v15 = vld [vmem:[%s2741_s10 + $0xc] sm:$0x1]  ;;  %v212_v16 = vshrl.u32 %v2747_v11, 16  ;;  %v215_v17 = vshll.u32 %v2747_v11, 16  ;;  %v221_v18 = vshll.u32 %v2750_v12, 16  ;;  %v226_v19 = vshrl.u32 %v2753_v13, 16 }
  0x13   : > { %2246 = vmatpush3.bf16.msra.mxu1 %v2592_v6  ;;  %v229_v20 = vshll.u32 %v2753_v13, 16  ;;  %v235_v21 = vshll.u32 %v2759_v15, 16  ;;  %v2774_v30 = vld [vmem:[%s2741_s10 + $0x10] sm:$0xf]  ;;  %v2777_v31 = vld [vmem:[%s2741_s10 + $0x14] sm:$0x1] }
  0x14   : > { %2342 = vmatpush3.bf16.msra.mxu0 %v2593_v7  ;;  %2247 = vmatprep.subr.bf16.mxu1 %v2594_v8  ;;  %v214_v24 = vrot.slane %v212_v16, 4  ;;  %v217_v25 = vrot.slane %v215_v17, 5  ;;  %v223_v26 = vrot.slane %v221_v18, 5  ;;  %v228_v27 = vrot.slane %v226_v19, 4  ;;  %v2780_v33 = vld [vmem:[%s2741_s10 + $0x18] sm:$0xf] }
  0x15   : > { %2343 = vmatprep.subr.bf16.mxu0 %v2595_v9  ;;  %v231_v28 = vrot.slane %v229_v20, 5  ;;  %v237_v29 = vrot.slane %v235_v21, 5  ;;  %v2783_v34 = vld [vmem:[%s2741_s10 + $0x1c] sm:$0x1]  ;;  %v240_v35 = vshrl.u32 %v2774_v30, 16  ;;  %v243_v36 = vshll.u32 %v2774_v30, 16 }
  0x16   : > { %v218_v32 = vor.u32 %v217_v25, %v214_v24  ;;  %v1982_v37 = vcombine.low %v2753_v13, %v2774_v30  ;;  %v249_v41 = vshll.u32 %v2777_v31, 16  ;;  %v254_v42 = vshrl.u32 %v2780_v33, 16  ;;  %v2806_v52 = vld [vmem:[%s2741_s10 + $0x20] sm:$0xf]  ;;  %v2811_v56 = vld [vmem:[%s2741_s10 + $0x24] sm:$0x1] }
  0x17   : > { %2248 = vmatpush3.bf16.msra.mxu1 %v2594_v8  ;;  %v232_v40 = vor.u32 %v231_v28, %v228_v27  ;;  %v257_v43 = vshll.u32 %v2780_v33, 16  ;;  %v242_v45 = vrot.slane %v240_v35, 4  ;;  %v245_v46 = vrot.slane %v243_v36, 5  ;;  %v2604_v17 = vld [vmem:[%s3229_s1 + $0x8] sm:$0xff]   ;;  %v2608_v35 = vld [vmem:[%s3229_s1 + $0x18] sm:$0xff]  }
  0x18   : > { %2344 = vmatpush3.bf16.msra.mxu0 %v2595_v9  ;;  %2249 = vmatprep.subr.bf16.mxu1 %v2596_v10  ;;  %v219_v44 = vrot.slane %v218_v32, 4  ;;  %v263_v47 = vshll.u32 %v2783_v34, 16  ;;  %v256_v50 = vrot.slane %v254_v42, 4  ;;  %v251_v55 = vrot.slane %v249_v41, 5  ;;  %v2605_v24 = vld [vmem:[%s3229_s1 + $0x148] sm:$0xff]   ;;  %v2607_v32 = vld [vmem:[%s3229_s1 + $0x150] sm:$0xff]  }
  0x19   : > { %2345 = vmatprep.subr.bf16.mxu0 %v2597_v14  ;;  %v233_v49 = vrot.slane %v232_v40, 4  ;;  %v259_v51 = vrot.slane %v257_v43, 5  ;;  %v246_v54 = vor.u32 %v245_v46, %v242_v45  ;;  %v268_v60 = vshrl.u32 %v2806_v52, 16  ;;  %v2847_v25 = vld [vmem:[%s2741_s10 + $0x28] sm:$0xf] }
  0x1a   : > { %v224_v53 = vsel %vm2794_vm2, %v219_v44, %v223_v26  ;;  %v265_v59 = vrot.slane %v263_v47, 5  ;;  %v271_v0 = vshll.u32 %v2806_v52, 16  ;;  %v277_v1 = vshll.u32 %v2811_v56, 16  ;;  %v2851_v27 = vld [vmem:[%s2741_s10 + $0x2c] sm:$0x1] }
  0x1b   : > { %2250 = vmatpush3.bf16.msra.mxu1 %v2596_v10  ;;  %v238_v57 = vsel %vm2794_vm2, %v233_v49, %v237_v29  ;;  %v260_v58 = vor.u32 %v259_v51, %v256_v50  ;;  %v247_v63 = vrot.slane %v246_v54, 4  ;;  %v270_v4 = vrot.slane %v268_v60, 4  ;;  %v2866_v42 = vld [vmem:[%s2741_s10 + $0x34] sm:$0x1]  ;;  %v2609_v54 = vld [vmem:[%s3229_s1 + $0x158] sm:$0xff]  }
  0x1c   : > { %2346 = vmatpush3.bf16.msra.mxu0 %v2597_v14  ;;  %2251 = vmatprep.subr.bf16.mxu1 %v2598_v22  ;;  %v1906_v61 = vcombine.low %v224_v53, %v238_v57  ;;  %v273_v6 = vrot.slane %v271_v0, 5  ;;  %v1983_v7 = vcombine.low %v2780_v33, %v2806_v52  ;;  %v279_v16 = vrot.slane %v277_v1, 5  ;;  %v2875_v53 = vld [vmem:[%s2741_s10 + $0x38] sm:$0xf]  ;;  %v2890_v0 = vld [vmem:[%s2741_s10 + $0x40] sm:$0xf] }
  0x1d   : > { %2347 = vmatprep.subr.bf16.mxu0 %v2599_v23  ;;  %v261_v2 = vrot.slane %v260_v58, 4  ;;  %v252_v5 = vsel %vm2794_vm2, %v247_v63, %v251_v55  ;;  %v623_v19 = vrot.slane %v2759_v15, 5  ;;  %v627_v20 = vrot.slane %v2777_v31, 5  ;;  %v2610_v55 = vld [vmem:[%s3229_s1 + $0x20] sm:$0xff]   ;;  %v2884_v58 = vld [vmem:[%s2741_s10 + $0x3c] sm:$0x1] }
  0x1e   : > { %2255 = vmatprep.mubr.bf16.mxu1 %v1906_v61  ;;  %v2010_v9 = vcombine.low %v238_v57, %v252_v5  ;;  %v274_v14 = vor.u32 %v273_v6, %v270_v4  ;;  %v1931_v26 = vrot.slane %v2753_v13, 9  ;;  %v282_v28 = vshrl.u32 %v2847_v25, 16  ;;  %v2893_v1 = vld [vmem:[%s2741_s10 + $0x44] sm:$0x1]  ;;  %v2613_v15 = vld [vmem:[%s3229_s1 + $0x168] sm:$0xff]  }
  0x1f   : > { %2252 = vmatpush3.bf16.msra.mxu1 %v2598_v22  ;;  %v266_v8 = vsel %vm2794_vm2, %v261_v2, %v265_v59  ;;  %v2606_v22 = vld [vmem:[%s3229_s1 + $0x10] sm:$0xff]   ;;  %v285_v29 = vshll.u32 %v2847_v25, 16  ;;  %v291_v36 = vshll.u32 %v2851_v27, 16  ;;  %v305_v45 = vshll.u32 %v2866_v42, 16 }
  0x20   : > { %2348 = vmatpush3.bf16.msra.mxu0 %v2599_v23  ;;  %2253 = vmatprep.subr.bf16.mxu1 %v2600_v38  ;;  %v2830_v10 = vcombine.low %v252_v5, %v266_v8  ;;  %v275_v18 = vrot.slane %v274_v14, 4  ;;  %v284_v40 = vrot.slane %v282_v28, 4  ;;  %v1932_v46 = vrot.slane %v2774_v30, 9  ;;  %v2612_v28 = vld [vmem:[%s3229_s1 + $0x28] sm:$0xff]  }
  0x21   : > { %2349 = vmatprep.subr.bf16.mxu0 %v2601_v48  ;;  %2351 = vmatprep.mubr.bf16.mxu0 %v2010_v9  ;;  %v287_v41 = vrot.slane %v285_v29, 5  ;;  %v293_v49 = vrot.slane %v291_v36, 5  ;;  %v307_v57 = vrot.slane %v305_v45, 5  ;;  %v310_v59 = vshrl.u32 %v2875_v53, 16 }
  0x22   : > { %v280_v21 = vsel %vm2794_vm2, %v275_v18, %v279_v16  ;;  %v313_v60 = vshll.u32 %v2875_v53, 16  ;;  %v319_v63 = vshll.u32 %v2884_v58, 16  ;;  %v952_v4 = vshrl.u32 %v2890_v0, 16  ;;  %v2611_v16 = vld [vmem:[%s3229_s1 + $0x160] sm:$0xff]  }
  0x23   : > { %2254 = vmatpush3.bf16.msra.mxu1 %v2600_v38  ;;  %v2011_v23 = vcombine.low %v266_v8, %v280_v21  ;;  %v2863_v38 = vld [vmem:[%s2741_s10 + $0x30] sm:$0xf]  ;;  %v312_v2 = vrot.slane %v310_v59, 4  ;;  %v955_v5 = vshll.u32 %v2890_v0, 16  ;;  %v961_v14 = vshll.u32 %v2893_v1, 16  ;;  %v2619_v59 = vld [vmem:[%s3229_s1 + $0x80] sm:$0xff]  }
  0x24   : > { %2350 = vmatpush3.bf16.msra.mxu0 %v2601_v48  ;;  %2263 = vmatprep.subr.bf16.mxu1 %v2602_v62  ;;  %v296_v43 = vshrl.u32 %v2863_v38, 16  ;;  %v299_v44 = vshll.u32 %v2863_v38, 16  ;;  %v1984_v47 = vcombine.low %v2847_v25, %v2863_v38  ;;  %v288_v48 = vor.u32 %v287_v41, %v284_v40 }
  0x25   : > { %2359 = vmatprep.subr.bf16.mxu0 %v2603_v3  ;;  %v321_v9 = vrot.slane %v319_v63, 5  ;;  %v963_v41 = vrot.slane %v961_v14, 5  ;;  %v2929_v45 = vsel %vm2907_vm5, %v1931_v26, %v623_v19  ;;  %v619_v26 = vrot.slane %v2750_v12, 5  ;;  %v2975_v63 = vld [vmem:[%s2741_s10 + $0x48] sm:$0xf]  ;;  %v2620_v14 = vld [vmem:[%s3229_s1 + $0x180] sm:$0xff]  }
  0x26   : > { %2256 = vmatmul.mubr.bf16.vlgmr.msra.gmra.mrb[0].mxu1 %v2830_v10  ;;  %v298_v50 = vrot.slane %v296_v43, 4  ;;  %v301_v51 = vrot.slane %v299_v44, 5  ;;  %v289_v61 = vrot.slane %v288_v48, 4  ;;  %v2935_v48 = vsel %vm2907_vm5, %v1932_v46, %v627_v20 }
  0x27   : > { %2264 = vmatpush3.bf16.msra.mxu1 %v2602_v62  ;;  %2352 = vmatmul.mubr.bf16.vlgmr.msra.gmra.mrb[0].mxu0 %v2011_v23  ;;  %v957_v23 = vrot.slane %v955_v5, 5  ;;  %v2039_v20 = vcombine.low %v2929_v45, %v2935_v48  ;;  %v631_v46 = vrot.slane %v2783_v34, 5  ;;  %v1933_v12 = vrot.slane %v2780_v33, 9  ;;  %v191_v5 = vld [vmem:[%s2741_s10 + $0x4c] sm:$0x1] }
  0x28   : > { %2265 = vmatprep.subr.bf16.mxu1 %v2604_v17  ;;  %2360 = vmatpush3.bf16.msra.mxu0 %v2603_v3  ;;  %v302_v62 = vor.u32 %v301_v51, %v298_v50  ;;  %v315_v3 = vrot.slane %v313_v60, 5  ;;  %v294_v6 = vsel %vm2794_vm2, %v289_v61, %v293_v49  ;;  %v2614_v49 = vld [vmem:[%s3229_s1 + $0x30] sm:$0xff]   ;;  %v635_v51 = vrot.slane %v2811_v56, 5 }
  0x29   : > { %2361 = vmatprep.subr.bf16.mxu0 %v2605_v24  ;;  %v1934_v34 = vrot.slane %v2806_v52, 9  ;;  %v1930_v56 = vrot.slane %v2747_v11, 9  ;;  %v1935_v60 = vrot.slane %v2847_v25, 9  ;;  %v639_v61 = vrot.slane %v2851_v27, 5  ;;  %v2622_v27 = vld [vmem:[%s3229_s1 + $0x88] sm:$0xff]  }
  0x2a   : > { %v303_v8 = vrot.slane %v302_v62, 4  ;;  %v316_v18 = vor.u32 %v315_v3, %v312_v2  ;;  %v1936_v62 = vrot.slane %v2863_v38, 9  ;;  %v1115_v2 = vrot.slane %v2893_v1, 5 }
  0x2b   : > { %2266 = vmatpush3.bf16.msra.mxu1 %v2604_v17  ;;  %v2903_v17 = vcombine.low %v280_v21, %v294_v6  ;;  %v1985_v21 = vcombine.low %v2875_v53, %v2890_v0  ;;  %v2981_v3 = vcombine.low %v2774_v30, %v2780_v33  ;;  %v2995_v1 = vsel %vm2907_vm5, %v1933_v12, %v631_v46  ;;  %v2647_v30 = vld [vmem:[%s3229_s1 + $0x1e0] sm:$0xff]   ;;  %v2662_v33 = vld [vmem:[%s3229_s1 + $0x218] sm:$0xff]  }
  0x2c   : > { %2267 = vmatprep.subr.bf16.mxu1 %v2606_v22  ;;  %2362 = vmatpush3.bf16.msra.mxu0 %v2605_v24  ;;  %v308_v29 = vsel %vm2794_vm2, %v303_v8, %v307_v57  ;;  %v317_v36 = vrot.slane %v316_v18, 4  ;;  %v2617_v57 = vld [vmem:[%s3229_s1 + $0x178] sm:$0xff]   ;;  %v2991_v8 = vcombine.low %v2806_v52, %v2847_v25  ;;  %v3042_v46 = vcombine.low %v2863_v38, %v2875_v53  ;;  %v2628_v24 = vld [vmem:[%s3229_s1 + $0xa0] sm:$0xff]   ;;  %v2665_v25 = vld [vmem:[%s3229_s1 + $0x230] sm:$0xff]  }
  0x2d   : > { %2363 = vmatprep.subr.bf16.mxu0 %v2607_v32  ;;  %2259 = vmatprep.mubr.bf16.mxu1 %v2903_v17  ;;  %v2663_v52 = vld [vmem:[%s3229_s1 + $0x220] sm:$0xff]   ;;  %v2666_v38 = vld [vmem:[%s3229_s1 + $0x238] sm:$0xff]  }
  0x2e   : > { %v322_v43 = vsel %vm2794_vm2, %v317_v36, %v321_v9  ;;  %v1564_v9 = vrot.slane %v191_v5, 5  ;;  %v1410_v36 = vshll.u32 %v2975_v63, 16 }
  0x2f   : > { %2268 = vmatpush3.bf16.msra.mxu1 %v2606_v22  ;;  %v954_v22 = vrot.slane %v952_v4, 4  ;;  %v2940_v50 = vcombine.low %v308_v29, %v322_v43  ;;  %v643_v4 = vrot.slane %v2866_v42, 5  ;;  %v2999_v42 = vsel %vm2907_vm5, %v1934_v34, %v635_v51  ;;  %v2625_v34 = vld [vmem:[%s3229_s1 + $0x190] sm:$0xff]  }
  0x30   : > { %2269 = vmatprep.subr.bf16.mxu1 %v2608_v35  ;;  %2364 = vmatpush3.bf16.msra.mxu0 %v2607_v32  ;;  %v1918_v32 = vcombine.low %v2747_v11, %v2753_v13  ;;  %v2022_v11 = vrot.slane %v2890_v0, 9  ;;  %v2648_v13 = vld [vmem:[%s3229_s1 + $0xe8] sm:$0xff]  }
  0x31   : > { %2365 = vmatprep.subr.bf16.mxu0 %v2609_v54  ;;  %v958_v40 = vor.u32 %v957_v23, %v954_v22  ;;  %2260 = vmatmul.mubr.bf16.gmra.mrb[4].mxu1 %v2940_v50  ;;  %v1407_v22 = vshrl.u32 %v2975_v63, 16  ;;  %v2624_v23 = vld [vmem:[%s3229_s1 + $0x90] sm:$0xff]  }
  0x32   : > { %2279 = vmatprep.mubr.bf16.mxu1 %v1918_v32 }
  0x33   : > { %2270 = vmatpush3.bf16.msra.mxu1 %v2608_v35  ;;  %v2012_v35 = vcombine.low %v294_v6, %v308_v29  ;;  %v959_v44 = vrot.slane %v958_v40, 4  ;;  %v2101_v6 = vrot.slane %v2975_v63, 9  ;;  %v3023_v29 = vsel %vm2907_vm5, %v1936_v62, %v643_v4  ;;  %v2636_v62 = vld [vmem:[%s3229_s1 + $0xb8] sm:$0xff]  }
  0x34   : > { %2271 = vmatprep.subr.bf16.mxu1 %v2610_v55  ;;  %2366 = vmatpush3.bf16.msra.mxu0 %v2609_v54  ;;  %v2616_v54 = vld [vmem:[%s3229_s1 + $0x38] sm:$0xff]   ;;  %v2040_v40 = vcombine.low %v2995_v1, %v2999_v42  ;;  %v1409_v32 = vrot.slane %v1407_v22, 4  ;;  %v3093_v4 = vcombine.low %v2935_v48, %v2995_v1  ;;  %v2642_v48 = vld [vmem:[%s3229_s1 + $0xd0] sm:$0xff]   ;;  %v2646_v22 = vld [vmem:[%s3229_s1 + $0xe0] sm:$0xff]  }
  0x35   : > { %2355 = vmatprep.mubr.bf16.mxu0 %v2012_v35  ;;  %2367 = vmatprep.subr.bf16.mxu0 %v2611_v16  ;;  %v2947_v31 = vsel %vm2794_vm2, %v959_v44, %v963_v41  ;;  %v3010_v18 = vsel %vm2907_vm5, %v2101_v6, %v1564_v9  ;;  %v1937_v41 = vrot.slane %v2875_v53, 9  ;;  %v620_v44 = vsel %vm2907_vm5, %v1930_v56, %v619_v26  ;;  %v2640_v6 = vld [vmem:[%s3229_s1 + $0xc8] sm:$0xff]  }
  0x36   : > { %v2013_v19 = vcombine.low %v322_v43, %v2947_v31  ;;  %v647_v43 = vrot.slane %v2884_v58, 5  ;;  %v1954_v58 = vcombine.low %v620_v44, %v2929_v45  ;;  %v2641_v9 = vld [vmem:[%s3229_s1 + $0x1c8] sm:$0xff]  }
  0x37   : > { %2272 = vmatpush3.bf16.msra.mxu1 %v2610_v55  ;;  %v2615_v55 = vld [vmem:[%s3229_s1 + $0x170] sm:$0xff]  }
  0x38   : > { %2273 = vmatprep.subr.bf16.mxu1 %v2612_v28  ;;  %2368 = vmatpush3.bf16.msra.mxu0 %v2611_v16  ;;  %v3006_v16 = vsel %vm2907_vm5, %v2022_v11, %v1115_v2  ;;  %v2634_v11 = vld [vmem:[%s3229_s1 + $0x1b0] sm:$0xff]   ;;  %v2638_v2 = vld [vmem:[%s3229_s1 + $0xc0] sm:$0xff]  }
  0x39   : > { %2369 = vmatprep.subr.bf16.mxu0 %v2613_v15  ;;  %2356 = vmatmul.mubr.bf16.gmra.mrb[4].mxu0 %v2013_v19  ;;  %v2118_v35 = vcombine.low %v3006_v16, %v3010_v18 }
  0x3a   : > { %2375 = vmatprep.mubr.bf16.mxu0 %v2039_v20  ;;  %v1416_v20 = vshll.u32 %v191_v5, 16 }
  0x3b   : > { %2274 = vmatpush3.bf16.msra.mxu1 %v2612_v28  ;;  %v3019_v28 = vsel %vm2907_vm5, %v1935_v60, %v639_v61  ;;  %v2633_v60 = vld [vmem:[%s3229_s1 + $0xb0] sm:$0xff]   ;;  %v2631_v61 = vld [vmem:[%s3229_s1 + $0x1a8] sm:$0xff]  }
  0x3c   : > { %2275 = vmatprep.subr.bf16.mxu1 %v2614_v49  ;;  %2370 = vmatpush3.bf16.msra.mxu0 %v2613_v15  ;;  %v2623_v15 = vld [vmem:[%s3229_s1 + $0x188] sm:$0xff]   ;;  %v2041_v19 = vcombine.low %v3019_v28, %v3023_v29  ;;  %v1418_v26 = vrot.slane %v1416_v20, 5  ;;  %v3097_v5 = vcombine.low %v2999_v42, %v3019_v28  ;;  %v2644_v42 = vld [vmem:[%s3229_s1 + $0xd8] sm:$0xff]  }
  0x3d   : > { %2371 = vmatprep.subr.bf16.mxu0 %v2615_v55  ;;  %v2653_v28 = vld [vmem:[%s3229_s1 + $0xf8] sm:$0xff]  }
  0x3f   : > { %2276 = vmatpush3.bf16.msra.mxu1 %v2614_v49  ;;  %v1412_v49 = vrot.slane %v1410_v36, 5  ;;  %v2654_v36 = vld [vmem:[%s3229_s1 + $0x1f8] sm:$0xff]  }
  0x40   : > { %2277 = vmatprep.subr.bf16.mxu1 %v2616_v54  ;;  %2372 = vmatpush3.bf16.msra.mxu0 %v2615_v55  ;;  %v648_v55 = vsel %vm2907_vm5, %v1937_v41, %v647_v43  ;;  %v2661_v41 = vld [vmem:[%s3229_s1 + $0x210] sm:$0xff]  }
  0x41   : > { %2373 = vmatprep.subr.bf16.mxu0 %v2617_v57  ;;  %v1413_v51 = vor.u32 %v1412_v49, %v1409_v32  ;;  %v2042_v56 = vcombine.low %v648_v55, %v3006_v16  ;;  %v3114_v1 = vcombine.low %v3023_v29, %v648_v55  ;;  %v2657_v29 = vld [vmem:[%s3229_s1 + $0x200] sm:$0xff]  }
  0x43   : > { %2278 = vmatpush3.bf16.msra.mxu1 %v2616_v54  ;;  %v2626_v54 = vld [vmem:[%s3229_s1 + $0x98] sm:$0xff]   ;;  %v1414_v12 = vrot.slane %v1413_v51, 4 }
  0x44   : > { %2287 = vmatprep.subr.bf16.mxu1 %v2619_v59  ;;  %2374 = vmatpush3.bf16.msra.mxu0 %v2617_v57 }
  0x45   : > { %2383 = vmatprep.subr.bf16.mxu0 %v2620_v14  ;;  %v1419_v45 = vsel %vm2794_vm2, %v1414_v12, %v1418_v26 }
  0x46   : > { %2280 = vmatmul.mubr.bf16.vlgmr.msra.gmra.mrb[0].mxu1 %v2981_v3  ;;  %v3058_v57 = vcombine.low %v2947_v31, %v1419_v45  ;;  %v2629_v31 = vld [vmem:[%s3229_s1 + $0x1a0] sm:$0xff]  }
  0x47   : > { %2288 = vmatpush3.bf16.msra.mxu1 %v2619_v59  ;;  %2283 = vmatprep.mubr.bf16.mxu1 %v2991_v8  ;;  %v2627_v59 = vld [vmem:[%s3229_s1 + $0x198] sm:$0xff]  }
  0x48   : > { %2289 = vmatprep.subr.bf16.mxu1 %v2622_v27  ;;  %2376 = vmatmul.mubr.bf16.vlgmr.msra.gmra.mrb[0].mxu0 %v2040_v40  ;;  %v2658_v40 = vld [vmem:[%s3229_s1 + $0x208] sm:$0xff]  }
  0x49   : > { %2384 = vmatpush3.bf16.msra.mxu0 %v2620_v14  ;;  %2379 = vmatprep.mubr.bf16.mxu0 %v2041_v19  ;;  %v2643_v14 = vld [vmem:[%s3229_s1 + $0x1d0] sm:$0xff]  }
  0x4a   : > { %2385 = vmatprep.subr.bf16.mxu0 %v2623_v15 }
  0x4b   : > { %2290 = vmatpush3.bf16.msra.mxu1 %v2622_v27  ;;  %v2639_v27 = vld [vmem:[%s3229_s1 + $0x1c0] sm:$0xff]  }
  0x4c   : > { %2291 = vmatprep.subr.bf16.mxu1 %v2624_v23 }
  0x4d   : > { %2386 = vmatpush3.bf16.msra.mxu0 %v2623_v15 }
  0x4e   : > { %2284 = vmatmul.mubr.bf16.gmra.mrb[4].mxu1 %v3042_v46  ;;  %2387 = vmatprep.subr.bf16.mxu0 %v2625_v34 }
  0x4f   : > { %2292 = vmatpush3.bf16.msra.mxu1 %v2624_v23  ;;  %2303 = vmatprep.mubr.bf16.mxu1 %v1954_v58  ;;  %v2645_v23 = vld [vmem:[%s3229_s1 + $0x1d8] sm:$0xff]  }
  0x50   : > { %2293 = vmatprep.subr.bf16.mxu1 %v2626_v54  ;;  %2380 = vmatmul.mubr.bf16.gmra.mrb[4].mxu0 %v2042_v56 }
  0x51   : > { %2388 = vmatpush3.bf16.msra.mxu0 %v2625_v34  ;;  %2399 = vmatprep.mubr.bf16.mxu0 %v2981_v3  ;;  %v2637_v3 = vld [vmem:[%s3229_s1 + $0x1b8] sm:$0xff]  }
  0x52   : > { %2389 = vmatprep.subr.bf16.mxu0 %v2627_v59 }
  0x53   : > { %2294 = vmatpush3.bf16.msra.mxu1 %v2626_v54 }
  0x54   : > { %2295 = vmatprep.subr.bf16.mxu1 %v2628_v24 }
  0x55   : > { %2390 = vmatpush3.bf16.msra.mxu0 %v2627_v59 }
  0x56   : > { %2391 = vmatprep.subr.bf16.mxu0 %v2629_v31 }
  0x57   : > { %2296 = vmatpush3.bf16.msra.mxu1 %v2628_v24 }
  0x58   : > { %2297 = vmatprep.subr.bf16.mxu1 %v2630_v39 }
  0x59   : > { %2392 = vmatpush3.bf16.msra.mxu0 %v2629_v31 }
  0x5a   : > { %2393 = vmatprep.subr.bf16.mxu0 %v2631_v61 }
  0x5b   : > { %2298 = vmatpush3.bf16.msra.mxu1 %v2630_v39 }
  0x5c   : > { %2299 = vmatprep.subr.bf16.mxu1 %v2633_v60 }
  0x5d   : > { %2394 = vmatpush3.bf16.msra.mxu0 %v2631_v61 }
  0x5e   : > { %2395 = vmatprep.subr.bf16.mxu0 %v2634_v11 }
  0x5f   : > { %2300 = vmatpush3.bf16.msra.mxu1 %v2633_v60 }
  0x60   : > { %2301 = vmatprep.subr.bf16.mxu1 %v2636_v62 }
  0x61   : > { %2396 = vmatpush3.bf16.msra.mxu0 %v2634_v11 }
  0x62   : > { %2397 = vmatprep.subr.bf16.mxu0 %v2637_v3 }
  0x63   : > { %2302 = vmatpush3.bf16.msra.mxu1 %v2636_v62 }
  0x64   : > { %2311 = vmatprep.subr.bf16.mxu1 %v2638_v2 }
  0x65   : > { %2398 = vmatpush3.bf16.msra.mxu0 %v2637_v3 }
  0x66   : > { %2304 = vmatmul.mubr.bf16.vlgmr.msra.gmra.mrb[0].mxu1 %v3093_v4  ;;  %2407 = vmatprep.subr.bf16.mxu0 %v2639_v27 }
  0x67   : > { %2312 = vmatpush3.bf16.msra.mxu1 %v2638_v2  ;;  %2307 = vmatprep.mubr.bf16.mxu1 %v3097_v5 }
  0x68   : > { %2313 = vmatprep.subr.bf16.mxu1 %v2640_v6  ;;  %2400 = vmatmul.mubr.bf16.vlgmr.msra.gmra.mrb[0].mxu0 %v2991_v8  ;;  %v2067_v8 = vcombine.low %v2890_v0, %v2975_v63  ;;  %v2649_v63 = vld [vmem:[%s3229_s1 + $0x1e8] sm:$0xff]  }
  0x69   : > { %2408 = vmatpush3.bf16.msra.mxu0 %v2639_v27  ;;  %2403 = vmatprep.mubr.bf16.mxu0 %v3042_v46 }
  0x6a   : > { %2409 = vmatprep.subr.bf16.mxu0 %v2641_v9 }
  0x6b   : > { %2314 = vmatpush3.bf16.msra.mxu1 %v2640_v6 }
  0x6c   : > { %2315 = vmatprep.subr.bf16.mxu1 %v2642_v48 }
  0x6d   : > { %2410 = vmatpush3.bf16.msra.mxu0 %v2641_v9 }
  0x6e   : > { %2308 = vmatmul.mubr.bf16.gmra.mrb[4].mxu1 %v3114_v1  ;;  %2411 = vmatprep.subr.bf16.mxu0 %v2643_v14 }
  0x6f   : > { %2316 = vmatpush3.bf16.msra.mxu1 %v2642_v48  ;;  %2327 = vmatprep.mubr.bf16.mxu1 %v1982_v37  ;;  %v2650_v37 = vld [vmem:[%s3229_s1 + $0xf0] sm:$0xff]  }
  0x70   : > { %2317 = vmatprep.subr.bf16.mxu1 %v2644_v42  ;;  %2404 = vmatmul.mubr.bf16.gmra.mrb[4].mxu0 %v2067_v8 }
  0x71   : > { %2412 = vmatpush3.bf16.msra.mxu0 %v2643_v14  ;;  %2423 = vmatprep.mubr.bf16.mxu0 %v2830_v10  ;;  %v2652_v10 = vld [vmem:[%s3229_s1 + $0x1f0] sm:$0xff]  }
  0x72   : > { %2413 = vmatprep.subr.bf16.mxu0 %v2645_v23 }
  0x73   : > { %2318 = vmatpush3.bf16.msra.mxu1 %v2644_v42 }
  0x74   : > { %2319 = vmatprep.subr.bf16.mxu1 %v2646_v22 }
  0x75   : > { %2414 = vmatpush3.bf16.msra.mxu0 %v2645_v23 }
  0x76   : > { %2415 = vmatprep.subr.bf16.mxu0 %v2647_v30 }
  0x77   : > { %2320 = vmatpush3.bf16.msra.mxu1 %v2646_v22 }
  0x78   : > { %2321 = vmatprep.subr.bf16.mxu1 %v2648_v13 }
  0x79   : > { %2416 = vmatpush3.bf16.msra.mxu0 %v2647_v30 }
  0x7a   : > { %2417 = vmatprep.subr.bf16.mxu0 %v2649_v63 }
  0x7b   : > { %2322 = vmatpush3.bf16.msra.mxu1 %v2648_v13 }
  0x7c   : > { %2323 = vmatprep.subr.bf16.mxu1 %v2650_v37 }
  0x7d   : > { %2418 = vmatpush3.bf16.msra.mxu0 %v2649_v63 }
  0x7e   : > { %2419 = vmatprep.subr.bf16.mxu0 %v2652_v10 }
  0x7f   : > { %2324 = vmatpush3.bf16.msra.mxu1 %v2650_v37 }
  0x80   : > { %2325 = vmatprep.subr.bf16.mxu1 %v2653_v28 }
  0x81   : > { %2420 = vmatpush3.bf16.msra.mxu0 %v2652_v10 }
  0x82   : > { %2421 = vmatprep.subr.bf16.mxu0 %v2654_v36 }
  0x83   : > { %2326 = vmatpush3.bf16.msra.mxu1 %v2653_v28 }
  0x84   : > { %2455 = vmatprep.subr.bf16.mxu1 %v2657_v29 }
  0x85   : > { %2422 = vmatpush3.bf16.msra.mxu0 %v2654_v36 }
  0x86   : > { %2328 = vmatmul.mubr.bf16.vlgmr.msra.gmra.mrb[0].mxu1 %v1983_v7  ;;  %2431 = vmatprep.subr.bf16.mxu0 %v2657_v29  ;;  %v2664_v7 = vld [vmem:[%s3229_s1 + $0x228] sm:$0xff]  }
  0x87   : > { %2463 = vmatpush3.bf16.msra.mxu1 %v2657_v29  ;;  %2331 = vmatprep.mubr.bf16.mxu1 %v1984_v47 }
  0x88   : > { %2456 = vmatprep.subr.bf16.mxu1 %v2658_v40  ;;  %2424 = vmatmul.mubr.bf16.vlgmr.msra.gmra.mrb[0].mxu0 %v2903_v17 }
  0x89   : > { %2432 = vmatpush3.bf16.msra.mxu0 %v2657_v29  ;;  %2427 = vmatprep.mubr.bf16.mxu0 %v2940_v50 }
  0x8a   : > { %2433 = vmatprep.subr.bf16.mxu0 %v2658_v40 }
  0x8b   : > { %2464 = vmatpush3.bf16.msra.mxu1 %v2658_v40 }
  0x8c   : > { %2457 = vmatprep.subr.bf16.mxu1 %v2661_v41 }
  0x8d   : > { %2434 = vmatpush3.bf16.msra.mxu0 %v2658_v40 }
  0x8e   : > { %2332 = vmatmul.mubr.bf16.gmra.mrb[4].mxu1 %v1985_v21  ;;  %2435 = vmatprep.subr.bf16.mxu0 %v2661_v41 }
  0x8f   : > { %2465 = vmatpush3.bf16.msra.mxu1 %v2661_v41  ;;  %2451 = vmatprep.mubr.bf16.mxu1 %v3114_v1 }
  0x90   : > { %2458 = vmatprep.subr.bf16.mxu1 %v2662_v33  ;;  %2428 = vmatmul.mubr.bf16.gmra.mrb[4].mxu0 %v3058_v57 }
  0x91   : > { %2436 = vmatpush3.bf16.msra.mxu0 %v2661_v41  ;;  %2447 = vmatprep.mubr.bf16.mxu0 %v3093_v4 }
  0x92   : > { %2437 = vmatprep.subr.bf16.mxu0 %v2662_v33 }
  0x93   : > { %2466 = vmatpush3.bf16.msra.mxu1 %v2662_v33 }
  0x94   : > { %2459 = vmatprep.subr.bf16.mxu1 %v2663_v52 }
  0x95   : > { %2438 = vmatpush3.bf16.msra.mxu0 %v2662_v33 }
  0x96   : > { %2439 = vmatprep.subr.bf16.mxu0 %v2663_v52 }
  0x97   : > { %2467 = vmatpush3.bf16.msra.mxu1 %v2663_v52 }
  0x98   : > { %2460 = vmatprep.subr.bf16.mxu1 %v2664_v7 }
  0x99   : > { %2440 = vmatpush3.bf16.msra.mxu0 %v2663_v52 }
  0x9a   : > { %2441 = vmatprep.subr.bf16.mxu0 %v2664_v7 }
  0x9b   : > { %2468 = vmatpush3.bf16.msra.mxu1 %v2664_v7 }
  0x9c   : > { %2461 = vmatprep.subr.bf16.mxu1 %v2665_v25 }
  0x9d   : > { %2442 = vmatpush3.bf16.msra.mxu0 %v2664_v7 }
  0x9e   : > { %2443 = vmatprep.subr.bf16.mxu0 %v2665_v25 }
  0x9f   : > { %2469 = vmatpush3.bf16.msra.mxu1 %v2665_v25 }
  0xa0   : > { %2462 = vmatprep.subr.bf16.mxu1 %v2666_v38 }
  0xa1   : > { %2444 = vmatpush3.bf16.msra.mxu0 %v2665_v25 }
  0xa2   : > { %2445 = vmatprep.subr.bf16.mxu0 %v2666_v38 }
  0xa3   : > { %2470 = vmatpush3.bf16.msra.mxu1 %v2666_v38 }
  0xa5   : > { %2446 = vmatpush3.bf16.msra.mxu0 %v2666_v38 }
  0xa6   : > { %2452 = vmatmul.mubr.bf16.vlgmr.msra.gmra.mrb[8].mxu1 %v2118_v35  ;;  %v2127_v35 = vld [vmem:[%s3230_s2] ss:$0 sm:$0xff] }
  0xa8   : > { %2448 = vmatmul.mubr.bf16.vlgmr.msra.gmra.mrb[0].mxu0 %v3097_v5 }
 0x159   : > { %v2329_v47 = vpop.f32.mrb[0].mxu1 }
 0x15a   : > { %v912_v53 = vpop.f32.mrb[1].mxu1 }
 0x15b   : > { %v2330_v0 = vpop.f32.mrb[2].mxu1 }
 0x15c   : > { %v915_v17 = vpop.f32.mrb[3].mxu1 }
 0x161   : > { %v2333_v21 = vpop.f32.mrb[4].mxu1 }
 0x162   : > { %v928_v50 = vpop.f32.mrb[5].mxu1 }
 0x163   : > { %v2334_v32 = vpop.f32.mrb[6].mxu1  ;;  %v2429_v44 = vpop.f32.mrb[4].mxu0 }
 0x164   : > { %v931_v43 = vpop.f32.mrb[7].mxu1  ;;  %v2475_v49 = vadd.f32 %v2429_v44, %v2333_v21  ;;  %v1538_v15 = vpop.f32.mrb[5].mxu0 }
 0x165   : > { %v2477_v19 = vadd.f32 %v1538_v15, %v928_v50  ;;  %v2430_v20 = vpop.f32.mrb[6].mxu0 }
 0x166   : > { %v2479_v46 = vadd.f32 %v2430_v20, %v2334_v32  ;;  %v1541_v51 = vpop.f32.mrb[7].mxu0 }
 0x167   : > { %v2481_v16 = vadd.f32 %v1541_v51, %v931_v43 }
 0x179   : > { %v2453_v18 = vpop.f32.mrb[8].mxu1 }
 0x17a   : > { %v2476_v58 = vadd.f32 %v2475_v49, %v2453_v18  ;;  %v1684_v26 = vpop.f32.mrb[9].mxu1 }
 0x17b   : > { %v2478_v54 = vadd.f32 %v2477_v19, %v1684_v26  ;;  %v2454_v55 = vpop.f32.mrb[10].mxu1  ;;  %v2449_v57 = vpop.f32.mrb[0].mxu0 }
 0x17c   : > { %v2480_v12 = vadd.f32 %v2479_v46, %v2454_v55  ;;  %v1687_v34 = vpop.f32.mrb[11].mxu1  ;;  %v2471_v24 = vadd.f32 %v2449_v57, %v2329_v47  ;;  %v1668_v59 = vpop.f32.mrb[1].mxu0  ;;  %v1720_v62 = vadd.f32 %v2476_v58, %v2127_v35 }
 0x17d   : > { %v1718_v45 = vadd.f32 %v2478_v54, %v2127_v35  ;;  %v2482_v56 = vadd.f32 %v2481_v16, %v1687_v34  ;;  %v2472_v60 = vadd.f32 %v1668_v59, %v912_v53  ;;  %v2450_v61 = vpop.f32.mrb[2].mxu0 }
 0x17e   : > { %v1721_v39 = vadd.f32 %v2480_v12, %v2127_v35  ;;  %v2473_v2 = vadd.f32 %v2450_v61, %v2330_v0  ;;  %v1671_v3 = vpop.f32.mrb[3].mxu0  ;;  %v1728_v42 = vmax.f32 %v1720_v62, 0.0  ;;  %v1716_v14 = vadd.f32 %v2471_v24, %v2127_v35 }
 0x17f   : > { %v1719_v31 = vadd.f32 %v2482_v56, %v2127_v35  ;;  %v1726_v11 = vmax.f32 %v1718_v45, 0.0  ;;  %v1714_v5 = vadd.f32 %v2472_v60, %v2127_v35  ;;  %v2474_v6 = vadd.f32 %v1671_v3, %v915_v17 }
 0x180   : > { %v1729_v27 = vmax.f32 %v1721_v39, 0.0  ;;  %v1717_v9 = vadd.f32 %v2473_v2, %v2127_v35  ;;  %v1724_v37 = vmax.f32 %v1716_v14, 0.0 }
 0x181   : > { %v1727_v4 = vmax.f32 %v1719_v31, 0.0  ;;  %v1715_v1 = vadd.f32 %v2474_v6, %v2127_v35  ;;  %v1722_v8 = vmax.f32 %v1714_v5, 0.0 }
 0x182   : > { %v2561_v23 = vpack.i.bf16 %v1729_v27, %v1728_v42  ;;  %v1725_v13 = vmax.f32 %v1717_v9, 0.0 }
 0x183   : > { %v2556_v48 = vpack.i.bf16 %v1727_v4, %v1726_v11  ;;  %v1723_v22 = vmax.f32 %v1715_v1, 0.0 }
 0x184   : > { %v2551_v63 = vpack.i.bf16 %v1725_v13, %v1724_v37 }
 0x185   : > { %2557 = vrot.lane.b32.xlu1 %v2556_v48, %s2675_s15  ;;  %v2546_v30 = vpack.i.bf16 %v1723_v22, %v1722_v8 }
 0x187   : > { %2547 = vrot.lane.b32.xlu0 %v2546_v30, %s2675_s15 }
 0x189   : > { %2562 = vrot.lane.b32.xlu1 %v2561_v23, %s2675_s15 }
 0x18b   : > { %2552 = vrot.lane.b32.xlu0 %v2551_v63, %s2675_s15 }
 0x1f7   : > { %v2558_v28 = vpop.permute.xlu1 %2557 }
 0x1f8   : > { %v2560_v29 = vunpack.i.h.bf16 %v2558_v28  ;;  %v2559_v36 = vunpack.i.l.bf16 %v2558_v28 }
 0x1f9   : > { %v2548_v10 = vpop.permute.xlu0 %2547 }
 0x1fa   : > { %v2550_v40 = vunpack.i.h.bf16 %v2548_v10  ;;  %v2549_v41 = vunpack.i.l.bf16 %v2548_v10  ;;  %v1767_v25 = vmax.f32 %v1727_v4, %v2560_v29  ;;  %v1766_v38 = vmax.f32 %v1726_v11, %v2559_v36 }
 0x1fb   : > { %v2563_v33 = vpop.permute.xlu1 %2562 }
 0x1fc   : > { %v1763_v52 = vmax.f32 %v1723_v22, %v2550_v40  ;;  %v1762_v7 = vmax.f32 %v1722_v8, %v2549_v41  ;;  %v2565_v53 = vunpack.i.h.bf16 %v2563_v33  ;;  %v2564_v21 = vunpack.i.l.bf16 %v2563_v33 }
 0x1fd   : > { %v2553_v47 = vpop.permute.xlu0 %2552  ;;  %v2576_v19 = vpack.i.bf16 %v1767_v25, %v1766_v38 }
 0x1fe   : > { %v2555_v0 = vunpack.i.h.bf16 %v2553_v47  ;;  %v2554_v17 = vunpack.i.l.bf16 %v2553_v47  ;;  %v2571_v50 = vpack.i.bf16 %v1763_v52, %v1762_v7  ;;  %v1769_v44 = vmax.f32 %v1729_v27, %v2565_v53 }
 0x1ff   : > { %v1768_v49 = vmax.f32 %v1728_v42, %v2564_v21 }
 0x200   : > { %v1765_v32 = vmax.f32 %v1725_v13, %v2555_v0  ;;  %v1764_v43 = vmax.f32 %v1724_v37, %v2554_v17  ;;  %2572 = vrot.lane.b32.xlu0 %v2571_v50, %s2676_s16 }
 0x201   : > { %v2581_v20 = vpack.i.bf16 %v1769_v44, %v1768_v49 }
 0x202   : > { %v2566_v15 = vpack.i.bf16 %v1765_v32, %v1764_v43 }
 0x204   : > { %2567 = vrot.lane.b32.xlu1 %v2566_v15, %s2676_s16  ;;  %2577 = vrot.lane.b32.xlu0 %v2576_v19, %s2676_s16 }
 0x208   : > { %2582 = vrot.lane.b32.xlu1 %v2581_v20, %s2676_s16 }
 0x272   : > { %v2573_v46 = vpop.permute.xlu0 %2572 }
 0x273   : > { %v2575_v51 = vunpack.i.h.bf16 %v2573_v46  ;;  %v2574_v16 = vunpack.i.l.bf16 %v2573_v46 }
 0x275   : > { %v1803_v18 = vmax.f32 %v1763_v52, %v2575_v51  ;;  %v1802_v35 = vmax.f32 %v1762_v7, %v2574_v16 }
 0x276   : > { %v2568_v58 = vpop.permute.xlu1 %2567  ;;  %v2578_v26 = vpop.permute.xlu0 %2577 }
 0x277   : > { %v1811_v54 = vpack.c.bf16 %v1803_v18, %v1803_v18  ;;  %v1810_v55 = vpack.c.bf16 %v1802_v35, %v1802_v35  ;;  %v2570_v12 = vunpack.i.h.bf16 %v2568_v58  ;;  %v2569_v34 = vunpack.i.l.bf16 %v2568_v58 }
 0x278   : > { %v2580_v45 = vunpack.i.h.bf16 %v2578_v26  ;;  %v2579_v56 = vunpack.i.l.bf16 %v2578_v26 }
 0x279   : > { %1820 = vst.msk [vmem:[%s3207_s20 + $0x4] sm:$0xf] %vm1818_vm6, %v1811_v54  ;;  %1819 = vst.msk [vmem:[%s3207_s20] sm:$0xf] %vm1818_vm6, %v1810_v55  ;;  %v1805_v57 = vmax.f32 %v1765_v32, %v2570_v12  ;;  %v1804_v24 = vmax.f32 %v1764_v43, %v2569_v34 }
 0x27a   : > { %v1807_v59 = vmax.f32 %v1767_v25, %v2580_v45  ;;  %v1806_v39 = vmax.f32 %v1766_v38, %v2579_v56  ;;  %v2583_v31 = vpop.permute.xlu1 %2582 }
 0x27b   : > { %v1813_v60 = vpack.c.bf16 %v1805_v57, %v1805_v57  ;;  %v1812_v61 = vpack.c.bf16 %v1804_v24, %v1804_v24  ;;  %v2585_v62 = vunpack.i.h.bf16 %v2583_v31  ;;  %v2584_v11 = vunpack.i.l.bf16 %v2583_v31 }
 0x27c   : > { %v1815_v2 = vpack.c.bf16 %v1807_v59, %v1807_v59  ;;  %v1814_v3 = vpack.c.bf16 %v1806_v39, %v1806_v39 }
 0x27d   : > { %1822 = vst.msk [vmem:[%s3207_s20 + $0xc] sm:$0xf] %vm1818_vm6, %v1813_v60  ;;  %1821 = vst.msk [vmem:[%s3207_s20 + $0x8] sm:$0xf] %vm1818_vm6, %v1812_v61  ;;  %v1809_v4 = vmax.f32 %v1769_v44, %v2585_v62  ;;  %v1808_v5 = vmax.f32 %v1768_v49, %v2584_v11 }
 0x27e   : > { %1824 = vst.msk [vmem:[%s3207_s20 + $0x14] sm:$0xf] %vm1818_vm6, %v1815_v2  ;;  %1823 = vst.msk [vmem:[%s3207_s20 + $0x10] sm:$0xf] %vm1818_vm6, %v1814_v3 }
 0x27f   : > { %v1817_v6 = vpack.c.bf16 %v1809_v4, %v1809_v4  ;;  %v1816_v27 = vpack.c.bf16 %v1808_v5, %v1808_v5 }
 0x281   : > { %1826 = vst.msk [vmem:[%s3207_s20 + $0x1c] sm:$0xf] %vm1818_vm6, %v1817_v6  ;;  %1825 = vst.msk [vmem:[%s3207_s20 + $0x18] sm:$0xf] %vm1818_vm6, %v1816_v27 }
 0x282 PF: > { %s13_s12 = sadd.s32 1, %s2673_s12  }
 0x283   : > { %p10_p4 = scmp.ge.s32.totalorder %s13_s12, 4  }
 0x285   :  { %12 = sbr.rel (!%p10_p4) target bundleno = 1 (0x1), region = 70 }

// kernel: net_forward.7
= control target key start
LH: loop header
LB: loop body
LE: loop exit
PB: predicated region body
PF: predicated region fallthrough
CT: control target
= control target key end

     0   :  { %v163_v28 = vlaneseq  ;;  %v1134_v36 = vmov 1966171168   ;;  %s1406_s0 = inlined_call_operand.vmem [shape: bf16[2,1024], index: 0, kind: input, shape index: {}]   ;;  %s1407_s1 = inlined_call_operand.vmem [shape: bf16[1024,64], index: 1, kind: input, shape index: {}]   ;;  %s1408_s2 = inlined_call_operand.vmem [shape: f32[1,64], index: 2, kind: input, shape index: {}]   ;;  %s1409_s3 = inlined_call_operand.vmem [shape: bf16[64,10], index: 3, kind: input, shape index: {}]   ;;  %s1410_s4 = inlined_call_operand.vmem [shape: f32[1,10], index: 4, kind: input, shape index: {}]   ;;  %s1411_s5 = inlined_call_operand.hbm [shape: f32[2,10], index: 5, kind: output, shape index: {}]  }
   0x1   :  { %v1041_v0 = vld [vmem:[%s1407_s1 + $0x40] sm:$0xff]   ;;  %v1045_v4 = vld [vmem:[%s1407_s1 + $0x48] sm:$0xff]   ;;  %v1049_v8 = vld [vmem:[%s1407_s1 + $0x50] sm:$0xff]   ;;  %v161_v37 = vunpack.c.l.s4 %v1134_v36 }
   0x2   :  { %v1042_v1 = vld [vmem:[%s1407_s1 + $0xc0] sm:$0xff]   ;;  %932 = vmatprep.subr.bf16.mxu0 %v1041_v0  ;;  %v1046_v5 = vld [vmem:[%s1407_s1 + $0xc8] sm:$0xff]   ;;  %v1050_v9 = vld [vmem:[%s1407_s1 + $0xd0] sm:$0xff]   ;;  %v164_v33 = vshrl.u32 %v163_v28, 7 }
   0x3   :  { %v1043_v2 = vld [vmem:[%s1407_s1] sm:$0xff]   ;;  %954 = vmatprep.subr.bf16.mxu1 %v1042_v1  ;;  %v1047_v6 = vld [vmem:[%s1407_s1 + $0x8] sm:$0xff]   ;;  %v1051_v10 = vld [vmem:[%s1407_s1 + $0x10] sm:$0xff]   ;;  %v162_v40 = vunpack.c.0.s8 %v161_v37 }
   0x4   :  { %v1044_v3 = vld [vmem:[%s1407_s1 + $0x80] sm:$0xff]   ;;  %933 = vmatpush3.bf16.msra.mxu0 %v1043_v2  ;;  %v1048_v7 = vld [vmem:[%s1407_s1 + $0x88] sm:$0xff]   ;;  %v1052_v11 = vld [vmem:[%s1407_s1 + $0x90] sm:$0xff]  }
   0x5   :  { %955 = vmatpush3.bf16.msra.mxu1 %v1044_v3  ;;  %934 = vmatprep.subr.bf16.mxu0 %v1045_v4  ;;  %v1053_v12 = vld [vmem:[%s1407_s1 + $0x58] sm:$0xff]   ;;  %v1057_v16 = vld [vmem:[%s1407_s1 + $0x60] sm:$0xff]   ;;  %v1061_v20 = vld [vmem:[%s1407_s1 + $0x68] sm:$0xff]   ;;  %v1273_v41 = vsub.s32 %v162_v40, %v164_v33 }
   0x6   :  { %956 = vmatprep.subr.bf16.mxu1 %v1046_v5  ;;  %v1054_v13 = vld [vmem:[%s1407_s1 + $0xd8] sm:$0xff]   ;;  %v1058_v17 = vld [vmem:[%s1407_s1 + $0xe0] sm:$0xff]   ;;  %v1062_v21 = vld [vmem:[%s1407_s1 + $0xe8] sm:$0xff]  }
   0x7   :  { %v1055_v14 = vld [vmem:[%s1407_s1 + $0x18] sm:$0xff]   ;;  %v1059_v18 = vld [vmem:[%s1407_s1 + $0x20] sm:$0xff]   ;;  %v1063_v22 = vld [vmem:[%s1407_s1 + $0x28] sm:$0xff]  }
   0x8   :  { %935 = vmatpush3.bf16.msra.mxu0 %v1047_v6  ;;  %v1056_v15 = vld [vmem:[%s1407_s1 + $0x98] sm:$0xff]   ;;  %v1060_v19 = vld [vmem:[%s1407_s1 + $0xa0] sm:$0xff]   ;;  %v1064_v23 = vld [vmem:[%s1407_s1 + $0xa8] sm:$0xff]  }
   0x9   :  { %957 = vmatpush3.bf16.msra.mxu1 %v1048_v7  ;;  %936 = vmatprep.subr.bf16.mxu0 %v1049_v8  ;;  %v1065_v24 = vld [vmem:[%s1407_s1 + $0x70] sm:$0xff]   ;;  %v1069_v29 = vld [vmem:[%s1407_s1 + $0x78] sm:$0xff]   ;;  %v22_v34 = vld [vmem:[%s1406_s0] sm:$0xff] }
   0xa   :  { %958 = vmatprep.subr.bf16.mxu1 %v1050_v9  ;;  %v1066_v25 = vld [vmem:[%s1407_s1 + $0xf0] sm:$0xff]   ;;  %v1070_v30 = vld [vmem:[%s1407_s1 + $0xf8] sm:$0xff]   ;;  %v1074_v35 = vld [vmem:[%s1407_s1 + $0x140] sm:$0xff]   ;;  %v159_v39 = vcombine.high %v22_v34, %v22_v34  ;;  %v166_v42 = vrot.slane %v22_v34, %v1273_v41 }
   0xb   :  { %v1067_v26 = vld [vmem:[%s1407_s1 + $0x30] sm:$0xff]   ;;  %v1071_v31 = vld [vmem:[%s1407_s1 + $0x38] sm:$0xff]   ;;  %v1075_v38 = vld [vmem:[%s1407_s1 + $0x1c0] sm:$0xff]  }
   0xc   :  { %937 = vmatpush3.bf16.msra.mxu0 %v1051_v10  ;;  %v1068_v27 = vld [vmem:[%s1407_s1 + $0xb0] sm:$0xff]   ;;  %v1072_v32 = vld [vmem:[%s1407_s1 + $0xb8] sm:$0xff]   ;;  %v1277_v43 = vrot.slane %v159_v39, %v1273_v41  ;;  %v174_v44 = vcombine.high %v166_v42, %v166_v42  ;;  %v182_v45 = vrot.slane %v166_v42, %v1273_v41  ;;  %v1076_v47 = vld [vmem:[%s1407_s1 + $0x100] sm:$0xff]  }
   0xd   :  { %959 = vmatpush3.bf16.msra.mxu1 %v1052_v11  ;;  %938 = vmatprep.subr.bf16.mxu0 %v1053_v12  ;;  %v1077_v49 = vld [vmem:[%s1407_s1 + $0x180] sm:$0xff]   ;;  %v1078_v52 = vld [vmem:[%s1407_s1 + $0x148] sm:$0xff]   ;;  %v1082_v58 = vld [vmem:[%s1407_s1 + $0x150] sm:$0xff]  }
   0xe   :  { %960 = vmatprep.subr.bf16.mxu1 %v1054_v13  ;;  %v175_v46 = vcombine.high %v1277_v43, %v1277_v43  ;;  %v196_v48 = vrot.slane %v174_v44, %v1273_v41  ;;  %v204_v51 = vcombine.high %v182_v45, %v182_v45  ;;  %v1079_v54 = vld [vmem:[%s1407_s1 + $0x1c8] sm:$0xff]   ;;  %v1083_v59 = vld [vmem:[%s1407_s1 + $0x1d0] sm:$0xff]   ;;  %v1086_v62 = vld [vmem:[%s1407_s1 + $0x158] sm:$0xff]  }
   0xf   :  { %v1080_v55 = vld [vmem:[%s1407_s1 + $0x108] sm:$0xff]   ;;  %v1084_v60 = vld [vmem:[%s1407_s1 + $0x110] sm:$0xff]   ;;  %v1087_v63 = vld [vmem:[%s1407_s1 + $0x1d8] sm:$0xff]  }
  0x10   :  { %939 = vmatpush3.bf16.msra.mxu0 %v1055_v14  ;;  %v203_v50 = vrot.slane %v175_v46, %v1273_v41  ;;  %632 = vmatprep.mubr.bf16.mxu0 %v196_v48  ;;  %v206_v53 = vcombine.high %v196_v48, %v196_v48  ;;  %v1081_v57 = vld [vmem:[%s1407_s1 + $0x188] sm:$0xff]   ;;  %v1085_v61 = vld [vmem:[%s1407_s1 + $0x190] sm:$0xff]   ;;  %v1088_v0 = vld [vmem:[%s1407_s1 + $0x118] sm:$0xff]  }
  0x11   :  { %961 = vmatpush3.bf16.msra.mxu1 %v1056_v15  ;;  %940 = vmatprep.subr.bf16.mxu0 %v1057_v16  ;;  %v1089_v1 = vld [vmem:[%s1407_s1 + $0x198] sm:$0xff]   ;;  %v1090_v2 = vld [vmem:[%s1407_s1 + $0x160] sm:$0xff]   ;;  %v1094_v6 = vld [vmem:[%s1407_s1 + $0x168] sm:$0xff]  }
  0x12   :  { %962 = vmatprep.subr.bf16.mxu1 %v1058_v17  ;;  %v207_v56 = vcombine.high %v203_v50, %v203_v50  ;;  %672 = vmatprep.mubr.bf16.mxu1 %v206_v53  ;;  %v1091_v3 = vld [vmem:[%s1407_s1 + $0x1e0] sm:$0xff]   ;;  %v1095_v7 = vld [vmem:[%s1407_s1 + $0x1e8] sm:$0xff]   ;;  %v1098_v10 = vld [vmem:[%s1407_s1 + $0x170] sm:$0xff]  }
  0x13   :  { %v1092_v4 = vld [vmem:[%s1407_s1 + $0x120] sm:$0xff]   ;;  %v1096_v8 = vld [vmem:[%s1407_s1 + $0x128] sm:$0xff]   ;;  %v1099_v11 = vld [vmem:[%s1407_s1 + $0x1f0] sm:$0xff]  }
  0x14   :  { %941 = vmatpush3.bf16.msra.mxu0 %v1059_v18  ;;  %v1093_v5 = vld [vmem:[%s1407_s1 + $0x1a0] sm:$0xff]   ;;  %v1097_v9 = vld [vmem:[%s1407_s1 + $0x1a8] sm:$0xff]   ;;  %v1100_v12 = vld [vmem:[%s1407_s1 + $0x130] sm:$0xff]  }
  0x15   :  { %963 = vmatpush3.bf16.msra.mxu1 %v1060_v19  ;;  %942 = vmatprep.subr.bf16.mxu0 %v1061_v20 }
  0x16   :  { %964 = vmatprep.subr.bf16.mxu1 %v1062_v21 }
  0x18   :  { %943 = vmatpush3.bf16.msra.mxu0 %v1063_v22 }
  0x19   :  { %965 = vmatpush3.bf16.msra.mxu1 %v1064_v23  ;;  %944 = vmatprep.subr.bf16.mxu0 %v1065_v24 }
  0x1a   :  { %966 = vmatprep.subr.bf16.mxu1 %v1066_v25 }
  0x1c   :  { %945 = vmatpush3.bf16.msra.mxu0 %v1067_v26 }
  0x1d   :  { %967 = vmatpush3.bf16.msra.mxu1 %v1068_v27  ;;  %946 = vmatprep.subr.bf16.mxu0 %v1069_v29 }
  0x1e   :  { %968 = vmatprep.subr.bf16.mxu1 %v1070_v30 }
  0x20   :  { %947 = vmatpush3.bf16.msra.mxu0 %v1071_v31 }
  0x21   :  { %969 = vmatpush3.bf16.msra.mxu1 %v1072_v32  ;;  %976 = vmatprep.subr.bf16.mxu0 %v1074_v35 }
  0x22   :  { %998 = vmatprep.subr.bf16.mxu1 %v1075_v38 }
  0x23   :  { %633 = vmatmul.mubr.bf16.vlgmr.msra.gmra.mrb[0].mxu0 %v182_v45 }
  0x24   :  { %977 = vmatpush3.bf16.msra.mxu0 %v1076_v47  ;;  %673 = vmatmul.mubr.bf16.vlgmr.msra.gmra.mrb[0].mxu1 %v204_v51 }
  0x25   :  { %978 = vmatprep.subr.bf16.mxu0 %v1078_v52  ;;  %999 = vmatpush3.bf16.msra.mxu1 %v1077_v49 }
  0x26   :  { %712 = vmatprep.mubr.bf16.mxu0 %v203_v50  ;;  %1000 = vmatprep.subr.bf16.mxu1 %v1079_v54 }
  0x27   :  { %752 = vmatprep.mubr.bf16.mxu1 %v207_v56 }
  0x28   :  { %979 = vmatpush3.bf16.msra.mxu0 %v1080_v55 }
  0x29   :  { %980 = vmatprep.subr.bf16.mxu0 %v1082_v58  ;;  %1001 = vmatpush3.bf16.msra.mxu1 %v1081_v57 }
  0x2a   :  { %1002 = vmatprep.subr.bf16.mxu1 %v1083_v59 }
  0x2c   :  { %981 = vmatpush3.bf16.msra.mxu0 %v1084_v60 }
  0x2d   :  { %982 = vmatprep.subr.bf16.mxu0 %v1086_v62  ;;  %1003 = vmatpush3.bf16.msra.mxu1 %v1085_v61 }
  0x2e   :  { %1004 = vmatprep.subr.bf16.mxu1 %v1087_v63 }
  0x30   :  { %983 = vmatpush3.bf16.msra.mxu0 %v1088_v0 }
  0x31   :  { %984 = vmatprep.subr.bf16.mxu0 %v1090_v2  ;;  %1005 = vmatpush3.bf16.msra.mxu1 %v1089_v1 }
  0x32   :  { %1006 = vmatprep.subr.bf16.mxu1 %v1091_v3 }
  0x34   :  { %985 = vmatpush3.bf16.msra.mxu0 %v1092_v4 }
  0x35   :  { %986 = vmatprep.subr.bf16.mxu0 %v1094_v6  ;;  %1007 = vmatpush3.bf16.msra.mxu1 %v1093_v5 }
  0x36   :  { %1008 = vmatprep.subr.bf16.mxu1 %v1095_v7 }
  0x38   :  { %987 = vmatpush3.bf16.msra.mxu0 %v1096_v8 }
  0x39   :  { %10 = vsyncpa [#allocation3], 0  ;;  %988 = vmatprep.subr.bf16.mxu0 %v1098_v10  ;;  %v1102_v13 = vld [vmem:[%s1407_s1 + $0x178] sm:$0xff]   ;;  %1009 = vmatpush3.bf16.msra.mxu1 %v1097_v9  ;;  %v1101_v14 = vld [vmem:[%s1407_s1 + $0x1b0] sm:$0xff]   ;;  %v189_v17 = vrot.slane %v1277_v43, %v1273_v41  ;;  %v1135_v21 = vmov 0.0   ;;  %vm1136_vm0 = vmmov 0  }
  0x3a   :  { %1010 = vmatprep.subr.bf16.mxu1 %v1099_v11  ;;  %v1103_v15 = vld [vmem:[%s1407_s1 + $0x1f8] sm:$0xff]   ;;  %v1106_v20 = vld [vmem:[%s1409_s3] sm:$0xff]   ;;  %v1107_v22 = vld [vmem:[%s1409_s3 + $0x8] sm:$0xff]   ;;  %vm801_vm1 = vcmask 523264   ;;  %s1137_s29 = smov [#allocation2]   ;;  %vm845_vm2 = vcmask 74752  }
  0x3b   :  { %v1104_v16 = vld [vmem:[%s1407_s1 + $0x138] sm:$0xff]   ;;  %v205_v19 = vcombine.high %v189_v17, %v189_v17  ;;  %v1108_v23 = vld [vmem:[%s1409_s3 + $0x10] sm:$0xff]   ;;  %v861_v26 = vld [vmem:[%s1408_s2] ss:$0 sm:$0xff]  ;;  %s853_s30 = sshll.u32 %s1137_s29, 4  ;;  %s854_s30 = int_to_ptr.vmem [resolvable:$true] %s853_s30 }
  0x3c   :  { %989 = vmatpush3.bf16.msra.mxu0 %v1100_v12  ;;  %v1105_v18 = vld [vmem:[%s1407_s1 + $0x1b8] sm:$0xff]   ;;  %v926_v52 = vld [vmem:[%s1410_s4] ss:$0 sm:$0xff]  ;;  %s1110_s6 = scalar_lea.vmem %s854_s30, 32  ;;  %p1115_p1 = scmp.lt.s32.totalorder %s854_s30, %s854_s30 }
  0x3d   :  { %990 = vmatprep.subr.bf16.mxu0 %v1102_v13  ;;  %1011 = vmatpush3.bf16.msra.mxu1 %v1101_v14  ;;  %v1109_v24 = vld [vmem:[%s1409_s3 + $0x18] sm:$0xff]   ;;  %p1111_p0 = scmp.ne.s32.totalorder %s854_s30, %s1110_s6  ;;  %p1116_p2 = scmp.lt.s32.totalorder %s1110_s6, %s1110_s6 }
  0x3e   :  { %1012 = vmatprep.subr.bf16.mxu1 %v1103_v15 }
  0x3f   :  { %p1117_p3 = por %p1116_p2, %p1115_p1 }
  0x40   :  { %991 = vmatpush3.bf16.msra.mxu0 %v1104_v16 }
  0x41   :  { %1013 = vmatpush3.bf16.msra.mxu1 %v1105_v18  ;;  %1025 = vmatprep.subr.bf16.mxu0 %v1135_v21  ;;  %p1118_p4 = pnand %p1117_p3, %p1111_p0 }
  0x43   :  { %713 = vmatmul.mubr.bf16.vlgmr.msra.gmra.mrb[4].mxu0 %v189_v17 }
  0x44   :  { %753 = vmatmul.mubr.bf16.vlgmr.msra.gmra.mrb[4].mxu1 %v205_v19  ;;  %1026 = vmatpush3.bf16.msra.mxu0 %v1106_v20 }
  0x45   :  { %1027 = vmatprep.subr.bf16.mxu0 %v1135_v21  ;;  %1033 = vmatprep.mubr.msk.bf16.mxu0 %vm1136_vm0, %v1135_v21 }
  0x48   :  { %1028 = vmatpush3.bf16.msra.mxu0 %v1107_v22 }
  0x49   :  { %1029 = vmatprep.subr.bf16.mxu0 %v1135_v21 }
  0x4c   :  { %1030 = vmatpush3.bf16.msra.mxu0 %v1108_v23 }
  0x4d   :  { %1031 = vmatprep.subr.bf16.mxu0 %v1135_v21 }
  0x50   :  { %1032 = vmatpush3.bf16.msra.mxu0 %v1109_v24 }
  0xf6   :  { %v948_v25 = vpop.f32.mrb[0].mxu0 }
  0xf7   :  { %v949_v27 = vpop.f32.mrb[1].mxu0  ;;  %v970_v28 = vpop.f32.mrb[0].mxu1 }
  0xf8   :  { %v950_v29 = vadd.f32 %v949_v27, %v948_v25  ;;  %v951_v30 = vpop.f32.mrb[2].mxu0  ;;  %v971_v31 = vpop.f32.mrb[1].mxu1 }
  0xf9   :  { %v952_v32 = vpop.f32.mrb[3].mxu0  ;;  %v972_v34 = vadd.f32 %v971_v31, %v970_v28  ;;  %v973_v35 = vpop.f32.mrb[2].mxu1 }
  0xfa   :  { %v635_v33 = vadd.f32 %v950_v29, %v861_v26  ;;  %v974_v36 = vpop.f32.mrb[3].mxu1 }
  0xfc   :  { %v675_v37 = vadd.f32 %v972_v34, %v635_v33 }
 0x116   :  { %v992_v38 = vpop.f32.mrb[4].mxu0 }
 0x117   :  { %v993_v39 = vpop.f32.mrb[5].mxu0  ;;  %v1014_v40 = vpop.f32.mrb[4].mxu1 }
 0x118   :  { %v994_v41 = vadd.f32 %v993_v39, %v992_v38  ;;  %v995_v42 = vpop.f32.mrb[6].mxu0  ;;  %v1015_v43 = vpop.f32.mrb[5].mxu1 }
 0x119   :  { %v996_v44 = vpop.f32.mrb[7].mxu0  ;;  %v1016_v46 = vadd.f32 %v1015_v43, %v1014_v40  ;;  %v1017_v47 = vpop.f32.mrb[6].mxu1 }
 0x11a   :  { %v715_v45 = vadd.f32 %v994_v41, %v675_v37  ;;  %v1018_v48 = vpop.f32.mrb[7].mxu1 }
 0x11c   :  { %v755_v49 = vadd.f32 %v1016_v46, %v715_v45 }
 0x11e   :  { %v760_v50 = vmax.f32 %v755_v49, 0.0 }
 0x120   :  { %v761_v51 = vpack.c.bf16 %v760_v50, %v760_v50 }
 0x122   :  { %1034 = vmatmul.mubr.msk.bf16.vlgmr.msra.gmra.mrb[8].mxu0 %vm801_vm1, %v761_v51 }
 0x1f5   :  { %v839_v53 = vpop.f32.mrb[8].mxu0 }
 0x1f6   :  { %v840_v54 = vadd.f32 %v926_v52, %v839_v53  ;;  %v1035_v55 = vpop.f32.mrb[9].mxu0 }
 0x1f7   :  { %v842_v56 = vpop.f32.mrb[10].mxu0 }
 0x1f8   :  { %v1036_v57 = vpop.f32.mrb[11].mxu0  ;;  %846 = vst.msk [vmem:[#allocation2] sm:$0x3] %vm845_vm2, %v840_v54 }
 0x1f9   :  { %1121 = shalt.err (!%p1118_p4)
}
 0x1fa   :  { %s1122_s4 = scalar_lea.hbm %s1411_s5, 32 }
 0x1fb   :  { %p1123_p5 = scmp.ne.s32.totalorder %s1411_s5, %s1122_s4  ;;  %p1126_p6 = scmp.lt.u32.totalorder %s1122_s4, %s1411_s5 }
 0x1fd   :  { %p1128_p7 = pnand %p1126_p6, %p1123_p5 }
 0x1ff   :  { %1131 = shalt.err (!%p1128_p7)
}
 0x200   :  { %856 = dma.vmem_to_hbm [thread:$0]  %s854_s30, 32, %s1411_s5, [#allocation3]  }
 0x201   :  { %1132 = dma.done.wait [#allocation3], 32  }
 0x202   :  { %1133 = vsyncadd [#allocation3], 4294967264 }
 0x203   :  { %860 = vsyncpa [#allocation3], 1 }

// kernel: net_forward.6
= control target key start
LH: loop header
LB: loop body
LE: loop exit
PB: predicated region body
PF: predicated region fallthrough
CT: control target
= control target key end

     0   :  { %s2476_s12 = smov 0   ;;  %s3164_s0 = inlined_call_operand.vmem [shape: bf16[2,6,6,128], index: 0, kind: input, shape index: {}]   ;;  %s3165_s1 = inlined_call_operand.vmem [shape: bf16[9,128,256], index: 1, kind: input, shape index: {}]   ;;  %s3166_s2 = inlined_call_operand.vmem [shape: f32[1,256], index: 2, kind: input, shape index: {}]   ;;  %s3167_s3 = inlined_call_operand.vmem [shape: bf16[2,4,4,64], index: 3, kind: output, shape index: {}]  }
   0x1 LB: > { %s1891_s13 = sadd.s32 4294967295, %s2451_s12   ;;  %p1895_p0 = scmp.ge.s32.totalorder %s2451_s12, 1  ;;  %s2451_s12 = sphi %s2476_s12, %s13_s12  }
   0x2   : > { %p137_p1 = scmp.lt.s32.totalorder %s2451_s12, 3 }
   0x4   : > { %p138_p2 = pnand %p1895_p0, %p137_p1 }
   0x5   : > { %v2224_v0 = vld [vmem:[%s3165_s1 + $0x84] ss:$8 sps:$4 sm:$0xff] (!%p138_p2)   ;;  %v2453_v2 = vmov (!%p138_p2), 0   ;;  %v2228_v3 = vld [vmem:[%s3165_s1 + $0x80] ss:$8 sps:$4 sm:$0xff] (!%p138_p2)   ;;  %p161_p3 = scmp.lt.s32.totalorder (!%p138_p2), %s1891_s13, 1  ;;  %v201_v21 = vlaneseq (!%p138_p2) }
   0x6   : > { %141 = sbr.rel (%p138_p2) target bundleno = 524 (0x20c), region = 32  ;;  %v2226_v1 = vld [vmem:[%s3165_s1 + $0x204] ss:$8 sps:$4 sm:$0xff] (!%p138_p2)   ;;  %440 = vmatprep.mubr.bf16.mxu1 (!%p138_p2), %v2453_v2  ;;  %1109 = vmatprep.mubr.bf16.mxu0 (!%p138_p2), %v2453_v2  ;;  %v2229_v4 = vld [vmem:[%s3165_s1 + $0x200] ss:$8 sps:$4 sm:$0xff] (!%p138_p2)   ;;  %vm592_vm5 = vcmask (!%p138_p2), 1040384  }
   0x7   : > { %408 = vmatprep.subr.bf16.mxu1 (!%p138_p2), %v2224_v0  ;;  %1077 = vmatprep.subr.bf16.mxu0 (!%p138_p2), %v2226_v1  ;;  %v2230_v5 = vld [vmem:[%s3165_s1 + $0x94] ss:$8 sps:$4 sm:$0xff] (!%p138_p2)   ;;  %v2234_v7 = vld [vmem:[%s3165_s1 + $0x90] ss:$8 sps:$4 sm:$0xff] (!%p138_p2)   ;;  %v2236_v9 = vld [vmem:[%s3165_s1 + $0xa4] ss:$8 sps:$4 sm:$0xff] (!%p138_p2)  }
   0x8   : > { %409 = vmatpush1.bf16.msra.mxu1 (!%p138_p2), %v2228_v3  ;;  %1078 = vmatpush1.bf16.msra.mxu0 (!%p138_p2), %v2229_v4  ;;  %v2232_v6 = vld [vmem:[%s3165_s1 + $0x214] ss:$8 sps:$4 sm:$0xff] (!%p138_p2)   ;;  %v2235_v8 = vld [vmem:[%s3165_s1 + $0x210] ss:$8 sps:$4 sm:$0xff] (!%p138_p2)   ;;  %v2238_v10 = vld [vmem:[%s3165_s1 + $0x224] ss:$8 sps:$4 sm:$0xff] (!%p138_p2)  }
   0x9   : > { %410 = vmatprep.subr.bf16.mxu1 (!%p138_p2), %v2230_v5  ;;  %1079 = vmatprep.subr.bf16.mxu0 (!%p138_p2), %v2232_v6  ;;  %v2240_v11 = vld [vmem:[%s3165_s1 + $0xa0] ss:$8 sps:$4 sm:$0xff] (!%p138_p2)   ;;  %v2242_v13 = vld [vmem:[%s3165_s1 + $0xb4] ss:$8 sps:$4 sm:$0xff] (!%p138_p2)   ;;  %v2246_v15 = vld [vmem:[%s3165_s1 + $0xb0] ss:$8 sps:$4 sm:$0xff] (!%p138_p2)  }
   0xa   : > { %v2241_v12 = vld [vmem:[%s3165_s1 + $0x220] ss:$8 sps:$4 sm:$0xff] (!%p138_p2)   ;;  %v2244_v14 = vld [vmem:[%s3165_s1 + $0x234] ss:$8 sps:$4 sm:$0xff] (!%p138_p2)   ;;  %v2247_v16 = vld [vmem:[%s3165_s1 + $0x230] ss:$8 sps:$4 sm:$0xff] (!%p138_p2)  }
   0xb   : > { %v2248_v17 = vld [vmem:[%s3165_s1 + $0xc4] ss:$8 sps:$4 sm:$0xff] (!%p138_p2)   ;;  %v2454_v19 = vmov (!%p138_p2), 1983009808   ;;  %v2252_v22 = vld [vmem:[%s3165_s1 + $0xc0] ss:$8 sps:$4 sm:$0xff] (!%p138_p2)  }
   0xc   : > { %411 = vmatpush1.bf16.msra.mxu1 (!%p138_p2), %v2234_v7  ;;  %1080 = vmatpush1.bf16.msra.mxu0 (!%p138_p2), %v2235_v8  ;;  %v2250_v18 = vld [vmem:[%s3165_s1 + $0x244] ss:$8 sps:$4 sm:$0xff] (!%p138_p2)   ;;  %v199_v20 = vunpack.c.l.s4 (!%p138_p2), %v2454_v19  ;;  %v2253_v23 = vld [vmem:[%s3165_s1 + $0x240] ss:$8 sps:$4 sm:$0xff] (!%p138_p2)   ;;  %v2254_v24 = vld [vmem:[%s3165_s1 + $0xd4] ss:$8 sps:$4 sm:$0xff] (!%p138_p2)  }
   0xd   : > { %412 = vmatprep.subr.bf16.mxu1 %v2236_v9  ;;  %1081 = vmatprep.subr.bf16.mxu0 %v2238_v10  ;;  %s3177_s13 = smov (!%p161_p3, %s1891_s13), 1  ;;  %v2256_v25 = vld [vmem:[%s3165_s1 + $0x254] ss:$8 sps:$4 sm:$0xff]   ;;  %v2559_v27 = vshrl.u32 %v201_v21, 7  ;;  %vm230_vm0 = vsmask.f32 1280 }
   0xe   : > { %s2212_s6 = smul.u32 24, %s3177_s13  ;;  %v200_v26 = vunpack.c.0.s8 %v199_v20  ;;  %v2258_v28 = vld [vmem:[%s3165_s1 + $0xd0] ss:$8 sps:$4 sm:$0xff]   ;;  %vm231_vm1 = vsmask.f32 3336  ;;  %vm593_vm6 = vcmask 1042434  }
   0xf   : > { %v2259_v29 = vld [vmem:[%s3165_s1 + $0x250] ss:$8 sps:$4 sm:$0xff]   ;;  %v2260_v30 = vld [vmem:[%s3165_s1 + $0xe4] ss:$8 sps:$4 sm:$0xff]   ;;  %vm233_vm2 = vsmask.f32 5392  ;;  %vm2651_vm4 = vmor %vm230_vm0, %vm231_vm1 }
  0x10   : > { %413 = vmatpush1.bf16.msra.mxu1 %v2240_v11  ;;  %1082 = vmatpush1.bf16.msra.mxu0 %v2241_v12  ;;  %v2262_v31 = vld [vmem:[%s3165_s1 + $0x264] ss:$8 sps:$4 sm:$0xff]   ;;  %s2576_s19 = scalar_lea.vmem %s3164_s0, %s2212_s6  ;;  %v2579_v32 = vsub.s32 %v200_v26, %v2559_v27  ;;  %v2264_v33 = vld [vmem:[%s3165_s1 + $0xe0] ss:$8 sps:$4 sm:$0xff]   ;;  %vm235_vm3 = vsmask.f32 7448  ;;  %vm2672_vm7 = vmor %vm2651_vm4, %vm233_vm2 }
  0x11   : > { %414 = vmatprep.subr.bf16.mxu1 %v2242_v13  ;;  %1083 = vmatprep.subr.bf16.mxu0 %v2244_v14  ;;  %v2265_v34 = vld [vmem:[%s3165_s1 + $0x260] ss:$8 sps:$4 sm:$0xff]   ;;  %v2266_v35 = vld [vmem:[%s3165_s1 + $0xf4] ss:$8 sps:$4 sm:$0xff]   ;;  %v2594_v37 = vld [vmem:[%s2576_s19 + $0x4] sm:$0x7] }
  0x12   : > { %v2591_v36 = vld [vmem:[%s2576_s19] sm:$0x7]  ;;  %v2597_v38 = vld [vmem:[%s2576_s19 + $0x8] sm:$0x7]  ;;  %v2268_v39 = vld [vmem:[%s3165_s1 + $0x274] ss:$8 sps:$4 sm:$0xff]   ;;  %v2611_v42 = vrot.slane %v2594_v37, %v2579_v32 }
  0x13   : > { %v2603_v40 = vld [vmem:[%s2576_s19 + $0xc] sm:$0x7]  ;;  %v2607_v41 = vrot.slane %v2591_v36, %v2579_v32  ;;  %v2615_v43 = vrot.slane %v2597_v38, %v2579_v32  ;;  %v2618_v44 = vld [vmem:[%s2576_s19 + $0x10] sm:$0x7]  ;;  %vm2682_vm8 = vmor %vm2672_vm7, %vm235_vm3  ;;  %vm595_vm10 = vcmask 1044484   ;;  %vm597_vm12 = vcmask 1046534  }
  0x14   : > { %415 = vmatpush1.bf16.msra.mxu1 %v2246_v15  ;;  %1084 = vmatpush1.bf16.msra.mxu0 %v2247_v16  ;;  %v2270_v45 = vld [vmem:[%s3165_s1 + $0xf0] ss:$8 sps:$4 sm:$0xff]   ;;  %v2628_v47 = vrot.slane %v2603_v40, %v2579_v32  ;;  %v2632_v48 = vrot.slane %v2618_v44, %v2579_v32  ;;  %v2274_v49 = vld [vmem:[%s3165_s1 + $0x4] ss:$8 sps:$4 sm:$0xff]   ;;  %v2643_v51 = vcombine.high %v2611_v42, %v2611_v42  ;;  %v252_v58 = vshrl.u32 %v2611_v42, 16  ;;  %vm594_vm9 = vmor %vm592_vm5, %vm593_vm6  ;;  %s2455_s6 = smov 64  }
  0x15   : > { %416 = vmatprep.subr.bf16.mxu1 %v2248_v17  ;;  %1085 = vmatprep.subr.bf16.mxu0 %v2250_v18  ;;  %v2271_v46 = vld [vmem:[%s3165_s1 + $0x270] ss:$8 sps:$4 sm:$0xff]   ;;  %v2639_v50 = vcombine.high %v2607_v41, %v2607_v41  ;;  %v2647_v52 = vcombine.high %v2615_v43, %v2615_v43  ;;  %v238_v54 = vshrl.u32 %v2607_v41, 16  ;;  %v2277_v55 = vld [vmem:[%s3165_s1 + $0x284] ss:$8 sps:$4 sm:$0xff]   ;;  %v241_v57 = vshll.u32 %v2607_v41, 16  ;;  %vm596_vm11 = vmor %vm594_vm9, %vm595_vm10 }
  0x16   : > { %v2661_v56 = vcombine.high %v2628_v47, %v2628_v47  ;;  %v255_v59 = vshll.u32 %v2611_v42, 16  ;;  %v261_v62 = vshll.u32 %v2643_v51, 16  ;;  %v266_v63 = vshrl.u32 %v2615_v43, 16  ;;  %vm2735_vm13 = vmor %vm596_vm11, %vm597_vm12  ;;  %s2179_s7 = sshll.u32 %s3177_s13, 3 }
  0x17   : > { %v240_v60 = vrot.slane %v238_v54, 6  ;;  %v247_v61 = vshll.u32 %v2639_v50, 16  ;;  %v243_v1 = vrot.slane %v241_v57, 7  ;;  %v254_v3 = vrot.slane %v252_v58, 6  ;;  %s170_s10 = scalar_lea.vmem %s3167_s3, %s2179_s7 }
  0x18   : > { %417 = vmatpush1.bf16.msra.mxu1 %v2252_v22  ;;  %1086 = vmatpush1.bf16.msra.mxu0 %v2253_v23  ;;  %v257_v4 = vrot.slane %v255_v59, 7  ;;  %v269_v5 = vshll.u32 %v2615_v43, 16  ;;  %v263_v7 = vrot.slane %v261_v62, 7  ;;  %v268_v8 = vrot.slane %v266_v63, 6 }
  0x19   : > { %418 = vmatprep.subr.bf16.mxu1 %v2254_v24  ;;  %1087 = vmatprep.subr.bf16.mxu0 %v2256_v25  ;;  %v249_v6 = vrot.slane %v247_v61, 7  ;;  %v275_v9 = vshll.u32 %v2647_v52, 16  ;;  %v244_v10 = vor.u32 %v243_v1, %v240_v60  ;;  %v280_v13 = vshrl.u32 %v2628_v47, 16 }
  0x1a   : > { %v258_v11 = vor.u32 %v257_v4, %v254_v3  ;;  %v271_v12 = vrot.slane %v269_v5, 7  ;;  %v283_v16 = vshll.u32 %v2628_v47, 16  ;;  %v289_v17 = vshll.u32 %v2661_v56, 16 }
  0x1b   : > { %v277_v15 = vrot.slane %v275_v9, 7  ;;  %v2690_v18 = vcombine.high %v2632_v48, %v2632_v48  ;;  %v245_v19 = vrot.slane %v244_v10, 2  ;;  %v282_v22 = vrot.slane %v280_v13, 6  ;;  %v2272_v13 = vld [vmem:[%s3165_s1] ss:$8 sps:$4 sm:$0xff]  }
  0x1c   : > { %419 = vmatpush1.bf16.msra.mxu1 %v2258_v28  ;;  %1088 = vmatpush1.bf16.msra.mxu0 %v2259_v29  ;;  %v259_v20 = vrot.slane %v258_v11, 2  ;;  %v272_v21 = vor.u32 %v271_v12, %v268_v8  ;;  %v285_v23 = vrot.slane %v283_v16, 7  ;;  %v291_v24 = vrot.slane %v289_v17, 7 }
  0x1d   : > { %420 = vmatprep.subr.bf16.mxu1 %v2260_v30  ;;  %1089 = vmatprep.subr.bf16.mxu0 %v2262_v31  ;;  %v949_v25 = vshrl.u32 %v2632_v48, 16  ;;  %v952_v26 = vshll.u32 %v2632_v48, 16  ;;  %v250_v28 = vsel %vm2682_vm8, %v245_v19, %v249_v6  ;;  %v958_v31 = vshll.u32 %v2690_v18, 16 }
  0x1e   : > { %v264_v29 = vsel %vm2682_vm8, %v259_v20, %v263_v7  ;;  %v273_v30 = vrot.slane %v272_v21, 2  ;;  %v795_v16 = vcombine.low %v2594_v37, %v2597_v38  ;;  %v2280_v21 = vld [vmem:[%s3165_s1 + $0x14] ss:$8 sps:$4 sm:$0xff]   ;;  %v605_v14 = vrot.slane %v2643_v51, 7 }
  0x1f   : > { %vm1831_vm14 = vcmask 517120  }
  0x20   : > { %421 = vmatpush1.bf16.msra.mxu1 %v2264_v33  ;;  %1090 = vmatpush1.bf16.msra.mxu0 %v2265_v34  ;;  %v286_v33 = vor.u32 %v285_v23, %v282_v22  ;;  %v310_v34 = vcombine.low %v250_v28, %v264_v29  ;;  %v796_v23 = vcombine.low %v2603_v40, %v2618_v44  ;;  %v2313_v22 = vld [vmem:[%s3165_s1 + $0x2e4] ss:$8 sps:$4 sm:$0xff]  }
  0x21   : > { %422 = vmatprep.subr.bf16.mxu1 %v2266_v35  ;;  %1091 = vmatprep.subr.bf16.mxu0 %v2268_v39  ;;  %v177_v35 = vld [vmem:[%s2576_s19 + $0x14] sm:$0x7]  ;;  %v951_v39 = vrot.slane %v949_v25, 6  ;;  %v2746_v25 = vrot.slane %v795_v16, %v2579_v32  ;;  %v2299_v16 = vld [vmem:[%s3165_s1 + $0x2c0] ss:$8 sps:$4 sm:$0xff]  }
  0x22   : > { %v287_v53 = vrot.slane %v286_v33, 2  ;;  %v318_v62 = vrot.slane %v310_v34, %v2579_v32  ;;  %v1308_v0 = vcombine.low %v2618_v44, %v177_v35  ;;  %v1950_v44 = vrot.slane %v2628_v47, 9  ;;  %v2286_v47 = vld [vmem:[%s3165_s1 + $0x24] ss:$8 sps:$4 sm:$0xff]  }
  0x23   : > { %v1948_v33 = vrot.slane %v2611_v42, 9  ;;  %v1947_v42 = vrot.slane %v2607_v41, 9  ;;  %v2775_v51 = vrot.slane %v796_v23, %v2579_v32  ;;  %v2289_v41 = vld [vmem:[%s3165_s1 + $0x2a4] ss:$8 sps:$4 sm:$0xff]   ;;  %v451_v23 = vcombine.low %v2591_v36, %v2594_v37  ;;  %v2311_v36 = vld [vmem:[%s3165_s1 + $0x2e0] ss:$8 sps:$4 sm:$0xff]  }
  0x24   : > { %423 = vmatpush1.bf16.msra.mxu1 %v2270_v45  ;;  %1092 = vmatpush1.bf16.msra.mxu0 %v2271_v46  ;;  %v954_v45 = vrot.slane %v952_v26, 7  ;;  %v278_v46 = vsel %vm2682_vm8, %v273_v30, %v277_v15  ;;  %v292_v61 = vsel %vm2682_vm8, %v287_v53, %v291_v24  ;;  %v2722_v8 = vrot.slane %v1308_v0, %v2579_v32  ;;  %v2319_v37 = vld [vmem:[%s3165_s1 + $0x2f4] ss:$8 sps:$4 sm:$0xff]  }
  0x25   : > { %549 = vmatprep.subr.bf16.mxu1 %v2274_v49  ;;  %1243 = vmatprep.subr.bf16.mxu0 %v2277_v55  ;;  %v2703_v49 = vrot.slane %v177_v35, %v2579_v32  ;;  %v960_v55 = vrot.slane %v958_v31, 7  ;;  %v979_v57 = vcombine.low %v264_v29, %v278_v46  ;;  %v311_v1 = vcombine.low %v278_v46, %v292_v61  ;;  %v2283_v29 = vld [vmem:[%s3165_s1 + $0x294] ss:$8 sps:$4 sm:$0xff]  }
  0x26   : > { %v955_v54 = vor.u32 %v954_v45, %v951_v39  ;;  %v1949_v15 = vrot.slane %v2615_v43, 9  ;;  %v2275_v43 = vld [vmem:[%s3165_s1 + $0x280] ss:$8 sps:$4 sm:$0xff]   ;;  %v609_v24 = vrot.slane %v2647_v52, 7  ;;  %v613_v30 = vrot.slane %v2661_v56, 7 }
  0x27   : > { %v2707_v58 = vcombine.high %v2703_v49, %v2703_v49  ;;  %v1454_v59 = vshrl.u32 %v2703_v49, 16  ;;  %v1457_v60 = vshll.u32 %v2703_v49, 16  ;;  %v987_v7 = vrot.slane %v979_v57, %v2579_v32  ;;  %v2278_v52 = vld [vmem:[%s3165_s1 + $0x10] ss:$8 sps:$4 sm:$0xff]  }
  0x28   : > { %v956_v63 = vrot.slane %v955_v54, 2  ;;  %v325_v9 = vrot.slane %v311_v1, %v2579_v32  ;;  %v2763_v34 = vsel %vm2735_vm13, %v1949_v15, %v609_v24  ;;  %v2770_v56 = vsel %vm2735_vm13, %v1950_v44, %v613_v30  ;;  %v2281_v39 = vld [vmem:[%s3165_s1 + $0x290] ss:$8 sps:$4 sm:$0xff]   ;;  %v2295_v1 = vld [vmem:[%s3165_s1 + $0x2b4] ss:$8 sps:$4 sm:$0xff]  }
  0x29   : > { %v1456_v3 = vrot.slane %v1454_v59, 6  ;;  %v1459_v4 = vrot.slane %v1457_v60, 7  ;;  %v1463_v5 = vshll.u32 %v2707_v58, 16  ;;  %v2047_v35 = vrot.slane %v2632_v48, 9  ;;  %v2304_v15 = vld [vmem:[%s3165_s1 + $0x54] ss:$8 sps:$4 sm:$0xff]  }
  0x2a   : > { %v961_v6 = vsel %vm2682_vm8, %v956_v63, %v960_v55  ;;  %v326_v17 = vcombine.low %v318_v62, %v325_v9  ;;  %v1126_v45 = vrot.slane %v2690_v18, 7  ;;  %v601_v46 = vrot.slane %v2639_v50, 7  ;;  %v2284_v50 = vld [vmem:[%s3165_s1 + $0x20] ss:$8 sps:$4 sm:$0xff]   ;;  %v2314_v44 = vld [vmem:[%s3165_s1 + $0x70] ss:$8 sps:$4 sm:$0xff]  }
  0x2b   : > { %v980_v10 = vcombine.low %v292_v61, %v961_v6  ;;  %v1460_v11 = vor.u32 %v1459_v4, %v1456_v3  ;;  %v1465_v12 = vrot.slane %v1463_v5, 7  ;;  %v633_v53 = vcombine.low %v2763_v34, %v2770_v56  ;;  %v2287_v63 = vld [vmem:[%s3165_s1 + $0x2a0] ss:$8 sps:$4 sm:$0xff]   ;;  %v2290_v5 = vld [vmem:[%s3165_s1 + $0x30] ss:$8 sps:$4 sm:$0xff]  }
  0x2c   : > { %441 = vmatmul.mubr.bf16.vlgmr.msra.gmra.mrb[0].mxu1 %v326_v17  ;;  %v811_v54 = vcombine.low %v2746_v25, %v2775_v51  ;;  %v2144_v55 = vrot.slane %v2703_v49, 9  ;;  %v606_v18 = vsel %vm2735_vm13, %v1948_v33, %v605_v14  ;;  %v602_v57 = vsel %vm2735_vm13, %v1947_v42, %v601_v46  ;;  %v2292_v49 = vld [vmem:[%s3165_s1 + $0x34] ss:$8 sps:$4 sm:$0xff]   ;;  %v2308_v24 = vld [vmem:[%s3165_s1 + $0x60] ss:$8 sps:$4 sm:$0xff]  }
  0x2d   : > { %v994_v19 = vrot.slane %v980_v10, %v2579_v32  ;;  %v1461_v20 = vrot.slane %v1460_v11, 2  ;;  %550 = vmatpush1.bf16.msra.mxu1 %v2272_v13  ;;  %581 = vmatprep.mubr.bf16.mxu1 %v2453_v2  ;;  %v1623_v60 = vrot.slane %v2707_v58, 7  ;;  %v632_v61 = vcombine.low %v602_v57, %v606_v18  ;;  %v2293_v10 = vld [vmem:[%s3165_s1 + $0x2b0] ss:$8 sps:$4 sm:$0xff]   ;;  %v2301_v11 = vld [vmem:[%s3165_s1 + $0x2c4] ss:$8 sps:$4 sm:$0xff]  }
  0x2e   : > { %551 = vmatprep.subr.bf16.mxu1 %v2280_v21  ;;  %v2806_v62 = vrot.slane %v633_v53, %v2579_v32  ;;  %v1127_v0 = vsel %vm2735_vm13, %v2047_v35, %v1126_v45  ;;  %v2296_v13 = vld [vmem:[%s3165_s1 + $0x40] ss:$8 sps:$4 sm:$0xff]   ;;  %v2307_v17 = vld [vmem:[%s3165_s1 + $0x2d4] ss:$8 sps:$4 sm:$0xff]   ;;  %v2305_v21 = vld [vmem:[%s3165_s1 + $0x2d0] ss:$8 sps:$4 sm:$0xff]  }
  0x2f   : > { %v995_v26 = vcombine.low %v987_v7, %v994_v19  ;;  %v1466_v28 = vsel %vm2682_vm8, %v1461_v20, %v1465_v12  ;;  %v1624_v58 = vsel %vm2735_vm13, %v2144_v55, %v1623_v60  ;;  %v2819_v3 = vrot.slane %v632_v61, %v2579_v32  ;;  %v2302_v19 = vld [vmem:[%s3165_s1 + $0x50] ss:$8 sps:$4 sm:$0xff]   ;;  %v2310_v20 = vld [vmem:[%s3165_s1 + $0x64] ss:$8 sps:$4 sm:$0xff]   ;;  %v2323_v35 = vld [vmem:[%s3165_s1 + $0x300] ss:$8 sps:$4 sm:$0xff]  }
  0x30   : > { %v1484_v31 = vcombine.low %v961_v6, %v1466_v28  ;;  %v1642_v4 = vcombine.low %v1127_v0, %v1624_v58  ;;  %v2298_v6 = vld [vmem:[%s3165_s1 + $0x44] ss:$8 sps:$4 sm:$0xff]   ;;  %v1145_v28 = vcombine.low %v606_v18, %v2763_v34  ;;  %v2317_v33 = vld [vmem:[%s3165_s1 + $0x2f0] ss:$8 sps:$4 sm:$0xff]   ;;  %v2333_v42 = vld [vmem:[%s3165_s1 + $0x314] ss:$8 sps:$4 sm:$0xff]  }
  0x31   : > { %1110 = vmatmul.mubr.bf16.vlgmr.msra.gmra.mrb[0].mxu0 %v995_v26  ;;  %552 = vmatpush1.bf16.msra.mxu1 %v2278_v52  ;;  %v648_v7 = vcombine.low %v2819_v3, %v2806_v62  ;;  %v2316_v26 = vld [vmem:[%s3165_s1 + $0x74] ss:$8 sps:$4 sm:$0xff]   ;;  %v2322_v30 = vld [vmem:[%s3165_s1 + $0x104] ss:$8 sps:$4 sm:$0xff]   ;;  %v2331_v46 = vld [vmem:[%s3165_s1 + $0x310] ss:$8 sps:$4 sm:$0xff]  }
  0x32   : > { %1244 = vmatpush1.bf16.msra.mxu0 %v2275_v43  ;;  %1275 = vmatprep.mubr.bf16.mxu0 %v2453_v2  ;;  %v1491_v48 = vrot.slane %v1484_v31, %v2579_v32  ;;  %v452_v43 = vcombine.low %v2597_v38, %v2603_v40  ;;  %v459_v38 = vrot.slane %v451_v23, %v2579_v32  ;;  %v2325_v14 = vld [vmem:[%s3165_s1 + $0x304] ss:$8 sps:$4 sm:$0xff]   ;;  %v2337_v55 = vld [vmem:[%s3165_s1 + $0x320] ss:$8 sps:$4 sm:$0xff]   ;;  %v2340_v18 = vld [vmem:[%s3165_s1 + $0x130] ss:$8 sps:$4 sm:$0xff]  }
  0x33   : > { %1245 = vmatprep.subr.bf16.mxu0 %v2283_v29  ;;  %553 = vmatprep.subr.bf16.mxu1 %v2286_v47  ;;  %v1146_v29 = vcombine.low %v2770_v56, %v1127_v0  ;;  %v1153_v31 = vrot.slane %v1145_v28, %v2579_v32  ;;  %v2320_v47 = vld [vmem:[%s3165_s1 + $0x100] ss:$8 sps:$4 sm:$0xff]   ;;  %v2336_v45 = vld [vmem:[%s3165_s1 + $0x124] ss:$8 sps:$4 sm:$0xff]   ;;  %v2343_v60 = vld [vmem:[%s3165_s1 + $0x330] ss:$8 sps:$4 sm:$0xff]  }
  0x34   : > { %v2799_v59 = vcombine.low %v325_v9, %v1491_v48  ;;  %v2830_v9 = vrot.slane %v1642_v4, %v2579_v32  ;;  %v2884_v40 = vrot.slane %v452_v43, %v2579_v32  ;;  %v2339_v53 = vld [vmem:[%s3165_s1 + $0x324] ss:$8 sps:$4 sm:$0xff]   ;;  %v2334_v48 = vld [vmem:[%s3165_s1 + $0x120] ss:$8 sps:$4 sm:$0xff]   ;;  %v2357_v58 = vld [vmem:[%s3165_s1 + $0x354] ss:$8 sps:$4 sm:$0xff]  }
  0x35   : > { %554 = vmatpush1.bf16.msra.mxu1 %v2284_v50  ;;  %v1160_v52 = vrot.slane %v1146_v29, %v2579_v32  ;;  %v2330_v32 = vld [vmem:[%s3165_s1 + $0x114] ss:$8 sps:$4 sm:$0xff]   ;;  %v2348_v57 = vld [vmem:[%s3165_s1 + $0x144] ss:$8 sps:$4 sm:$0xff]   ;;  %v2346_v61 = vld [vmem:[%s3165_s1 + $0x140] ss:$8 sps:$4 sm:$0xff]  }
  0x36   : > { %1246 = vmatpush1.bf16.msra.mxu0 %v2281_v39  ;;  %555 = vmatprep.subr.bf16.mxu1 %v2292_v49  ;;  %v1650_v12 = vcombine.low %v2806_v62, %v2830_v9  ;;  %v467_v34 = vcombine.low %v459_v38, %v2884_v40  ;;  %v2328_v39 = vld [vmem:[%s3165_s1 + $0x110] ss:$8 sps:$4 sm:$0xff]   ;;  %v2345_v50 = vld [vmem:[%s3165_s1 + $0x334] ss:$8 sps:$4 sm:$0xff]   ;;  %v2351_v49 = vld [vmem:[%s3165_s1 + $0x344] ss:$8 sps:$4 sm:$0xff]  }
  0x37   : > { %1247 = vmatprep.subr.bf16.mxu0 %v2289_v41  ;;  %v1161_v56 = vcombine.low %v1153_v31, %v1160_v52  ;;  %v2342_v41 = vld [vmem:[%s3165_s1 + $0x134] ss:$8 sps:$4 sm:$0xff]   ;;  %v2349_v0 = vld [vmem:[%s3165_s1 + $0x340] ss:$8 sps:$4 sm:$0xff]   ;;  %v2360_v4 = vld [vmem:[%s3165_s1 + $0x164] ss:$8 sps:$4 sm:$0xff]  }
  0x38   : > { %v2379_v23 = vld [vmem:[%s3165_s1 + $0x194] ss:$8 sps:$4 sm:$0xff]   ;;  %v2373_v43 = vld [vmem:[%s3165_s1 + $0x380] ss:$8 sps:$4 sm:$0xff]   ;;  %v2380_v3 = vld [vmem:[%s3165_s1 + $0x390] ss:$8 sps:$4 sm:$0xff]  }
  0x39   : > { %556 = vmatpush1.bf16.msra.mxu1 %v2290_v5  ;;  %v2355_v5 = vld [vmem:[%s3165_s1 + $0x350] ss:$8 sps:$4 sm:$0xff]   ;;  %v2383_v28 = vld [vmem:[%s3165_s1 + $0x1a0] ss:$8 sps:$4 sm:$0xff]   ;;  %v2391_v29 = vld [vmem:[%s3165_s1 + $0x1b4] ss:$8 sps:$4 sm:$0xff]  }
  0x3a   : > { %1248 = vmatpush1.bf16.msra.mxu0 %v2287_v63  ;;  %557 = vmatprep.subr.bf16.mxu1 %v2298_v6  ;;  %v2354_v63 = vld [vmem:[%s3165_s1 + $0x154] ss:$8 sps:$4 sm:$0xff]   ;;  %v2363_v6 = vld [vmem:[%s3165_s1 + $0x364] ss:$8 sps:$4 sm:$0xff]   ;;  %v2389_v38 = vld [vmem:[%s3165_s1 + $0x1b0] ss:$8 sps:$4 sm:$0xff]  }
  0x3b   : > { %1249 = vmatprep.subr.bf16.mxu0 %v2295_v1  ;;  %v2352_v1 = vld [vmem:[%s3165_s1 + $0x150] ss:$8 sps:$4 sm:$0xff]   ;;  %v2395_v31 = vld [vmem:[%s3165_s1 + $0x1c0] ss:$8 sps:$4 sm:$0xff]   ;;  %v2403_v52 = vld [vmem:[%s3165_s1 + $0x1d4] ss:$8 sps:$4 sm:$0xff]  }
  0x3c   : > { %v2429_v25 = vld [vmem:[%s3165_s1 + $0x424] ss:$8 sps:$4 sm:$0xff]   ;;  %v2427_v51 = vld [vmem:[%s3165_s1 + $0x420] ss:$8 sps:$4 sm:$0xff]  }
  0x3d   : > { %558 = vmatpush1.bf16.msra.mxu1 %v2296_v13  ;;  %v2361_v13 = vld [vmem:[%s3165_s1 + $0x360] ss:$8 sps:$4 sm:$0xff]  }
  0x3e   : > { %1250 = vmatpush1.bf16.msra.mxu0 %v2293_v10  ;;  %559 = vmatprep.subr.bf16.mxu1 %v2304_v15  ;;  %v2358_v10 = vld [vmem:[%s3165_s1 + $0x160] ss:$8 sps:$4 sm:$0xff]   ;;  %v2369_v15 = vld [vmem:[%s3165_s1 + $0x374] ss:$8 sps:$4 sm:$0xff]  }
  0x3f   : > { %1251 = vmatprep.subr.bf16.mxu0 %v2301_v11  ;;  %v2366_v11 = vld [vmem:[%s3165_s1 + $0x174] ss:$8 sps:$4 sm:$0xff]  }
  0x41   : > { %560 = vmatpush1.bf16.msra.mxu1 %v2302_v19  ;;  %v2367_v19 = vld [vmem:[%s3165_s1 + $0x370] ss:$8 sps:$4 sm:$0xff]  }
  0x42   : > { %1252 = vmatpush1.bf16.msra.mxu0 %v2299_v16  ;;  %561 = vmatprep.subr.bf16.mxu1 %v2310_v20  ;;  %v2364_v16 = vld [vmem:[%s3165_s1 + $0x170] ss:$8 sps:$4 sm:$0xff]   ;;  %v2375_v20 = vld [vmem:[%s3165_s1 + $0x384] ss:$8 sps:$4 sm:$0xff]  }
  0x43   : > { %1253 = vmatprep.subr.bf16.mxu0 %v2307_v17  ;;  %v2372_v17 = vld [vmem:[%s3165_s1 + $0x184] ss:$8 sps:$4 sm:$0xff]  }
  0x45   : > { %562 = vmatpush1.bf16.msra.mxu1 %v2308_v24  ;;  %v2382_v24 = vld [vmem:[%s3165_s1 + $0x394] ss:$8 sps:$4 sm:$0xff]  }
  0x46   : > { %1254 = vmatpush1.bf16.msra.mxu0 %v2305_v21  ;;  %563 = vmatprep.subr.bf16.mxu1 %v2316_v26  ;;  %v2370_v21 = vld [vmem:[%s3165_s1 + $0x180] ss:$8 sps:$4 sm:$0xff]   ;;  %v2385_v26 = vld [vmem:[%s3165_s1 + $0x1a4] ss:$8 sps:$4 sm:$0xff]  }
  0x47   : > { %1255 = vmatprep.subr.bf16.mxu0 %v2313_v22  ;;  %v1316_v22 = vcombine.low %v2884_v40, %v2722_v8  ;;  %v2377_v8 = vld [vmem:[%s3165_s1 + $0x190] ss:$8 sps:$4 sm:$0xff]   ;;  %v2397_v40 = vld [vmem:[%s3165_s1 + $0x1c4] ss:$8 sps:$4 sm:$0xff]  }
  0x49   : > { %564 = vmatpush1.bf16.msra.mxu1 %v2314_v44  ;;  %v2392_v44 = vld [vmem:[%s3165_s1 + $0x3b0] ss:$8 sps:$4 sm:$0xff]  }
  0x4a   : > { %1256 = vmatpush1.bf16.msra.mxu0 %v2311_v36  ;;  %730 = vmatprep.subr.bf16.mxu1 %v2322_v30  ;;  %v2386_v36 = vld [vmem:[%s3165_s1 + $0x3a0] ss:$8 sps:$4 sm:$0xff]   ;;  %v2400_v30 = vld [vmem:[%s3165_s1 + $0x3c4] ss:$8 sps:$4 sm:$0xff]  }
  0x4b   : > { %1257 = vmatprep.subr.bf16.mxu0 %v2319_v37  ;;  %v2394_v37 = vld [vmem:[%s3165_s1 + $0x3b4] ss:$8 sps:$4 sm:$0xff]  }
  0x4c   : > { %582 = vmatmul.mubr.bf16.vlgmr.msra.gmra.mrb[0].mxu1 %v467_v34  ;;  %v2401_v34 = vld [vmem:[%s3165_s1 + $0x1d0] ss:$8 sps:$4 sm:$0xff]  }
  0x4d   : > { %731 = vmatpush1.bf16.msra.mxu1 %v2320_v47  ;;  %762 = vmatprep.mubr.bf16.mxu1 %v2453_v2  ;;  %v2409_v47 = vld [vmem:[%s3165_s1 + $0x1e4] ss:$8 sps:$4 sm:$0xff]  }
  0x4e   : > { %1258 = vmatpush1.bf16.msra.mxu0 %v2317_v33  ;;  %732 = vmatprep.subr.bf16.mxu1 %v2330_v32  ;;  %v2398_v33 = vld [vmem:[%s3165_s1 + $0x3c0] ss:$8 sps:$4 sm:$0xff]   ;;  %v2412_v32 = vld [vmem:[%s3165_s1 + $0x3e4] ss:$8 sps:$4 sm:$0xff]  }
  0x4f   : > { %1398 = vmatprep.subr.bf16.mxu0 %v2325_v14  ;;  %v2406_v14 = vld [vmem:[%s3165_s1 + $0x3d4] ss:$8 sps:$4 sm:$0xff]  }
  0x51   : > { %1276 = vmatmul.mubr.bf16.vlgmr.msra.gmra.mrb[0].mxu0 %v1161_v56  ;;  %733 = vmatpush1.bf16.msra.mxu1 %v2328_v39  ;;  %v2404_v56 = vld [vmem:[%s3165_s1 + $0x3d0] ss:$8 sps:$4 sm:$0xff]   ;;  %v2410_v39 = vld [vmem:[%s3165_s1 + $0x3e0] ss:$8 sps:$4 sm:$0xff]  }
  0x52   : > { %1399 = vmatpush1.bf16.msra.mxu0 %v2323_v35  ;;  %1430 = vmatprep.mubr.bf16.mxu0 %v2453_v2  ;;  %v2407_v35 = vld [vmem:[%s3165_s1 + $0x1e0] ss:$8 sps:$4 sm:$0xff]  }
  0x53   : > { %1400 = vmatprep.subr.bf16.mxu0 %v2333_v42  ;;  %734 = vmatprep.subr.bf16.mxu1 %v2336_v45  ;;  %v2415_v42 = vld [vmem:[%s3165_s1 + $0x1f4] ss:$8 sps:$4 sm:$0xff]  }
  0x54   : > { %v2418_v45 = vld [vmem:[%s3165_s1 + $0x3f4] ss:$8 sps:$4 sm:$0xff]  }
  0x55   : > { %735 = vmatpush1.bf16.msra.mxu1 %v2334_v48  ;;  %v2423_v48 = vld [vmem:[%s3165_s1 + $0x404] ss:$8 sps:$4 sm:$0xff]  }
  0x56   : > { %1401 = vmatpush1.bf16.msra.mxu0 %v2331_v46  ;;  %736 = vmatprep.subr.bf16.mxu1 %v2342_v41  ;;  %v2413_v46 = vld [vmem:[%s3165_s1 + $0x1f0] ss:$8 sps:$4 sm:$0xff]   ;;  %v2421_v41 = vld [vmem:[%s3165_s1 + $0x400] ss:$8 sps:$4 sm:$0xff]  }
  0x57   : > { %1402 = vmatprep.subr.bf16.mxu0 %v2339_v53  ;;  %v2416_v53 = vld [vmem:[%s3165_s1 + $0x3f0] ss:$8 sps:$4 sm:$0xff]  }
  0x59   : > { %737 = vmatpush1.bf16.msra.mxu1 %v2340_v18  ;;  %v2433_v18 = vld [vmem:[%s3165_s1 + $0x440] ss:$8 sps:$4 sm:$0xff]  }
  0x5a   : > { %1403 = vmatpush1.bf16.msra.mxu0 %v2337_v55  ;;  %738 = vmatprep.subr.bf16.mxu1 %v2348_v57  ;;  %v2426_v55 = vld [vmem:[%s3165_s1 + $0x414] ss:$8 sps:$4 sm:$0xff]  }
  0x5b   : > { %1404 = vmatprep.subr.bf16.mxu0 %v2345_v50  ;;  %v2424_v50 = vld [vmem:[%s3165_s1 + $0x410] ss:$8 sps:$4 sm:$0xff]   ;;  %v2438_v57 = vld [vmem:[%s3165_s1 + $0x454] ss:$8 sps:$4 sm:$0xff]  }
  0x5d   : > { %739 = vmatpush1.bf16.msra.mxu1 %v2346_v61  ;;  %v2439_v61 = vld [vmem:[%s3165_s1 + $0x460] ss:$8 sps:$4 sm:$0xff]  }
  0x5e   : > { %1405 = vmatpush1.bf16.msra.mxu0 %v2343_v60  ;;  %740 = vmatprep.subr.bf16.mxu1 %v2354_v63  ;;  %v2436_v60 = vld [vmem:[%s3165_s1 + $0x450] ss:$8 sps:$4 sm:$0xff]   ;;  %v2444_v63 = vld [vmem:[%s3165_s1 + $0x474] ss:$8 sps:$4 sm:$0xff]  }
  0x5f   : > { %1406 = vmatprep.subr.bf16.mxu0 %v2351_v49  ;;  %v2441_v49 = vld [vmem:[%s3165_s1 + $0x464] ss:$8 sps:$4 sm:$0xff]  }
  0x61   : > { %741 = vmatpush1.bf16.msra.mxu1 %v2352_v1 }
  0x62   : > { %1407 = vmatpush1.bf16.msra.mxu0 %v2349_v0  ;;  %742 = vmatprep.subr.bf16.mxu1 %v2360_v4  ;;  %v2442_v0 = vld [vmem:[%s3165_s1 + $0x470] ss:$8 sps:$4 sm:$0xff]  }
  0x63   : > { %1408 = vmatprep.subr.bf16.mxu0 %v2357_v58 }
  0x65   : > { %743 = vmatpush1.bf16.msra.mxu1 %v2358_v10  ;;  %v1779_v10 = vld [vmem:[%s3166_s2] sm:$0x3] }
  0x66   : > { %1409 = vmatpush1.bf16.msra.mxu0 %v2355_v5  ;;  %744 = vmatprep.subr.bf16.mxu1 %v2366_v11  ;;  %v1787_v11 = vsub.s32 1, %v2559_v27 }
  0x67   : > { %1410 = vmatprep.subr.bf16.mxu0 %v2363_v6  ;;  %v1783_v6 = vsub.s32 0, %v2559_v27 }
  0x69   : > { %745 = vmatpush1.bf16.msra.mxu1 %v2364_v16  ;;  %v1788_v16 = vrot.slane %v1779_v10, %v1787_v11 }
  0x6a   : > { %1411 = vmatpush1.bf16.msra.mxu0 %v2361_v13  ;;  %893 = vmatprep.subr.bf16.mxu1 %v2372_v17  ;;  %v1784_v13 = vrot.slane %v1779_v10, %v1783_v6 }
  0x6b   : > { %1412 = vmatprep.subr.bf16.mxu0 %v2369_v15 }
  0x6c   : > { %763 = vmatmul.mubr.bf16.vlgmr.msra.gmra.mrb[0].mxu1 %v648_v7  ;;  %v2388_v7 = vld [vmem:[%s3165_s1 + $0x3a4] ss:$8 sps:$4 sm:$0xff]  }
  0x6d   : > { %894 = vmatpush1.bf16.msra.mxu1 %v2370_v21  ;;  %925 = vmatprep.mubr.bf16.mxu1 %v2453_v2 }
  0x6e   : > { %1413 = vmatpush1.bf16.msra.mxu0 %v2367_v19  ;;  %895 = vmatprep.subr.bf16.mxu1 %v2379_v23 }
  0x6f   : > { %1574 = vmatprep.subr.bf16.mxu0 %v2375_v20 }
  0x71   : > { %1431 = vmatmul.mubr.bf16.vlgmr.msra.gmra.mrb[0].mxu0 %v1316_v22  ;;  %896 = vmatpush1.bf16.msra.mxu1 %v2377_v8 }
  0x72   : > { %1575 = vmatpush1.bf16.msra.mxu0 %v2373_v43  ;;  %1606 = vmatprep.mubr.bf16.mxu0 %v2453_v2 }
  0x73   : > { %1576 = vmatprep.subr.bf16.mxu0 %v2382_v24  ;;  %897 = vmatprep.subr.bf16.mxu1 %v2385_v26 }
  0x75   : > { %898 = vmatpush1.bf16.msra.mxu1 %v2383_v28 }
  0x76   : > { %1577 = vmatpush1.bf16.msra.mxu0 %v2380_v3  ;;  %899 = vmatprep.subr.bf16.mxu1 %v2391_v29 }
  0x77   : > { %1578 = vmatprep.subr.bf16.mxu0 %v2388_v7 }
  0x79   : > { %900 = vmatpush1.bf16.msra.mxu1 %v2389_v38 }
  0x7a   : > { %1579 = vmatpush1.bf16.msra.mxu0 %v2386_v36  ;;  %901 = vmatprep.subr.bf16.mxu1 %v2397_v40 }
  0x7b   : > { %1580 = vmatprep.subr.bf16.mxu0 %v2394_v37 }
  0x7d   : > { %902 = vmatpush1.bf16.msra.mxu1 %v2395_v31 }
  0x7e   : > { %1581 = vmatpush1.bf16.msra.mxu0 %v2392_v44  ;;  %903 = vmatprep.subr.bf16.mxu1 %v2403_v52 }
  0x7f   : > { %1582 = vmatprep.subr.bf16.mxu0 %v2400_v30 }
  0x81   : > { %904 = vmatpush1.bf16.msra.mxu1 %v2401_v34 }
  0x82   : > { %1583 = vmatpush1.bf16.msra.mxu0 %v2398_v33  ;;  %905 = vmatprep.subr.bf16.mxu1 %v2409_v47 }
  0x83   : > { %1584 = vmatprep.subr.bf16.mxu0 %v2406_v14 }
  0x85   : > { %906 = vmatpush1.bf16.msra.mxu1 %v2407_v35 }
  0x86   : > { %1585 = vmatpush1.bf16.msra.mxu0 %v2404_v56  ;;  %907 = vmatprep.subr.bf16.mxu1 %v2415_v42 }
  0x87   : > { %1586 = vmatprep.subr.bf16.mxu0 %v2412_v32 }
  0x89   : > { %908 = vmatpush1.bf16.msra.mxu1 %v2413_v46 }
  0x8a   : > { %1587 = vmatpush1.bf16.msra.mxu0 %v2410_v39 }
  0x8b   : > { %1588 = vmatprep.subr.bf16.mxu0 %v2418_v45 }
  0x8c   : > { %926 = vmatmul.mubr.bf16.vlgmr.msra.gmra.mrb[0].mxu1 %v811_v54  ;;  %v2432_v54 = vld [vmem:[%s3165_s1 + $0x434] ss:$8 sps:$4 sm:$0xff]  }
  0x8e   : > { %1589 = vmatpush1.bf16.msra.mxu0 %v2416_v53 }
  0x8f   : > { %1732 = vmatprep.subr.bf16.mxu0 %v2423_v48 }
  0x91   : > { %1607 = vmatmul.mubr.bf16.vlgmr.msra.gmra.mrb[0].mxu0 %v2799_v59  ;;  %v2435_v59 = vld [vmem:[%s3165_s1 + $0x444] ss:$8 sps:$4 sm:$0xff]  }
  0x92   : > { %1733 = vmatpush1.bf16.msra.mxu0 %v2421_v41  ;;  %1764 = vmatprep.mubr.bf16.mxu0 %v2453_v2  ;;  %v2430_v2 = vld [vmem:[%s3165_s1 + $0x430] ss:$8 sps:$4 sm:$0xff]  }
  0x93   : > { %1734 = vmatprep.subr.bf16.mxu0 %v2426_v55 }
  0x96   : > { %1735 = vmatpush1.bf16.msra.mxu0 %v2424_v50 }
  0x97   : > { %1736 = vmatprep.subr.bf16.mxu0 %v2429_v25 }
  0x9a   : > { %1737 = vmatpush1.bf16.msra.mxu0 %v2427_v51 }
  0x9b   : > { %1738 = vmatprep.subr.bf16.mxu0 %v2432_v54 }
  0x9e   : > { %1739 = vmatpush1.bf16.msra.mxu0 %v2430_v2 }
  0x9f   : > { %1740 = vmatprep.subr.bf16.mxu0 %v2435_v59 }
  0xa2   : > { %1741 = vmatpush1.bf16.msra.mxu0 %v2433_v18 }
  0xa3   : > { %1742 = vmatprep.subr.bf16.mxu0 %v2438_v57 }
  0xa6   : > { %1743 = vmatpush1.bf16.msra.mxu0 %v2436_v60 }
  0xa7   : > { %1744 = vmatprep.subr.bf16.mxu0 %v2441_v49 }
  0xaa   : > { %1745 = vmatpush1.bf16.msra.mxu0 %v2439_v61 }
  0xab   : > { %1746 = vmatprep.subr.bf16.mxu0 %v2444_v63 }
  0xae   : > { %1747 = vmatpush1.bf16.msra.mxu0 %v2442_v0 }
  0xb1   : > { %1765 = vmatmul.mubr.bf16.vlgmr.msra.gmra.mrb[0].mxu0 %v1650_v12 }
 0x15f   : > { %v927_v58 = vpop.f32.mrb[0].mxu1 }
 0x160   : > { %v929_v1 = vpop.f32.mrb[1].mxu1 }
 0x161   : > { %v931_v4 = vpop.f32.mrb[2].mxu1 }
 0x162   : > { %v933_v5 = vpop.f32.mrb[3].mxu1 }
 0x184   : > { %v1766_v15 = vpop.f32.mrb[0].mxu0 }
 0x185   : > { %v2180_v17 = vadd.f32 %v1766_v15, %v927_v58  ;;  %v1768_v19 = vpop.f32.mrb[1].mxu0 }
 0x186   : > { %v2181_v20 = vadd.f32 %v1768_v19, %v929_v1  ;;  %v1770_v62 = vpop.f32.mrb[2].mxu0 }
 0x187   : > { %v2182_v9 = vadd.f32 %v1770_v62, %v931_v4  ;;  %v1772_v12 = vpop.f32.mrb[3].mxu0  ;;  %v1791_v21 = vadd.f32 %v2180_v17, %v1784_v13 }
 0x188   : > { %v2183_v22 = vadd.f32 %v1772_v12, %v933_v5  ;;  %v1792_v23 = vadd.f32 %v2181_v20, %v1788_v16 }
 0x189   : > { %v1793_v43 = vadd.f32 %v2182_v9, %v1784_v13  ;;  %v1795_v24 = vmax.f32 %v1791_v21, 0.0 }
 0x18a   : > { %v1794_v8 = vadd.f32 %v2183_v22, %v1788_v16  ;;  %v1796_v26 = vmax.f32 %v1792_v23, 0.0 }
 0x18b   : > { %1801 = vrot.lane.b32.xlu0 %v1795_v24, %s2455_s6  ;;  %v1797_v27 = vmax.f32 %v1793_v43, 0.0 }
 0x18c   : > { %1811 = vrot.lane.b32.xlu1 %v1796_v26, %s2455_s6  ;;  %v1798_v3 = vmax.f32 %v1794_v8, 0.0 }
 0x18f   : > { %1803 = vrot.lane.b32.xlu0 %v1797_v27, %s2455_s6 }
 0x190   : > { %1813 = vrot.lane.b32.xlu1 %v1798_v3, %s2455_s6 }
 0x1fd   : > { %v1802_v7 = vpop.permute.xlu0 %1801 }
 0x1fe   : > { %v1807_v28 = vmax.f32 %v1795_v24, %v1802_v7  ;;  %v1812_v29 = vpop.permute.xlu1 %1811 }
 0x1ff   : > { %v1817_v36 = vmax.f32 %v1796_v26, %v1812_v29 }
 0x201   : > { %v1819_v37 = vmax.f32 %v1807_v28, %v1817_v36  ;;  %v1804_v38 = vpop.permute.xlu0 %1803 }
 0x202   : > { %v1808_v40 = vmax.f32 %v1797_v27, %v1804_v38  ;;  %v1814_v44 = vpop.permute.xlu1 %1813 }
 0x203   : > { %v1823_v30 = vcombine.high %v1819_v37, %v1819_v37  ;;  %v1827_v31 = vpack.c.bf16 %v1819_v37, %v1819_v37  ;;  %v1818_v52 = vmax.f32 %v1798_v3, %v1814_v44 }
 0x205   : > { %v1828_v33 = vpack.c.bf16 %v1823_v30, %v1823_v30  ;;  %1832 = vst.msk [vmem:[%s170_s10] sm:$0x3] %vm1831_vm14, %v1827_v31  ;;  %v1820_v14 = vmax.f32 %v1808_v40, %v1818_v52 }
 0x207   : > { %1833 = vst.msk [vmem:[%s170_s10 + $0x2] sm:$0x3] %vm1831_vm14, %v1828_v33  ;;  %v1824_v34 = vcombine.high %v1820_v14, %v1820_v14  ;;  %v1829_v47 = vpack.c.bf16 %v1820_v14, %v1820_v14 }
 0x209   : > { %v1830_v56 = vpack.c.bf16 %v1824_v34, %v1824_v34  ;;  %1834 = vst.msk [vmem:[%s170_s10 + $0x4] sm:$0x3] %vm1831_vm14, %v1829_v47 }
 0x20b   : > { %1835 = vst.msk [vmem:[%s170_s10 + $0x6] sm:$0x3] %vm1831_vm14, %v1830_v56 }
 0x20c PF: > { %s13_s12 = sadd.s32 1, %s2451_s12  }
 0x20d   : > { %p10_p4 = scmp.ge.s32.totalorder %s13_s12, 4  }
 0x20f   :  { %12 = sbr.rel (!%p10_p4) target bundleno = 1 (0x1), region = 70 }

</bundles_post_ra>
